<compile_context>
chip_gen: v7x
topology: tpu7x:2x2x1
jax: 0.10.0
libtpu: 0.0.40
codegen_flags: <defaults>
</compile_context>

<pallas_src>
from typing import List, Union

import jax
import jax.numpy as jnp
from jax.experimental import pallas as pl
from jax.experimental.pallas import tpu as pltpu

H = W = 16
HW = H * W
NUM_CLASSES = 1000        # IMAGENET1K_V1 head size implied by the module
N_PAD = 1024              # lane-dense padded head width (multiple of 128)
HUBER_DELTA = 1.0         # torch.nn.HuberLoss() defaults: delta=1.0, mean


def _pick_tn() -> int:
    # v7x has 2 TensorCores: split the weight-DMA-bound N axis in two so the
    # megacore "parallel" sharding engages.  Single-TC chips (v5e/v6e): collapse
    # to grid=1 (no overlap to be had at B~2; saves a grid step + VMEM).
    try:
        kind = jax.devices()[0].device_kind.lower()
        if "v7" in kind:
            return 512
    except Exception:
        pass
    return N_PAD


TN = _pick_tn()


# ----------------------------------------------------------------------------
# Pallas kernels
# ----------------------------------------------------------------------------
def _linear_kernel(x_ref, w_ref, b_ref, o_ref):
    # Single (B, F) @ (F, TN) MXU matmul per N-tile; bias folded into the store.
    o_ref[...] = (
        jnp.dot(x_ref[...], w_ref[...], preferred_element_type=jnp.float32)
        + b_ref[...]
    )


def linear_head(x, w, b):
    """(B, F) @ (F, N_PAD) + (1, N_PAD) -> (B, N_PAD)."""
    B, F = x.shape
    N = w.shape[1]
    assert N % TN == 0
    cost = pl.CostEstimate(
        flops=2 * B * F * N,
        transcendentals=0,
        bytes_accessed=4 * (F * N + B * F + N + B * N),  # dominated by the weight
    )
    return pl.pallas_call(
        _linear_kernel,
        out_shape=jax.ShapeDtypeStruct((B, N), jnp.float32),
        grid_spec=pltpu.PrefetchScalarGridSpec(
            num_scalar_prefetch=0,
            grid=(N // TN,),
            in_specs=[
                pl.BlockSpec((B, F), lambda j: (0, 0)),    # activations, resident
                pl.BlockSpec((F, TN), lambda j: (0, j)),   # weight N-tile
                pl.BlockSpec((1, TN), lambda j: (0, j)),   # bias N-tile
            ],
            out_specs=pl.BlockSpec((B, TN), lambda j: (0, j)),
        ),
        compiler_params=pltpu.CompilerParams(
            dimension_semantics=("parallel",)),
        cost_estimate=cost,
    )(x, w, b)


def _head_huber_kernel(x_ref, w_ref, b_ref, t_ref, loss_ref):
    # Fused head + per-row Huber: the Huber math is pure VPU filler under the
    # weight DMA.  Padded weight/bias/target lanes are all zero -> logits==0,
    # diff==0 -> exactly 0 loss contribution from lanes 1000..1023.
    j = pl.program_id(0)
    logits = (
        jnp.dot(x_ref[...], w_ref[...], preferred_element_type=jnp.float32)
        + b_ref[...]
    )
    d = logits - t_ref[...]
    ad = jnp.abs(d)
    per = jnp.where(ad < HUBER_DELTA,
                    0.5 * d * d,
                    HUBER_DELTA * (ad - 0.5 * HUBER_DELTA))
    partial = jnp.sum(per, axis=-1, keepdims=True) * (1.0 / NUM_CLASSES)

    @pl.when(j == 0)
    def _():
        loss_ref[...] = partial

    @pl.when(j > 0)
    def _():
        loss_ref[...] += partial


def head_huber_losses(x, w, b, t_padded):
    """Fused linear head + per-row mean Huber loss.

    x: (B, F), w: (F, N_PAD) (cols >= NUM_CLASSES must be zero), b: (1, N_PAD),
    t_padded: (B, N_PAD) zero-padded targets -> (B,) per-row mean Huber loss.
    Loss output is resident across the N grid axis, hence "arbitrary".
    """
    B, F = x.shape
    N = w.shape[1]
    assert N % TN == 0
    cost = pl.CostEstimate(
        flops=2 * B * F * N + 6 * B * N,
        transcendentals=0,
        bytes_accessed=4 * (F * N + B * F + N + 2 * B * N),
    )
    out = pl.pallas_call(
        _head_huber_kernel,
        out_shape=jax.ShapeDtypeStruct((B, 1), jnp.float32),
        grid_spec=pltpu.PrefetchScalarGridSpec(
            num_scalar_prefetch=0,
            grid=(N // TN,),
            in_specs=[
                pl.BlockSpec((B, F), lambda j: (0, 0)),
                pl.BlockSpec((F, TN), lambda j: (0, j)),
                pl.BlockSpec((1, TN), lambda j: (0, j)),
                pl.BlockSpec((B, TN), lambda j: (0, j)),   # padded target tile
            ],
            out_specs=pl.BlockSpec((B, 1), lambda j: (0, 0)),  # resident accumulator
        ),
        compiler_params=pltpu.CompilerParams(
            dimension_semantics=("arbitrary",)),
        cost_estimate=cost,
    )(x, w, b, t_padded)
    return out[:, 0]


# ----------------------------------------------------------------------------
# Minimal Sample / Classification stand-ins (data containers only)
# ----------------------------------------------------------------------------
class Classification:
    def __init__(self, confidences):
        self.confidences = confidences


class Sample:
    def __init__(self, argb, lidar, thermal, classification=None):
        self.argb = argb            # (4, H, W)
        self.lidar = lidar          # (1, H, W)
        self.thermal = thermal      # (1, H, W)
        self.classification = classification

    def getARGB(self):
        return self.argb

    def getRGB(self):
        return self.argb[1:4]

    def getGray(self):
        # BT.601 luma in plain jnp: 4 KiB of data; XLA fuses it into the
        # flatten feeding the head.
        r, g, b = self.argb[1:2], self.argb[2:3], self.argb[3:4]
        return (0.299 * r + 0.587 * g + 0.114 * b).astype(jnp.float32)

    def getLidar(self):
        return self.lidar

    def getThermal(self):
        return self.thermal


# ----------------------------------------------------------------------------
# Classifier (forward routing + calculateLoss semantics of the PyTorch module)
# ----------------------------------------------------------------------------
class Classifier:
    registered_classifiers = {}

    def __init__(self, num_channel: int, support_batch: bool):
        self.num_channel = num_channel
        self.support_batch = support_batch
        feat = num_channel * HW
        kw = jax.random.PRNGKey(42)
        # Deterministic synthetic parameters, padded to the lane-dense N_PAD
        # width.  Padded columns (1000..1023) are ZEROED so padded logits are
        # exactly 0 and can be fed straight into the fused loss kernel.
        w = jax.random.normal(kw, (feat, N_PAD), jnp.float32) * 0.02
        self.w = w.at[:, NUM_CLASSES:].set(0.0)
        self.b = jnp.zeros((1, N_PAD), jnp.float32)

    # ---- image extraction helpers -------------------------------------------
    def _images(self, samples: List[Sample]):
        """Stacked (B, C, H, W) images for the configured channel count.

        Gray/luma is computed once on the stacked batch (not per sample)."""
        if self.num_channel == 4:
            return jnp.stack([s.getARGB() for s in samples], axis=0)
        if self.num_channel == 3:
            return jnp.stack([s.getRGB() for s in samples], axis=0)
        argb = jnp.stack([s.getARGB() for s in samples], axis=0)
        r, g, bch = argb[:, 1:2], argb[:, 2:3], argb[:, 3:4]
        return (0.299 * r + 0.587 * g + 0.114 * bch).astype(jnp.float32)

    def _image_single(self, sample: Sample):
        if self.num_channel == 1:
            return sample.getGray()
        if self.num_channel == 3:
            return sample.getRGB()
        return sample.getARGB()

    # TODO(synk): _forward is abstract in the original base class (subclasses
    # provide it); a deterministic Pallas linear head stands in so the routing
    # and loss paths are runnable end-to-end.
    def _forward(self, imgs, lidar, thermal, target=None, dataset=None):
        if isinstance(imgs, list):
            stacked = jnp.stack(imgs, axis=0)
            batched = True
        else:
            arr = jnp.asarray(imgs)
            if arr.ndim == 4:
                stacked = arr
                batched = True
            else:
                stacked = arr[None]
                batched = False
        B = stacked.shape[0]
        x = stacked.reshape(B, -1).astype(jnp.float32)
        logits = linear_head(x, self.w, self.b)
        if batched:
            return [Classification(logits[i, :NUM_CLASSES]) for i in range(B)]
        return Classification(logits[0, :NUM_CLASSES])

    def forward(self, x, target=None, dataset=None):
        if dataset is None:
            # TODO(synk): ClassificationDataset registry not ported; name only.
            dataset = "IMAGENET1K_V1"
        if not isinstance(x, Sample) and (not isinstance(x, list)):
            raise Exception("Argument is not a Sample")
        if isinstance(x, list):
            for v in x:
                if not isinstance(v, Sample):
                    raise Exception("Argument list contains non samples")
            if not self.support_batch:
                if target is not None:
                    # TODO(synk): faithful to the original (sums Classification
                    # objects; target is never consumed by _forward).
                    return sum([self.forward(v[0], target=v[1], dataset=dataset)
                                for v in zip(x, target)])
                # perf: batch internally — one head kernel / one weight stream
                # instead of B per-sample pallas_calls; values are identical.
                return self._forward(self._images(x),
                                     [v.getLidar() for v in x],
                                     [v.getThermal() for v in x],
                                     target, dataset=dataset)
            else:
                return self._forward(self._images(x),
                                     [v.getLidar() for v in x],
                                     [v.getThermal() for v in x],
                                     target, dataset=dataset)
        # single Sample
        return self._forward(self._image_single(x), x.getLidar(), x.getThermal(),
                             target, dataset=dataset)

    def calculateLoss(self, sample):
        # Fused head + Huber kernel: one pallas_call for the whole batch, no
        # logits HBM round trip, no slice/re-pad churn.
        pad = N_PAD - NUM_CLASSES
        if isinstance(sample, Sample):
            x = jnp.asarray(self._image_single(sample),
                            jnp.float32).reshape(1, -1)
            t = jnp.asarray(sample.classification.confidences,
                            jnp.float32).reshape(1, NUM_CLASSES)
            t = jnp.pad(t, ((0, 0), (0, pad)))
            return head_huber_losses(x, self.w, self.b, t)[0]
        imgs = self._images(sample)
        B = imgs.shape[0]
        x = imgs.reshape(B, -1).astype(jnp.float32)
        t = jnp.stack([jnp.asarray(s.classification.confidences, jnp.float32)
                       for s in sample], axis=0)
        t = jnp.pad(t, ((0, 0), (0, pad)))
        # Sum of per-sample mean Huber losses — matches the PyTorch reference
        # (sum over zip(result, sample) of HuberLoss(reduction='mean')).
        return jnp.sum(head_huber_losses(x, self.w, self.b, t))


# ----------------------------------------------------------------------------
if __name__ == "__main__":
    key = jax.random.PRNGKey(0)
    k1, k2, k3, k4 = jax.random.split(key, 4)
    B = 2
    argb = jax.random.uniform(k1, (B, 4, H, W), jnp.float32)
    lidar = jax.random.uniform(k2, (B, 1, H, W), jnp.float32)
    thermal = jax.random.uniform(k3, (B, 1, H, W), jnp.float32)
    tconf = jax.nn.softmax(jax.random.normal(k4, (B, NUM_CLASSES), jnp.float32),
                           axis=-1)

    samples = [Sample(argb[i], lidar[i], thermal[i], Classification(tconf[i]))
               for i in range(B)]

    # 4-channel, batched path (ARGB -> one linear-head kernel for the batch)
    clf4 = Classifier(num_channel=4, support_batch=True)
    out4 = clf4.forward(samples)
    loss4 = clf4.calculateLoss(samples)

    # 1-channel, non-batched path (internally batched head; batched fused loss)
    clf1 = Classifier(num_channel=1, support_batch=False)
    out1 = clf1.forward(samples)
    loss1 = clf1.calculateLoss(samples)

    # single-sample scalar-loss path (fused head+Huber, B=1)
    loss_single = clf4.calculateLoss(samples[0])

    # single-sample forward path
    single_out = clf4.forward(samples[0])

    jax.block_until_ready((out4[0].confidences, out4[1].confidences,
                           out1[0].confidences, out1[1].confidences,
                           single_out.confidences,
                           loss4, loss1, loss_single))

    assert out4[0].confidences.shape == (NUM_CLASSES,)
    assert out1[1].confidences.shape == (NUM_CLASSES,)
    assert single_out.confidences.shape == (NUM_CLASSES,)
    assert loss4.shape == () and loss1.shape == () and loss_single.shape == ()
    print("KERNEL_OK")
</pallas_src>

<mosaic_0001>
module attributes {stable_mosaic.version = 11 : i64} {
  func.func @_linear_kernel(%arg0: i32, %arg1: memref<2x1024xf32, #tpu.memory_space<vmem>>, %arg2: memref<1024x1024xf32, #tpu.memory_space<vmem>>, %arg3: memref<1x1024xf32, #tpu.memory_space<vmem>>, %arg4: memref<2x1024xf32, #tpu.memory_space<vmem>>) attributes {dimension_semantics = [#tpu.dimension_semantics<parallel>], iteration_bounds = array<i64: 1>, scalar_prefetch = 0 : i64, scratch_operands = 0 : i64, tpu.core_type = #tpu.core_type<tc>, window_params = [{pipeline_mode = #tpu.pipeline_mode<synchronous>, transform_indices = @transform_0, window_bounds = array<i64: 2, 1024>}, {transform_indices = @transform_1, window_bounds = array<i64: 1024, 1024>}, {transform_indices = @transform_2, window_bounds = array<i64: 1, 1024>}, {transform_indices = @transform_3, window_bounds = array<i64: 2, 1024>}]} {
    %c0 = arith.constant 0 : index
    %c0_0 = arith.constant 0 : index
    %0 = vector.load %arg1[%c0, %c0_0] : memref<2x1024xf32, #tpu.memory_space<vmem>>, vector<2x1024xf32>
    %c0_1 = arith.constant 0 : index
    %c0_2 = arith.constant 0 : index
    %1 = vector.load %arg2[%c0_1, %c0_2] : memref<1024x1024xf32, #tpu.memory_space<vmem>>, vector<1024x1024xf32>
    %cst = arith.constant dense<0.000000e+00> : vector<2x1024xf32>
    %2 = tpu.matmul %0, %1, %cst {dimension_numbers = #tpu.dot_dimension_numbers<[1], [0], [0], [1], [0, 0, 1, 1], [], []>} : vector<2x1024xf32>, vector<1024x1024xf32>, vector<2x1024xf32> -> vector<2x1024xf32>
    %c0_3 = arith.constant 0 : index
    %c0_4 = arith.constant 0 : index
    %3 = vector.load %arg3[%c0_3, %c0_4] : memref<1x1024xf32, #tpu.memory_space<vmem>>, vector<1x1024xf32>
    %4 = vector.broadcast %3 : vector<1x1024xf32> to vector<2x1024xf32>
    %5 = arith.addf %2, %4 : vector<2x1024xf32>
    %c0_5 = arith.constant 0 : index
    %c0_6 = arith.constant 0 : index
    %6 = vector.load %arg4[%c0_5, %c0_6] : memref<2x1024xf32, #tpu.memory_space<vmem>>, vector<2x1024xf32>
    tpu.vector_store %arg4[%c0_5, %c0_6], %5 {strides = array<i32>} : memref<2x1024xf32, #tpu.memory_space<vmem>>, vector<2x1024xf32>,
    return
  }
  func.func @transform_0(%arg0: i32) -> (i32, i32) {
    %c0_i32 = arith.constant 0 : i32
    %c0_i32_0 = arith.constant 0 : i32
    %c0_i32_1 = arith.constant 0 : i32
    return %c0_i32, %c0_i32_0 : i32, i32
  }
  func.func @transform_1(%arg0: i32) -> (i32, i32) {
    %c0_i32 = arith.constant 0 : i32
    %c0_i32_0 = arith.constant 0 : i32
    return %c0_i32, %arg0 : i32, i32
  }
  func.func @transform_2(%arg0: i32) -> (i32, i32) {
    %c0_i32 = arith.constant 0 : i32
    %c0_i32_0 = arith.constant 0 : i32
    return %c0_i32, %arg0 : i32, i32
  }
  func.func @transform_3(%arg0: i32) -> (i32, i32) {
    %c0_i32 = arith.constant 0 : i32
    %c0_i32_0 = arith.constant 0 : i32
    return %c0_i32, %arg0 : i32, i32
  }
}

</mosaic_0001>

<bundles_post_ra>
// kernel: tpu_custom_call.1
= control target key start
LH: loop header
LB: loop body
LE: loop exit
PB: predicated region body
PF: predicated region fallthrough
CT: control target
= control target key end

     0   :  { %8 = vsyncpa [#allocation3], 0  ;;  %s3693_s0 = inlined_call_operand.hbm [shape: f32[2,1024], index: 0, kind: input, shape index: {}]   ;;  %s3694_s1 = inlined_call_operand.hbm [shape: f32[1024,1024], index: 1, kind: input, shape index: {}]   ;;  %s3695_s2 = inlined_call_operand.hbm [shape: f32[1,1024], index: 2, kind: input, shape index: {}]   ;;  %s3696_s3 = inlined_call_operand.hbm [shape: f32[2,1024], index: 3, kind: output, shape index: {}]  }
   0x1   :  { %9 = vsyncpa [#allocation6], 0 }
   0x2   :  { %10 = vsyncpa [#allocation4], 0  ;;  %s3521_s12 = smov [#allocation5]   ;;  %s3427_s16 = scalar_lea.hbm %s3694_s1, 131072 }
   0x3   :  { %s26_s13 = sshll.u32 %s3521_s12, 4  ;;  %p3428_p0 = scmp.ne.s32.totalorder %s3694_s1, %s3427_s16  ;;  %s27_s13 = int_to_ptr.vmem [resolvable:$true] %s26_s13 }
   0x4   :  { %p3431_p1 = scmp.lt.u32.totalorder %s3427_s16, %s3694_s1 }
   0x6   :  { %p3433_p2 = pnand %p3431_p1, %p3428_p0 }
   0x8   :  { %3436 = shalt.err (!%p3433_p2)
}
   0x9   :  { %s3437_s21 = scalar_lea.vmem %s27_s13, 131072  ;;  %p3442_p4 = scmp.lt.s32.totalorder %s27_s13, %s27_s13 }
   0xa   :  { %p3438_p3 = scmp.ne.s32.totalorder %s27_s13, %s3437_s21  ;;  %p3443_p5 = scmp.lt.s32.totalorder %s3437_s21, %s3437_s21 }
   0xc   :  { %p3444_p6 = por %p3443_p5, %p3442_p4 }
   0xe   :  { %p3445_p7 = pnand %p3444_p6, %p3438_p3 }
  0x10   :  { %3448 = shalt.err (!%p3445_p7)
}
  0x11   :  { %s3522_s22 = smov 1024   ;;  %s3523_s23 = smov 64  }
  0x12   :  { %32 = dma.hbm_to_vmem [thread:$0]  %s3694_s1, 131072, %s27_s13, [#allocation6], %s3522_s22, %s3522_s22, %s3523_s23  }
  0x13   :  { %s3524_s26 = smov [#allocation2]   ;;  %s3525_s28 = smov [#allocation7]  }
  0x14   :  { %s17_s27 = sshll.u32 %s3524_s26, 4  ;;  %s39_s29 = sshll.u32 %s3525_s28, 4  ;;  %s18_s27 = int_to_ptr.vmem [resolvable:$true] %s17_s27  ;;  %s40_s29 = int_to_ptr.vmem [resolvable:$true] %s39_s29 }
  0x15   :  { %s3449_s5 = scalar_lea.hbm %s3693_s0, 256 }
  0x16   :  { %p3450_p8 = scmp.ne.s32.totalorder %s3693_s0, %s3449_s5  ;;  %p3453_p9 = scmp.lt.u32.totalorder %s3449_s5, %s3693_s0 }
  0x18   :  { %p3455_p10 = pnand %p3453_p9, %p3450_p8 }
  0x1a   :  { %3458 = shalt.err (!%p3455_p10)
}
  0x1b   :  { %s3459_s1 = scalar_lea.vmem %s18_s27, 256  ;;  %p3464_p12 = scmp.lt.s32.totalorder %s18_s27, %s18_s27 }
  0x1c   :  { %p3460_p11 = scmp.ne.s32.totalorder %s18_s27, %s3459_s1  ;;  %p3465_p13 = scmp.lt.s32.totalorder %s3459_s1, %s3459_s1 }
  0x1e   :  { %p3466_p0 = por %p3465_p13, %p3464_p12 }
  0x20   :  { %p3467_p1 = pnand %p3466_p0, %p3460_p11 }
  0x22   :  { %3470 = shalt.err (!%p3467_p1)
}
  0x23   :  { %20 = dma.hbm_to_vmem [thread:$0]  %s3693_s0, 256, %s18_s27, [#allocation3]  }
  0x24   :  { %s3471_s14 = scalar_lea.hbm %s3695_s2, 128 }
  0x25   :  { %p3472_p2 = scmp.ne.s32.totalorder %s3695_s2, %s3471_s14  ;;  %p3475_p3 = scmp.lt.u32.totalorder %s3471_s14, %s3695_s2 }
  0x27   :  { %p3477_p4 = pnand %p3475_p3, %p3472_p2 }
  0x29   :  { %3480 = shalt.err (!%p3477_p4)
}
  0x2a   :  { %s3481_s19 = scalar_lea.vmem %s40_s29, 128  ;;  %p3486_p6 = scmp.lt.s32.totalorder %s40_s29, %s40_s29 }
  0x2b   :  { %p3482_p5 = scmp.ne.s32.totalorder %s40_s29, %s3481_s19  ;;  %p3487_p7 = scmp.lt.s32.totalorder %s3481_s19, %s3481_s19 }
  0x2d   :  { %p3488_p8 = por %p3487_p7, %p3486_p6 }
  0x2f   :  { %p3489_p9 = pnand %p3488_p8, %p3482_p5 }
  0x31   :  { %3492 = shalt.err (!%p3489_p9)
}
  0x32   :  { %42 = dma.hbm_to_vmem [thread:$0]  %s3695_s2, 128, %s40_s29, [#allocation6]  }
  0x33   :  { %3515 = dma.done.wait [#allocation3], 256  }
  0x34   :  { %3516 = vsyncadd [#allocation3], 4294967040 }
  0x35   :  { %3517 = dma.done.wait [#allocation6], 131200  }
  0x36   :  { %3518 = vsyncadd [#allocation6], 4294836096  ;;  %v55_v0 = vld [vmem:[#allocation5 + $0x8] sm:$0xff]  ;;  %v57_v2 = vld [vmem:[#allocation5 + $0x18] sm:$0xff]  ;;  %s3527_s2 = smov [#allocation8]  }
  0x37   :  { %v63_v1 = vld [vmem:[#allocation5 + $0x48] sm:$0xff]  ;;  %v65_v4 = vld [vmem:[#allocation5 + $0x58] sm:$0xff]  ;;  %v54_v5 = vld [vmem:[#allocation5] sm:$0xff]  ;;  %s2352_s21 = sshll.u32 %s3527_s2, 4  ;;  %s2353_s21 = int_to_ptr.vmem [resolvable:$true] %s2352_s21 }
  0x38   :  { %v2362_v3 = vpack.c.bf16 %v63_v1, %v55_v0  ;;  %v62_v6 = vld [vmem:[#allocation5 + $0x40] sm:$0xff]  ;;  %v2618_v7 = vpack.c.bf16 %v65_v4, %v57_v2  ;;  %v56_v9 = vld [vmem:[#allocation5 + $0x10] sm:$0xff]  ;;  %v71_v11 = vld [vmem:[#allocation5 + $0x88] sm:$0xff]  ;;  %s3493_s22 = scalar_lea.vmem %s2353_s21, 256  ;;  %p3498_p11 = scmp.lt.s32.totalorder %s2353_s21, %s2353_s21 }
  0x39   :  { %v2364_v8 = vpack.c.bf16 %v62_v6, %v54_v5  ;;  %v64_v10 = vld [vmem:[#allocation5 + $0x50] sm:$0xff]  ;;  %v79_v13 = vld [vmem:[#allocation5 + $0xc8] sm:$0xff]  ;;  %v73_v14 = vld [vmem:[#allocation5 + $0x98] sm:$0xff]  ;;  %p3494_p10 = scmp.ne.s32.totalorder %s2353_s21, %s3493_s22  ;;  %p3499_p12 = scmp.lt.s32.totalorder %s3493_s22, %s3493_s22 }
  0x3a   :  { %2363 = vmatprep.subr.bf16.mxu0 %v2362_v3  ;;  %v2620_v12 = vpack.c.bf16 %v64_v10, %v56_v9  ;;  %v81_v15 = vld [vmem:[#allocation5 + $0xd8] sm:$0xff]  ;;  %2619 = vmatprep.subr.bf16.mxu1 %v2618_v7  ;;  %v2366_v16 = vpack.c.bf16 %v79_v13, %v71_v11  ;;  %v70_v18 = vld [vmem:[#allocation5 + $0x80] sm:$0xff]  ;;  %v72_v20 = vld [vmem:[#allocation5 + $0x90] sm:$0xff] }
  0x3b   :  { %2365 = vmatpush1.bf16.msra.mxu0 %v2364_v8  ;;  %v2622_v17 = vpack.c.bf16 %v81_v15, %v73_v14  ;;  %v78_v19 = vld [vmem:[#allocation5 + $0xc0] sm:$0xff]  ;;  %v80_v22 = vld [vmem:[#allocation5 + $0xd0] sm:$0xff]  ;;  %v87_v23 = vld [vmem:[#allocation5 + $0x108] sm:$0xff]  ;;  %p3500_p13 = por %p3499_p12, %p3498_p11 }
  0x3c   :  { %2621 = vmatpush1.bf16.msra.mxu1 %v2620_v12  ;;  %v2368_v21 = vpack.c.bf16 %v78_v19, %v70_v18  ;;  %v95_v24 = vld [vmem:[#allocation5 + $0x148] sm:$0xff]  ;;  %2367 = vmatprep.subr.bf16.mxu0 %v2366_v16  ;;  %v2624_v25 = vpack.c.bf16 %v80_v22, %v72_v20  ;;  %v89_v27 = vld [vmem:[#allocation5 + $0x118] sm:$0xff]  ;;  %v86_v29 = vld [vmem:[#allocation5 + $0x100] sm:$0xff] }
  0x3d   :  { %2623 = vmatprep.subr.bf16.mxu1 %v2622_v17  ;;  %v2370_v26 = vpack.c.bf16 %v95_v24, %v87_v23  ;;  %v97_v28 = vld [vmem:[#allocation5 + $0x158] sm:$0xff]  ;;  %v94_v31 = vld [vmem:[#allocation5 + $0x140] sm:$0xff]  ;;  %v88_v32 = vld [vmem:[#allocation5 + $0x110] sm:$0xff]  ;;  %p3501_p0 = pnand %p3500_p13, %p3494_p10 }
  0x3e   :  { %v2626_v30 = vpack.c.bf16 %v97_v28, %v89_v27  ;;  %v96_v33 = vld [vmem:[#allocation5 + $0x150] sm:$0xff]  ;;  %v2372_v34 = vpack.c.bf16 %v94_v31, %v86_v29  ;;  %v103_v35 = vld [vmem:[#allocation5 + $0x188] sm:$0xff]  ;;  %v105_v37 = vld [vmem:[#allocation5 + $0x198] sm:$0xff] }
  0x3f   :  { %2369 = vmatpush1.bf16.msra.mxu0 %v2368_v21  ;;  %v111_v36 = vld [vmem:[#allocation5 + $0x1c8] sm:$0xff]  ;;  %v2628_v38 = vpack.c.bf16 %v96_v33, %v88_v32  ;;  %v113_v40 = vld [vmem:[#allocation5 + $0x1d8] sm:$0xff]  ;;  %v102_v41 = vld [vmem:[#allocation5 + $0x180] sm:$0xff] }
  0x40   :  { %2625 = vmatpush1.bf16.msra.mxu1 %v2624_v25  ;;  %2371 = vmatprep.subr.bf16.mxu0 %v2370_v26  ;;  %v2374_v39 = vpack.c.bf16 %v111_v36, %v103_v35  ;;  %v110_v42 = vld [vmem:[#allocation5 + $0x1c0] sm:$0xff]  ;;  %v2630_v43 = vpack.c.bf16 %v113_v40, %v105_v37  ;;  %v104_v44 = vld [vmem:[#allocation5 + $0x190] sm:$0xff]  ;;  %v119_v46 = vld [vmem:[#allocation5 + $0x208] sm:$0xff] }
  0x41   :  { %2627 = vmatprep.subr.bf16.mxu1 %v2626_v30  ;;  %v112_v45 = vld [vmem:[#allocation5 + $0x1d0] sm:$0xff]  ;;  %v127_v47 = vld [vmem:[#allocation5 + $0x248] sm:$0xff]  ;;  %v121_v48 = vld [vmem:[#allocation5 + $0x218] sm:$0xff]  ;;  %v2376_v50 = vpack.c.bf16 %v110_v42, %v102_v41 }
  0x42   :  { %v129_v49 = vld [vmem:[#allocation5 + $0x258] sm:$0xff]  ;;  %v2632_v51 = vpack.c.bf16 %v112_v45, %v104_v44  ;;  %v2378_v52 = vpack.c.bf16 %v127_v47, %v119_v46  ;;  %v118_v53 = vld [vmem:[#allocation5 + $0x200] sm:$0xff]  ;;  %v120_v55 = vld [vmem:[#allocation5 + $0x210] sm:$0xff]  ;;  %v1080_v46 = vlaneseq  ;;  %v3526_v47 = vmov 1983009808  }
  0x43   :  { %2373 = vmatpush1.bf16.msra.mxu0 %v2372_v34  ;;  %v126_v54 = vld [vmem:[#allocation5 + $0x240] sm:$0xff]  ;;  %v2634_v56 = vpack.c.bf16 %v129_v49, %v121_v48  ;;  %v128_v57 = vld [vmem:[#allocation5 + $0x250] sm:$0xff]  ;;  %v135_v58 = vld [vmem:[#allocation5 + $0x288] sm:$0xff]  ;;  %v1124_v48 = vunpack.c.l.s4 %v3526_v47 }
  0x44   :  { %2629 = vmatpush1.bf16.msra.mxu1 %v2628_v38  ;;  %2375 = vmatprep.subr.bf16.mxu0 %v2374_v39  ;;  %v143_v59 = vld [vmem:[#allocation5 + $0x2c8] sm:$0xff]  ;;  %v137_v60 = vld [vmem:[#allocation5 + $0x298] sm:$0xff]  ;;  %v2380_v62 = vpack.c.bf16 %v126_v54, %v118_v53  ;;  %v2636_v63 = vpack.c.bf16 %v128_v57, %v120_v55  ;;  %v134_v1 = vld [vmem:[#allocation5 + $0x280] sm:$0xff] }
  0x45   :  { %2631 = vmatprep.subr.bf16.mxu1 %v2630_v43  ;;  %v145_v61 = vld [vmem:[#allocation5 + $0x2d8] sm:$0xff]  ;;  %v2382_v0 = vpack.c.bf16 %v143_v59, %v135_v58  ;;  %v142_v2 = vld [vmem:[#allocation5 + $0x2c0] sm:$0xff]  ;;  %v136_v3 = vld [vmem:[#allocation5 + $0x290] sm:$0xff] }
  0x46   :  { %v2638_v4 = vpack.c.bf16 %v145_v61, %v137_v60  ;;  %v144_v5 = vld [vmem:[#allocation5 + $0x2d0] sm:$0xff]  ;;  %v151_v6 = vld [vmem:[#allocation5 + $0x308] sm:$0xff]  ;;  %v153_v8 = vld [vmem:[#allocation5 + $0x318] sm:$0xff]  ;;  %v2384_v10 = vpack.c.bf16 %v142_v2, %v134_v1  ;;  %v3584_v61 = vshrl.u32 %v1080_v46, 7 }
  0x47   :  { %2377 = vmatpush1.bf16.msra.mxu0 %v2376_v50  ;;  %v159_v7 = vld [vmem:[#allocation5 + $0x348] sm:$0xff]  ;;  %v161_v9 = vld [vmem:[#allocation5 + $0x358] sm:$0xff]  ;;  %v2640_v11 = vpack.c.bf16 %v144_v5, %v136_v3  ;;  %v150_v13 = vld [vmem:[#allocation5 + $0x300] sm:$0xff] }
  0x48   :  { %2633 = vmatpush1.bf16.msra.mxu1 %v2632_v51  ;;  %2379 = vmatprep.subr.bf16.mxu0 %v2378_v52  ;;  %v2386_v12 = vpack.c.bf16 %v159_v7, %v151_v6  ;;  %v158_v14 = vld [vmem:[#allocation5 + $0x340] sm:$0xff]  ;;  %v152_v15 = vld [vmem:[#allocation5 + $0x310] sm:$0xff]  ;;  %v2642_v16 = vpack.c.bf16 %v161_v9, %v153_v8  ;;  %v167_v18 = vld [vmem:[#allocation5 + $0x388] sm:$0xff] }
  0x49   :  { %2635 = vmatprep.subr.bf16.mxu1 %v2634_v56  ;;  %v160_v17 = vld [vmem:[#allocation5 + $0x350] sm:$0xff]  ;;  %v175_v19 = vld [vmem:[#allocation5 + $0x3c8] sm:$0xff]  ;;  %v169_v20 = vld [vmem:[#allocation5 + $0x398] sm:$0xff]  ;;  %v2388_v22 = vpack.c.bf16 %v158_v14, %v150_v13 }
  0x4a   :  { %v177_v21 = vld [vmem:[#allocation5 + $0x3d8] sm:$0xff]  ;;  %v2644_v23 = vpack.c.bf16 %v160_v17, %v152_v15  ;;  %v2390_v24 = vpack.c.bf16 %v175_v19, %v167_v18  ;;  %v166_v25 = vld [vmem:[#allocation5 + $0x380] sm:$0xff]  ;;  %v168_v27 = vld [vmem:[#allocation5 + $0x390] sm:$0xff] }
  0x4b   :  { %2381 = vmatpush1.bf16.msra.mxu0 %v2380_v62  ;;  %v174_v26 = vld [vmem:[#allocation5 + $0x3c0] sm:$0xff]  ;;  %v2646_v28 = vpack.c.bf16 %v177_v21, %v169_v20  ;;  %v176_v29 = vld [vmem:[#allocation5 + $0x3d0] sm:$0xff]  ;;  %v183_v30 = vld [vmem:[#allocation5 + $0x408] sm:$0xff]  ;;  %v1125_v62 = vunpack.c.0.s8 %v1124_v48 }
  0x4c   :  { %2637 = vmatpush1.bf16.msra.mxu1 %v2636_v63  ;;  %2383 = vmatprep.subr.bf16.mxu0 %v2382_v0  ;;  %v191_v31 = vld [vmem:[#allocation5 + $0x448] sm:$0xff]  ;;  %v185_v32 = vld [vmem:[#allocation5 + $0x418] sm:$0xff]  ;;  %v2392_v34 = vpack.c.bf16 %v174_v26, %v166_v25  ;;  %v2648_v35 = vpack.c.bf16 %v176_v29, %v168_v27  ;;  %v182_v37 = vld [vmem:[#allocation5 + $0x400] sm:$0xff] }
  0x4d   :  { %2639 = vmatprep.subr.bf16.mxu1 %v2638_v4  ;;  %v193_v33 = vld [vmem:[#allocation5 + $0x458] sm:$0xff]  ;;  %v2394_v36 = vpack.c.bf16 %v191_v31, %v183_v30  ;;  %v190_v38 = vld [vmem:[#allocation5 + $0x440] sm:$0xff]  ;;  %v184_v39 = vld [vmem:[#allocation5 + $0x410] sm:$0xff] }
  0x4e   :  { %v2650_v40 = vpack.c.bf16 %v193_v33, %v185_v32  ;;  %v192_v41 = vld [vmem:[#allocation5 + $0x450] sm:$0xff]  ;;  %v199_v42 = vld [vmem:[#allocation5 + $0x488] sm:$0xff]  ;;  %v201_v44 = vld [vmem:[#allocation5 + $0x498] sm:$0xff]  ;;  %v2396_v49 = vpack.c.bf16 %v190_v38, %v182_v37 }
  0x4f   :  { %2385 = vmatpush1.bf16.msra.mxu0 %v2384_v10  ;;  %v207_v43 = vld [vmem:[#allocation5 + $0x4c8] sm:$0xff]  ;;  %v209_v45 = vld [vmem:[#allocation5 + $0x4d8] sm:$0xff]  ;;  %v2652_v50 = vpack.c.bf16 %v192_v41, %v184_v39  ;;  %v198_v52 = vld [vmem:[#allocation5 + $0x480] sm:$0xff] }
  0x50   :  { %2641 = vmatpush1.bf16.msra.mxu1 %v2640_v11  ;;  %2387 = vmatprep.subr.bf16.mxu0 %v2386_v12  ;;  %v2398_v51 = vpack.c.bf16 %v207_v43, %v199_v42  ;;  %v206_v53 = vld [vmem:[#allocation5 + $0x4c0] sm:$0xff]  ;;  %v200_v54 = vld [vmem:[#allocation5 + $0x490] sm:$0xff]  ;;  %v2654_v55 = vpack.c.bf16 %v209_v45, %v201_v44  ;;  %v215_v57 = vld [vmem:[#allocation5 + $0x508] sm:$0xff]  ;;  %v3587_v11 = vsub.s32 %v1125_v62, %v3584_v61 }
  0x51   :  { %2643 = vmatprep.subr.bf16.mxu1 %v2642_v16  ;;  %v208_v56 = vld [vmem:[#allocation5 + $0x4d0] sm:$0xff]  ;;  %v223_v58 = vld [vmem:[#allocation5 + $0x548] sm:$0xff]  ;;  %v217_v59 = vld [vmem:[#allocation5 + $0x518] sm:$0xff]  ;;  %v2400_v63 = vpack.c.bf16 %v206_v53, %v198_v52 }
  0x52   :  { %v225_v60 = vld [vmem:[#allocation5 + $0x558] sm:$0xff]  ;;  %v2656_v0 = vpack.c.bf16 %v208_v56, %v200_v54  ;;  %v2402_v1 = vpack.c.bf16 %v223_v58, %v215_v57  ;;  %v214_v2 = vld [vmem:[#allocation5 + $0x500] sm:$0xff]  ;;  %v216_v4 = vld [vmem:[#allocation5 + $0x510] sm:$0xff] }
  0x53   :  { %2389 = vmatpush1.bf16.msra.mxu0 %v2388_v22  ;;  %v222_v3 = vld [vmem:[#allocation5 + $0x540] sm:$0xff]  ;;  %v2658_v5 = vpack.c.bf16 %v225_v60, %v217_v59  ;;  %v224_v6 = vld [vmem:[#allocation5 + $0x550] sm:$0xff]  ;;  %v231_v7 = vld [vmem:[#allocation5 + $0x588] sm:$0xff] }
  0x54   :  { %2645 = vmatpush1.bf16.msra.mxu1 %v2644_v23  ;;  %2391 = vmatprep.subr.bf16.mxu0 %v2390_v24  ;;  %v239_v8 = vld [vmem:[#allocation5 + $0x5c8] sm:$0xff]  ;;  %v233_v9 = vld [vmem:[#allocation5 + $0x598] sm:$0xff]  ;;  %v2404_v12 = vpack.c.bf16 %v222_v3, %v214_v2  ;;  %v230_v13 = vld [vmem:[#allocation5 + $0x580] sm:$0xff]  ;;  %v2660_v14 = vpack.c.bf16 %v224_v6, %v216_v4 }
  0x55   :  { %2647 = vmatprep.subr.bf16.mxu1 %v2646_v28  ;;  %v241_v10 = vld [vmem:[#allocation5 + $0x5d8] sm:$0xff]  ;;  %v2406_v15 = vpack.c.bf16 %v239_v8, %v231_v7  ;;  %v238_v16 = vld [vmem:[#allocation5 + $0x5c0] sm:$0xff]  ;;  %v232_v17 = vld [vmem:[#allocation5 + $0x590] sm:$0xff] }
  0x56   :  { %v240_v18 = vld [vmem:[#allocation5 + $0x5d0] sm:$0xff]  ;;  %v2662_v19 = vpack.c.bf16 %v241_v10, %v233_v9  ;;  %v247_v20 = vld [vmem:[#allocation5 + $0x608] sm:$0xff]  ;;  %v249_v23 = vld [vmem:[#allocation5 + $0x618] sm:$0xff]  ;;  %v2408_v26 = vpack.c.bf16 %v238_v16, %v230_v13 }
  0x57   :  { %2393 = vmatpush1.bf16.msra.mxu0 %v2392_v34  ;;  %v255_v21 = vld [vmem:[#allocation5 + $0x648] sm:$0xff]  ;;  %v3589_v22 = vld [vmem:[#allocation2] sm:$0xff]  ;;  %v257_v24 = vld [vmem:[#allocation5 + $0x658] sm:$0xff]  ;;  %v2664_v27 = vpack.c.bf16 %v240_v18, %v232_v17 }
  0x58   :  { %2649 = vmatpush1.bf16.msra.mxu1 %v2648_v35  ;;  %2395 = vmatprep.subr.bf16.mxu0 %v2394_v36  ;;  %v3593_v25 = vrot.slane %v3589_v22, %v3587_v11  ;;  %v2410_v28 = vpack.c.bf16 %v255_v21, %v247_v20  ;;  %v246_v29 = vld [vmem:[#allocation5 + $0x600] sm:$0xff]  ;;  %v248_v31 = vld [vmem:[#allocation5 + $0x610] sm:$0xff]  ;;  %v2666_v33 = vpack.c.bf16 %v257_v24, %v249_v23  ;;  %v263_v35 = vld [vmem:[#allocation5 + $0x688] sm:$0xff] }
  0x59   :  { %2651 = vmatprep.subr.bf16.mxu1 %v2650_v40  ;;  %v254_v30 = vld [vmem:[#allocation5 + $0x640] sm:$0xff]  ;;  %v256_v34 = vld [vmem:[#allocation5 + $0x650] sm:$0xff]  ;;  %v271_v36 = vld [vmem:[#allocation5 + $0x6c8] sm:$0xff]  ;;  %v1122_v10 = vcombine.high %v3589_v22, %v3589_v22 }
  0x5a   :  { %v3597_v32 = vcombine.high %v3593_v25, %v3593_v25  ;;  %v265_v37 = vld [vmem:[#allocation5 + $0x698] sm:$0xff]  ;;  %v2412_v39 = vpack.c.bf16 %v254_v30, %v246_v29  ;;  %v2668_v40 = vpack.c.bf16 %v256_v34, %v248_v31  ;;  %v2414_v41 = vpack.c.bf16 %v271_v36, %v263_v35  ;;  %v262_v42 = vld [vmem:[#allocation5 + $0x680] sm:$0xff]  ;;  %v264_v44 = vld [vmem:[#allocation5 + $0x690] sm:$0xff] }
  0x5b   :  { %2397 = vmatpush1.bf16.msra.mxu0 %v2396_v49  ;;  %v273_v38 = vld [vmem:[#allocation5 + $0x6d8] sm:$0xff]  ;;  %v270_v43 = vld [vmem:[#allocation5 + $0x6c0] sm:$0xff]  ;;  %v272_v46 = vld [vmem:[#allocation5 + $0x6d0] sm:$0xff] }
  0x5c   :  { %2653 = vmatpush1.bf16.msra.mxu1 %v2652_v50  ;;  %2399 = vmatprep.subr.bf16.mxu0 %v2398_v51  ;;  %v2670_v45 = vpack.c.bf16 %v273_v38, %v265_v37  ;;  %v279_v47 = vld [vmem:[#allocation5 + $0x708] sm:$0xff]  ;;  %v281_v49 = vld [vmem:[#allocation5 + $0x718] sm:$0xff]  ;;  %v2416_v51 = vpack.c.bf16 %v270_v43, %v262_v42  ;;  %v2672_v52 = vpack.c.bf16 %v272_v46, %v264_v44  ;;  %v278_v54 = vld [vmem:[#allocation5 + $0x700] sm:$0xff] }
  0x5d   :  { %2655 = vmatprep.subr.bf16.mxu1 %v2654_v55  ;;  %1228 = vmatprep.mubr.f32.mxu0 %v3597_v32  ;;  %v287_v48 = vld [vmem:[#allocation5 + $0x748] sm:$0xff]  ;;  %v289_v50 = vld [vmem:[#allocation5 + $0x758] sm:$0xff]  ;;  %v286_v55 = vld [vmem:[#allocation5 + $0x740] sm:$0xff] }
  0x5e   :  { %1512 = vmatprep.mubr.f32.mxu1 %v3597_v32  ;;  %v2418_v53 = vpack.c.bf16 %v287_v48, %v279_v47  ;;  %v280_v56 = vld [vmem:[#allocation5 + $0x710] sm:$0xff]  ;;  %v2674_v57 = vpack.c.bf16 %v289_v50, %v281_v49  ;;  %v295_v59 = vld [vmem:[#allocation5 + $0x788] sm:$0xff]  ;;  %v297_v62 = vld [vmem:[#allocation5 + $0x798] sm:$0xff] }
  0x5f   :  { %2401 = vmatpush1.bf16.msra.mxu0 %v2400_v63  ;;  %v288_v58 = vld [vmem:[#allocation5 + $0x750] sm:$0xff]  ;;  %v303_v60 = vld [vmem:[#allocation5 + $0x7c8] sm:$0xff]  ;;  %v305_v63 = vld [vmem:[#allocation5 + $0x7d8] sm:$0xff] }
  0x60   :  { %2657 = vmatpush1.bf16.msra.mxu1 %v2656_v0  ;;  %2403 = vmatprep.subr.bf16.mxu0 %v2402_v1  ;;  %v2420_v0 = vpack.c.bf16 %v286_v55, %v278_v54  ;;  %v2676_v1 = vpack.c.bf16 %v288_v58, %v280_v56  ;;  %v2422_v2 = vpack.c.bf16 %v303_v60, %v295_v59  ;;  %v294_v3 = vld [vmem:[#allocation5 + $0x780] sm:$0xff]  ;;  %v304_v7 = vld [vmem:[#allocation5 + $0x7d0] sm:$0xff]  ;;  %v311_v8 = vld [vmem:[#allocation5 + $0x808] sm:$0xff] }
  0x61   :  { %2659 = vmatprep.subr.bf16.mxu1 %v2658_v5  ;;  %v302_v4 = vld [vmem:[#allocation5 + $0x7c0] sm:$0xff]  ;;  %v296_v5 = vld [vmem:[#allocation5 + $0x790] sm:$0xff]  ;;  %v2678_v6 = vpack.c.bf16 %v305_v63, %v297_v62  ;;  %v319_v9 = vld [vmem:[#allocation5 + $0x848] sm:$0xff] }
  0x62   :  { %v321_v13 = vld [vmem:[#allocation5 + $0x858] sm:$0xff]  ;;  %v2426_v16 = vpack.c.bf16 %v319_v9, %v311_v8  ;;  %v310_v17 = vld [vmem:[#allocation5 + $0x800] sm:$0xff]  ;;  %v320_v21 = vld [vmem:[#allocation5 + $0x850] sm:$0xff] }
  0x63   :  { %2405 = vmatpush1.bf16.msra.mxu0 %v2404_v12  ;;  %v313_v12 = vld [vmem:[#allocation5 + $0x818] sm:$0xff]  ;;  %v318_v18 = vld [vmem:[#allocation5 + $0x840] sm:$0xff]  ;;  %v327_v23 = vld [vmem:[#allocation5 + $0x888] sm:$0xff] }
  0x64   :  { %2661 = vmatpush1.bf16.msra.mxu1 %v2660_v14  ;;  %2407 = vmatprep.subr.bf16.mxu0 %v2406_v15  ;;  %v2424_v14 = vpack.c.bf16 %v302_v4, %v294_v3  ;;  %v2680_v15 = vpack.c.bf16 %v304_v7, %v296_v5  ;;  %v2682_v20 = vpack.c.bf16 %v321_v13, %v313_v12  ;;  %v335_v24 = vld [vmem:[#allocation5 + $0x8c8] sm:$0xff]  ;;  %v329_v22 = vld [vmem:[#allocation5 + $0x898] sm:$0xff]  ;;  %v326_v31 = vld [vmem:[#allocation5 + $0x880] sm:$0xff] }
  0x65   :  { %2663 = vmatprep.subr.bf16.mxu1 %v2662_v19  ;;  %v312_v19 = vld [vmem:[#allocation5 + $0x810] sm:$0xff]  ;;  %v2430_v30 = vpack.c.bf16 %v335_v24, %v327_v23  ;;  %v343_v37 = vld [vmem:[#allocation5 + $0x908] sm:$0xff]  ;;  %v350_v46 = vld [vmem:[#allocation5 + $0x940] sm:$0xff] }
  0x66   :  { %v2684_v29 = vpack.c.bf16 %v320_v21, %v312_v19  ;;  %v328_v34 = vld [vmem:[#allocation5 + $0x890] sm:$0xff]  ;;  %v351_v38 = vld [vmem:[#allocation5 + $0x948] sm:$0xff]  ;;  %v366_v58 = vld [vmem:[#allocation5 + $0x9c0] sm:$0xff] }
  0x67   :  { %2409 = vmatpush1.bf16.msra.mxu0 %v2408_v26  ;;  %v3604_v26 = vrot.slane %v1122_v10, %v3587_v11  ;;  %v336_v36 = vld [vmem:[#allocation5 + $0x8d0] sm:$0xff]  ;;  %v2434_v44 = vpack.c.bf16 %v351_v38, %v343_v37  ;;  %v359_v50 = vld [vmem:[#allocation5 + $0x988] sm:$0xff]  ;;  %v382_v7 = vld [vmem:[#allocation5 + $0xa40] sm:$0xff] }
  0x68   :  { %2665 = vmatpush1.bf16.msra.mxu1 %v2664_v27  ;;  %2411 = vmatprep.subr.bf16.mxu0 %v2410_v28  ;;  %v337_v27 = vld [vmem:[#allocation5 + $0x8d8] sm:$0xff]  ;;  %v2428_v28 = vpack.c.bf16 %v318_v18, %v310_v17  ;;  %v2688_v43 = vpack.c.bf16 %v336_v36, %v328_v34  ;;  %v344_v47 = vld [vmem:[#allocation5 + $0x910] sm:$0xff]  ;;  %v375_v63 = vld [vmem:[#allocation5 + $0xa08] sm:$0xff] }
  0x69   :  { %2667 = vmatprep.subr.bf16.mxu1 %v2666_v33  ;;  %v334_v33 = vld [vmem:[#allocation5 + $0x8c0] sm:$0xff]  ;;  %v2686_v35 = vpack.c.bf16 %v337_v27, %v329_v22  ;;  %v352_v49 = vld [vmem:[#allocation5 + $0x950] sm:$0xff]  ;;  %v391_v12 = vld [vmem:[#allocation5 + $0xa88] sm:$0xff] }
  0x6a   :  { %v2432_v42 = vpack.c.bf16 %v334_v33, %v326_v31  ;;  %v2692_v55 = vpack.c.bf16 %v352_v49, %v344_v47  ;;  %v360_v59 = vld [vmem:[#allocation5 + $0x990] sm:$0xff]  ;;  %v399_v13 = vld [vmem:[#allocation5 + $0xac8] sm:$0xff]  ;;  %v390_v19 = vld [vmem:[#allocation5 + $0xa80] sm:$0xff] }
  0x6b   :  { %2413 = vmatpush1.bf16.msra.mxu0 %v2412_v39  ;;  %v3608_v39 = vcombine.high %v3604_v26, %v3604_v26  ;;  %v368_v62 = vld [vmem:[#allocation5 + $0x9d0] sm:$0xff]  ;;  %v2446_v18 = vpack.c.bf16 %v399_v13, %v391_v12  ;;  %v407_v22 = vld [vmem:[#allocation5 + $0xb08] sm:$0xff]  ;;  %v406_v34 = vld [vmem:[#allocation5 + $0xb00] sm:$0xff] }
  0x6c   :  { %2669 = vmatpush1.bf16.msra.mxu1 %v2668_v40  ;;  %2415 = vmatprep.subr.bf16.mxu0 %v2414_v41  ;;  %v345_v40 = vld [vmem:[#allocation5 + $0x918] sm:$0xff]  ;;  %v2696_v4 = vpack.c.bf16 %v368_v62, %v360_v59  ;;  %v376_v8 = vld [vmem:[#allocation5 + $0xa10] sm:$0xff]  ;;  %v415_v27 = vld [vmem:[#allocation5 + $0xb48] sm:$0xff] }
  0x6d   :  { %2671 = vmatprep.subr.bf16.mxu1 %v2670_v45  ;;  %v353_v41 = vld [vmem:[#allocation5 + $0x958] sm:$0xff]  ;;  %v342_v45 = vld [vmem:[#allocation5 + $0x900] sm:$0xff]  ;;  %v384_v10 = vld [vmem:[#allocation5 + $0xa50] sm:$0xff]  ;;  %v2450_v33 = vpack.c.bf16 %v415_v27, %v407_v22 }
  0x6e   :  { %v2690_v48 = vpack.c.bf16 %v353_v41, %v345_v40  ;;  %v2436_v54 = vpack.c.bf16 %v350_v46, %v342_v45  ;;  %v2700_v17 = vpack.c.bf16 %v384_v10, %v376_v8  ;;  %v392_v21 = vld [vmem:[#allocation5 + $0xa90] sm:$0xff]  ;;  %v423_v40 = vld [vmem:[#allocation5 + $0xb88] sm:$0xff]  ;;  %v422_v47 = vld [vmem:[#allocation5 + $0xb80] sm:$0xff] }
  0x6f   :  { %2417 = vmatpush1.bf16.msra.mxu0 %v2416_v51  ;;  %v367_v51 = vld [vmem:[#allocation5 + $0x9c8] sm:$0xff]  ;;  %v400_v24 = vld [vmem:[#allocation5 + $0xad0] sm:$0xff]  ;;  %v438_v59 = vld [vmem:[#allocation5 + $0xc00] sm:$0xff] }
  0x70   :  { %2673 = vmatpush1.bf16.msra.mxu1 %v2672_v52  ;;  %2419 = vmatprep.subr.bf16.mxu0 %v2418_v53  ;;  %v361_v52 = vld [vmem:[#allocation5 + $0x998] sm:$0xff]  ;;  %v2438_v56 = vpack.c.bf16 %v367_v51, %v359_v50  ;;  %v2704_v31 = vpack.c.bf16 %v400_v24, %v392_v21  ;;  %v408_v36 = vld [vmem:[#allocation5 + $0xb10] sm:$0xff]  ;;  %v431_v41 = vld [vmem:[#allocation5 + $0xbc8] sm:$0xff] }
  0x71   :  { %2675 = vmatprep.subr.bf16.mxu1 %v2674_v57  ;;  %v369_v53 = vld [vmem:[#allocation5 + $0x9d8] sm:$0xff]  ;;  %v358_v57 = vld [vmem:[#allocation5 + $0x980] sm:$0xff]  ;;  %v416_v38 = vld [vmem:[#allocation5 + $0xb50] sm:$0xff]  ;;  %v2454_v46 = vpack.c.bf16 %v431_v41, %v423_v40 }
  0x72   :  { %v2694_v60 = vpack.c.bf16 %v369_v53, %v361_v52  ;;  %v2440_v3 = vpack.c.bf16 %v366_v58, %v358_v57  ;;  %v2708_v45 = vpack.c.bf16 %v416_v38, %v408_v36  ;;  %v424_v49 = vld [vmem:[#allocation5 + $0xb90] sm:$0xff]  ;;  %v439_v52 = vld [vmem:[#allocation5 + $0xc08] sm:$0xff]  ;;  %v454_v8 = vld [vmem:[#allocation5 + $0xc80] sm:$0xff] }
  0x73   :  { %2421 = vmatpush1.bf16.msra.mxu0 %v2420_v0  ;;  %v383_v0 = vld [vmem:[#allocation5 + $0xa48] sm:$0xff]  ;;  %v432_v51 = vld [vmem:[#allocation5 + $0xbd0] sm:$0xff]  ;;  %v470_v21 = vld [vmem:[#allocation5 + $0xd00] sm:$0xff] }
  0x74   :  { %2677 = vmatpush1.bf16.msra.mxu1 %v2676_v1  ;;  %2423 = vmatprep.subr.bf16.mxu0 %v2422_v2  ;;  %v377_v1 = vld [vmem:[#allocation5 + $0xa18] sm:$0xff]  ;;  %v2442_v5 = vpack.c.bf16 %v383_v0, %v375_v63  ;;  %v447_v53 = vld [vmem:[#allocation5 + $0xc48] sm:$0xff]  ;;  %v2712_v57 = vpack.c.bf16 %v432_v51, %v424_v49  ;;  %v440_v62 = vld [vmem:[#allocation5 + $0xc10] sm:$0xff] }
  0x75   :  { %2679 = vmatprep.subr.bf16.mxu1 %v2678_v6  ;;  %v385_v2 = vld [vmem:[#allocation5 + $0xa58] sm:$0xff]  ;;  %v374_v6 = vld [vmem:[#allocation5 + $0xa00] sm:$0xff]  ;;  %v2458_v58 = vpack.c.bf16 %v447_v53, %v439_v52  ;;  %v448_v0 = vld [vmem:[#allocation5 + $0xc50] sm:$0xff] }
  0x76   :  { %v2698_v9 = vpack.c.bf16 %v385_v2, %v377_v1  ;;  %v455_v1 = vld [vmem:[#allocation5 + $0xc88] sm:$0xff]  ;;  %v456_v10 = vld [vmem:[#allocation5 + $0xc90] sm:$0xff]  ;;  %v486_v36 = vld [vmem:[#allocation5 + $0xd80] sm:$0xff] }
  0x77   :  { %2425 = vmatpush1.bf16.msra.mxu0 %v2424_v14  ;;  %v393_v14 = vld [vmem:[#allocation5 + $0xa98] sm:$0xff]  ;;  %v463_v2 = vld [vmem:[#allocation5 + $0xcc8] sm:$0xff]  ;;  %v464_v13 = vld [vmem:[#allocation5 + $0xcd0] sm:$0xff] }
  0x78   :  { %2681 = vmatpush1.bf16.msra.mxu1 %v2680_v15  ;;  %2427 = vmatprep.subr.bf16.mxu0 %v2426_v16  ;;  %v401_v15 = vld [vmem:[#allocation5 + $0xad8] sm:$0xff]  ;;  %v2444_v16 = vpack.c.bf16 %v382_v7, %v374_v6  ;;  %v2716_v6 = vpack.c.bf16 %v448_v0, %v440_v62  ;;  %v2462_v7 = vpack.c.bf16 %v463_v2, %v455_v1  ;;  %v472_v24 = vld [vmem:[#allocation5 + $0xd10] sm:$0xff]  ;;  %v502_v49 = vld [vmem:[#allocation5 + $0xe00] sm:$0xff] }
  0x79   :  { %2683 = vmatprep.subr.bf16.mxu1 %v2682_v20  ;;  %v398_v20 = vld [vmem:[#allocation5 + $0xac0] sm:$0xff]  ;;  %v2702_v23 = vpack.c.bf16 %v401_v15, %v393_v14  ;;  %v471_v14 = vld [vmem:[#allocation5 + $0xd08] sm:$0xff]  ;;  %v480_v27 = vld [vmem:[#allocation5 + $0xd50] sm:$0xff] }
  0x7a   :  { %1229 = vmatmul.mubr.f32.vlgmr.msra.gmra.mrb[0].mxu0 %v3593_v25  ;;  %v479_v15 = vld [vmem:[#allocation5 + $0xd48] sm:$0xff]  ;;  %v488_v38 = vld [vmem:[#allocation5 + $0xd90] sm:$0xff]  ;;  %v518_v62 = vld [vmem:[#allocation5 + $0xe80] sm:$0xff] }
  0x7b   :  { %2429 = vmatpush1.bf16.msra.mxu0 %v2428_v28  ;;  %1513 = vmatmul.mubr.f32.vlgmr.msra.gmra.mrb[0].mxu1 %v3593_v25  ;;  %v409_v28 = vld [vmem:[#allocation5 + $0xb18] sm:$0xff]  ;;  %v496_v41 = vld [vmem:[#allocation5 + $0xdd0] sm:$0xff] }
  0x7c   :  { %2685 = vmatpush1.bf16.msra.mxu1 %v2684_v29  ;;  %2431 = vmatprep.subr.bf16.mxu0 %v2430_v30  ;;  %v417_v29 = vld [vmem:[#allocation5 + $0xb58] sm:$0xff]  ;;  %v2448_v30 = vpack.c.bf16 %v398_v20, %v390_v19  ;;  %v2720_v19 = vpack.c.bf16 %v464_v13, %v456_v10  ;;  %v2466_v20 = vpack.c.bf16 %v479_v15, %v471_v14  ;;  %v504_v51 = vld [vmem:[#allocation5 + $0xe10] sm:$0xff]  ;;  %v534_v10 = vld [vmem:[#allocation5 + $0xf00] sm:$0xff] }
  0x7d   :  { %2687 = vmatprep.subr.bf16.mxu1 %v2686_v35  ;;  %1299 = vmatprep.mubr.f32.mxu0 %v3608_v39  ;;  %v414_v35 = vld [vmem:[#allocation5 + $0xb40] sm:$0xff]  ;;  %v2706_v37 = vpack.c.bf16 %v417_v29, %v409_v28  ;;  %v487_v28 = vld [vmem:[#allocation5 + $0xd88] sm:$0xff]  ;;  %v512_v53 = vld [vmem:[#allocation5 + $0xe50] sm:$0xff] }
  0x7e   :  { %1583 = vmatprep.mubr.f32.mxu1 %v3608_v39  ;;  %v495_v29 = vld [vmem:[#allocation5 + $0xdc8] sm:$0xff]  ;;  %v520_v0 = vld [vmem:[#allocation5 + $0xe90] sm:$0xff] }
  0x7f   :  { %2433 = vmatpush1.bf16.msra.mxu0 %v2432_v42  ;;  %v425_v42 = vld [vmem:[#allocation5 + $0xb98] sm:$0xff]  ;;  %v528_v2 = vld [vmem:[#allocation5 + $0xed0] sm:$0xff] }
  0x80   :  { %2689 = vmatpush1.bf16.msra.mxu1 %v2688_v43  ;;  %2435 = vmatprep.subr.bf16.mxu0 %v2434_v44  ;;  %v433_v43 = vld [vmem:[#allocation5 + $0xbd8] sm:$0xff]  ;;  %v2452_v44 = vpack.c.bf16 %v414_v35, %v406_v34  ;;  %v2724_v34 = vpack.c.bf16 %v480_v27, %v472_v24  ;;  %v2470_v35 = vpack.c.bf16 %v495_v29, %v487_v28  ;;  %v536_v13 = vld [vmem:[#allocation5 + $0xf10] sm:$0xff]  ;;  %v550_v24 = vld [vmem:[#allocation5 + $0xf80] sm:$0xff] }
  0x81   :  { %2691 = vmatprep.subr.bf16.mxu1 %v2690_v48  ;;  %v430_v48 = vld [vmem:[#allocation5 + $0xbc0] sm:$0xff]  ;;  %v2710_v50 = vpack.c.bf16 %v433_v43, %v425_v42  ;;  %v503_v42 = vld [vmem:[#allocation5 + $0xe08] sm:$0xff]  ;;  %v544_v15 = vld [vmem:[#allocation5 + $0xf50] sm:$0xff] }
  0x82   :  { %v511_v43 = vld [vmem:[#allocation5 + $0xe48] sm:$0xff]  ;;  %v552_v27 = vld [vmem:[#allocation5 + $0xf90] sm:$0xff] }
  0x83   :  { %2437 = vmatpush1.bf16.msra.mxu0 %v2436_v54  ;;  %v441_v54 = vld [vmem:[#allocation5 + $0xc18] sm:$0xff]  ;;  %v560_v29 = vld [vmem:[#allocation5 + $0xfd0] sm:$0xff] }
  0x84   :  { %2693 = vmatpush1.bf16.msra.mxu1 %v2692_v55  ;;  %2439 = vmatprep.subr.bf16.mxu0 %v2438_v56  ;;  %v449_v55 = vld [vmem:[#allocation5 + $0xc58] sm:$0xff]  ;;  %v2456_v56 = vpack.c.bf16 %v430_v48, %v422_v47  ;;  %v2728_v47 = vpack.c.bf16 %v496_v41, %v488_v38  ;;  %v2474_v48 = vpack.c.bf16 %v511_v43, %v503_v42  ;;  %v566_v38 = vld [vmem:[#allocation5 + $0x1000] sm:$0xff]  ;;  %v568_v41 = vld [vmem:[#allocation5 + $0x1010] sm:$0xff] }
  0x85   :  { %2695 = vmatprep.subr.bf16.mxu1 %v2694_v60  ;;  %v446_v60 = vld [vmem:[#allocation5 + $0xc40] sm:$0xff]  ;;  %v2714_v63 = vpack.c.bf16 %v449_v55, %v441_v54  ;;  %v519_v54 = vld [vmem:[#allocation5 + $0xe88] sm:$0xff]  ;;  %v576_v43 = vld [vmem:[#allocation5 + $0x1050] sm:$0xff] }
  0x86   :  { %v527_v55 = vld [vmem:[#allocation5 + $0xec8] sm:$0xff] }
  0x87   :  { %2441 = vmatpush1.bf16.msra.mxu0 %v2440_v3  ;;  %v457_v3 = vld [vmem:[#allocation5 + $0xc98] sm:$0xff] }
  0x88   :  { %2697 = vmatpush1.bf16.msra.mxu1 %v2696_v4  ;;  %2443 = vmatprep.subr.bf16.mxu0 %v2442_v5  ;;  %v465_v4 = vld [vmem:[#allocation5 + $0xcd8] sm:$0xff]  ;;  %v2460_v5 = vpack.c.bf16 %v446_v60, %v438_v59  ;;  %v2732_v59 = vpack.c.bf16 %v512_v53, %v504_v51  ;;  %v2478_v60 = vpack.c.bf16 %v527_v55, %v519_v54  ;;  %v590_v53 = vld [vmem:[#allocation5 + $0x10c0] sm:$0xff]  ;;  %v584_v54 = vld [vmem:[#allocation5 + $0x1090] sm:$0xff] }
  0x89   :  { %2699 = vmatprep.subr.bf16.mxu1 %v2698_v9  ;;  %v462_v9 = vld [vmem:[#allocation5 + $0xcc0] sm:$0xff]  ;;  %v2718_v12 = vpack.c.bf16 %v465_v4, %v457_v3  ;;  %v535_v3 = vld [vmem:[#allocation5 + $0xf08] sm:$0xff] }
  0x8a   :  { %v543_v4 = vld [vmem:[#allocation5 + $0xf48] sm:$0xff] }
  0x8b   :  { %2445 = vmatpush1.bf16.msra.mxu0 %v2444_v16  ;;  %v473_v16 = vld [vmem:[#allocation5 + $0xd18] sm:$0xff] }
  0x8c   :  { %2701 = vmatpush1.bf16.msra.mxu1 %v2700_v17  ;;  %2447 = vmatprep.subr.bf16.mxu0 %v2446_v18  ;;  %v481_v17 = vld [vmem:[#allocation5 + $0xd58] sm:$0xff]  ;;  %v2464_v18 = vpack.c.bf16 %v462_v9, %v454_v8  ;;  %v2736_v8 = vpack.c.bf16 %v528_v2, %v520_v0  ;;  %v2482_v9 = vpack.c.bf16 %v543_v4, %v535_v3  ;;  %v598_v3 = vld [vmem:[#allocation5 + $0x1100] sm:$0xff] }
  0x8d   :  { %2703 = vmatprep.subr.bf16.mxu1 %v2702_v23  ;;  %v478_v23 = vld [vmem:[#allocation5 + $0xd40] sm:$0xff]  ;;  %v2722_v22 = vpack.c.bf16 %v481_v17, %v473_v16  ;;  %v551_v16 = vld [vmem:[#allocation5 + $0xf88] sm:$0xff] }
  0x8e   :  { %v559_v17 = vld [vmem:[#allocation5 + $0xfc8] sm:$0xff]  ;;  %v606_v4 = vld [vmem:[#allocation5 + $0x1140] sm:$0xff] }
  0x8f   :  { %2449 = vmatpush1.bf16.msra.mxu0 %v2448_v30  ;;  %v489_v30 = vld [vmem:[#allocation5 + $0xd98] sm:$0xff] }
  0x90   :  { %2705 = vmatpush1.bf16.msra.mxu1 %v2704_v31  ;;  %2451 = vmatprep.subr.bf16.mxu0 %v2450_v33  ;;  %v497_v31 = vld [vmem:[#allocation5 + $0xdd8] sm:$0xff]  ;;  %v2468_v33 = vpack.c.bf16 %v478_v23, %v470_v21  ;;  %v2740_v21 = vpack.c.bf16 %v544_v15, %v536_v13  ;;  %v2486_v23 = vpack.c.bf16 %v559_v17, %v551_v16  ;;  %v614_v16 = vld [vmem:[#allocation5 + $0x1180] sm:$0xff] }
  0x91   :  { %2707 = vmatprep.subr.bf16.mxu1 %v2706_v37  ;;  %v494_v37 = vld [vmem:[#allocation5 + $0xdc0] sm:$0xff]  ;;  %v2726_v40 = vpack.c.bf16 %v497_v31, %v489_v30  ;;  %v567_v30 = vld [vmem:[#allocation5 + $0x1008] sm:$0xff]  ;;  %v2500_v13 = vpack.c.bf16 %v606_v4, %v598_v3  ;;  %v681_v3 = vld [vmem:[#allocation5 + $0x1398] sm:$0xff] }
  0x92   :  { %v575_v31 = vld [vmem:[#allocation5 + $0x1048] sm:$0xff]  ;;  %v622_v17 = vld [vmem:[#allocation5 + $0x11c0] sm:$0xff]  ;;  %v689_v4 = vld [vmem:[#allocation5 + $0x13d8] sm:$0xff] }
  0x93   :  { %2453 = vmatpush1.bf16.msra.mxu0 %v2452_v44  ;;  %v505_v44 = vld [vmem:[#allocation5 + $0xe18] sm:$0xff] }
  0x94   :  { %2709 = vmatpush1.bf16.msra.mxu1 %v2708_v45  ;;  %2455 = vmatprep.subr.bf16.mxu0 %v2454_v46  ;;  %v513_v45 = vld [vmem:[#allocation5 + $0xe58] sm:$0xff]  ;;  %v2472_v46 = vpack.c.bf16 %v494_v37, %v486_v36  ;;  %v2744_v36 = vpack.c.bf16 %v560_v29, %v552_v27  ;;  %v2490_v37 = vpack.c.bf16 %v575_v31, %v567_v30  ;;  %v630_v30 = vld [vmem:[#allocation5 + $0x1200] sm:$0xff] }
  0x95   :  { %2711 = vmatprep.subr.bf16.mxu1 %v2710_v50  ;;  %v510_v50 = vld [vmem:[#allocation5 + $0xe40] sm:$0xff]  ;;  %v2730_v52 = vpack.c.bf16 %v513_v45, %v505_v44  ;;  %v583_v44 = vld [vmem:[#allocation5 + $0x1088] sm:$0xff]  ;;  %v2504_v27 = vpack.c.bf16 %v622_v17, %v614_v16  ;;  %v697_v16 = vld [vmem:[#allocation5 + $0x1418] sm:$0xff] }
  0x96   :  { %v591_v45 = vld [vmem:[#allocation5 + $0x10c8] sm:$0xff]  ;;  %v638_v31 = vld [vmem:[#allocation5 + $0x1240] sm:$0xff]  ;;  %v705_v17 = vld [vmem:[#allocation5 + $0x1458] sm:$0xff] }
  0x97   :  { %2457 = vmatpush1.bf16.msra.mxu0 %v2456_v56  ;;  %v521_v56 = vld [vmem:[#allocation5 + $0xe98] sm:$0xff]  ;;  %v2494_v51 = vpack.c.bf16 %v591_v45, %v583_v44  ;;  %v646_v44 = vld [vmem:[#allocation5 + $0x1280] sm:$0xff] }
  0x98   :  { %2713 = vmatpush1.bf16.msra.mxu1 %v2712_v57  ;;  %2459 = vmatprep.subr.bf16.mxu0 %v2458_v58  ;;  %v529_v57 = vld [vmem:[#allocation5 + $0xed8] sm:$0xff]  ;;  %v2476_v58 = vpack.c.bf16 %v510_v50, %v502_v49  ;;  %v2748_v50 = vpack.c.bf16 %v576_v43, %v568_v41  ;;  %v2508_v41 = vpack.c.bf16 %v638_v31, %v630_v30  ;;  %v654_v45 = vld [vmem:[#allocation5 + $0x12c0] sm:$0xff] }
  0x99   :  { %2715 = vmatprep.subr.bf16.mxu1 %v2714_v63  ;;  %v526_v63 = vld [vmem:[#allocation5 + $0xec0] sm:$0xff]  ;;  %v2734_v1 = vpack.c.bf16 %v529_v57, %v521_v56  ;;  %v3614_v49 = vld [vmem:[#allocation2 + $0x8] sm:$0xff]  ;;  %v592_v57 = vld [vmem:[#allocation5 + $0x10d0] sm:$0xff] }
  0x9a   :  { %v3618_v55 = vrot.slane %v3614_v49, %v3587_v11  ;;  %v713_v30 = vld [vmem:[#allocation5 + $0x1498] sm:$0xff] }
  0x9b   :  { %2461 = vmatpush1.bf16.msra.mxu0 %v2460_v5  ;;  %v537_v5 = vld [vmem:[#allocation5 + $0xf18] sm:$0xff] }
  0x9c   :  { %2717 = vmatpush1.bf16.msra.mxu1 %v2716_v6  ;;  %2463 = vmatprep.subr.bf16.mxu0 %v2462_v7  ;;  %v545_v6 = vld [vmem:[#allocation5 + $0xf58] sm:$0xff]  ;;  %v2480_v7 = vpack.c.bf16 %v526_v63, %v518_v62  ;;  %v3623_v63 = vcombine.high %v3618_v55, %v3618_v55 }
  0x9d   :  { %2719 = vmatprep.subr.bf16.mxu1 %v2718_v12  ;;  %v542_v12 = vld [vmem:[#allocation5 + $0xf40] sm:$0xff]  ;;  %v2738_v14 = vpack.c.bf16 %v545_v6, %v537_v5  ;;  %v609_v62 = vld [vmem:[#allocation5 + $0x1158] sm:$0xff]  ;;  %v600_v5 = vld [vmem:[#allocation5 + $0x1110] sm:$0xff] }
  0x9e   :  { %v721_v31 = vld [vmem:[#allocation5 + $0x14d8] sm:$0xff] }
  0x9f   :  { %2465 = vmatpush1.bf16.msra.mxu0 %v2464_v18  ;;  %v553_v18 = vld [vmem:[#allocation5 + $0xf98] sm:$0xff] }
  0xa0   :  { %2721 = vmatpush1.bf16.msra.mxu1 %v2720_v19  ;;  %2467 = vmatprep.subr.bf16.mxu0 %v2466_v20  ;;  %v561_v19 = vld [vmem:[#allocation5 + $0xfd8] sm:$0xff]  ;;  %v2484_v20 = vpack.c.bf16 %v542_v12, %v534_v10 }
  0xa1   :  { %2723 = vmatprep.subr.bf16.mxu1 %v2722_v22  ;;  %v558_v22 = vld [vmem:[#allocation5 + $0xfc0] sm:$0xff]  ;;  %v2742_v28 = vpack.c.bf16 %v561_v19, %v553_v18  ;;  %v617_v10 = vld [vmem:[#allocation5 + $0x1198] sm:$0xff]  ;;  %v616_v18 = vld [vmem:[#allocation5 + $0x1190] sm:$0xff] }
  0xa2   :  { %v625_v12 = vld [vmem:[#allocation5 + $0x11d8] sm:$0xff] }
  0xa3   :  { %2469 = vmatpush1.bf16.msra.mxu0 %v2468_v33  ;;  %v569_v33 = vld [vmem:[#allocation5 + $0x1018] sm:$0xff]  ;;  %v2758_v19 = vpack.c.bf16 %v625_v12, %v617_v10  ;;  %v680_v10 = vld [vmem:[#allocation5 + $0x1390] sm:$0xff]  ;;  %v2774_v12 = vpack.c.bf16 %v689_v4, %v681_v3 }
  0xa4   :  { %2725 = vmatpush1.bf16.msra.mxu1 %v2724_v34  ;;  %2471 = vmatprep.subr.bf16.mxu0 %v2470_v35  ;;  %v577_v34 = vld [vmem:[#allocation5 + $0x1058] sm:$0xff]  ;;  %v2488_v35 = vpack.c.bf16 %v558_v22, %v550_v24  ;;  %v744_v3 = vld [vmem:[#allocation5 + $0x1590] sm:$0xff] }
  0xa5   :  { %2727 = vmatprep.subr.bf16.mxu1 %v2726_v40  ;;  %v574_v40 = vld [vmem:[#allocation5 + $0x1040] sm:$0xff]  ;;  %v2746_v42 = vpack.c.bf16 %v577_v34, %v569_v33  ;;  %v633_v24 = vld [vmem:[#allocation5 + $0x1218] sm:$0xff]  ;;  %v632_v33 = vld [vmem:[#allocation5 + $0x1210] sm:$0xff] }
  0xa6   :  { %v641_v22 = vld [vmem:[#allocation5 + $0x1258] sm:$0xff] }
  0xa7   :  { %2473 = vmatpush1.bf16.msra.mxu0 %v2472_v46  ;;  %v585_v46 = vld [vmem:[#allocation5 + $0x1098] sm:$0xff]  ;;  %v2762_v34 = vpack.c.bf16 %v641_v22, %v633_v24  ;;  %v696_v24 = vld [vmem:[#allocation5 + $0x1410] sm:$0xff]  ;;  %v2778_v22 = vpack.c.bf16 %v705_v17, %v697_v16 }
  0xa8   :  { %2729 = vmatpush1.bf16.msra.mxu1 %v2728_v47  ;;  %2475 = vmatprep.subr.bf16.mxu0 %v2474_v48  ;;  %v593_v47 = vld [vmem:[#allocation5 + $0x10d8] sm:$0xff]  ;;  %v2492_v48 = vpack.c.bf16 %v574_v40, %v566_v38  ;;  %v760_v16 = vld [vmem:[#allocation5 + $0x1610] sm:$0xff] }
  0xa9   :  { %2731 = vmatprep.subr.bf16.mxu1 %v2730_v52  ;;  %v582_v52 = vld [vmem:[#allocation5 + $0x1080] sm:$0xff]  ;;  %v2750_v56 = vpack.c.bf16 %v593_v47, %v585_v46  ;;  %v649_v38 = vld [vmem:[#allocation5 + $0x1298] sm:$0xff]  ;;  %v648_v46 = vld [vmem:[#allocation5 + $0x1290] sm:$0xff] }
  0xaa   :  { %v2496_v0 = vpack.c.bf16 %v590_v53, %v582_v52  ;;  %v657_v40 = vld [vmem:[#allocation5 + $0x12d8] sm:$0xff] }
  0xab   :  { %2477 = vmatpush1.bf16.msra.mxu0 %v2476_v58  ;;  %v599_v58 = vld [vmem:[#allocation5 + $0x1108] sm:$0xff]  ;;  %v2766_v47 = vpack.c.bf16 %v657_v40, %v649_v38  ;;  %v665_v52 = vld [vmem:[#allocation5 + $0x1318] sm:$0xff]  ;;  %v712_v38 = vld [vmem:[#allocation5 + $0x1490] sm:$0xff]  ;;  %v2782_v40 = vpack.c.bf16 %v721_v31, %v713_v30 }
  0xac   :  { %2733 = vmatpush1.bf16.msra.mxu1 %v2732_v59  ;;  %2479 = vmatprep.subr.bf16.mxu0 %v2478_v60  ;;  %v607_v59 = vld [vmem:[#allocation5 + $0x1148] sm:$0xff]  ;;  %v601_v60 = vld [vmem:[#allocation5 + $0x1118] sm:$0xff]  ;;  %v776_v30 = vld [vmem:[#allocation5 + $0x1690] sm:$0xff] }
  0xad   :  { %2735 = vmatprep.subr.bf16.mxu1 %v2734_v1  ;;  %v2752_v1 = vpack.c.bf16 %v592_v57, %v584_v54  ;;  %v2498_v2 = vpack.c.bf16 %v607_v59, %v599_v58  ;;  %v2754_v6 = vpack.c.bf16 %v609_v62, %v601_v60  ;;  %v673_v53 = vld [vmem:[#allocation5 + $0x1358] sm:$0xff]  ;;  %v2512_v54 = vpack.c.bf16 %v654_v45, %v646_v44  ;;  %v662_v58 = vld [vmem:[#allocation5 + $0x1300] sm:$0xff]  ;;  %v664_v60 = vld [vmem:[#allocation5 + $0x1310] sm:$0xff] }
  0xae   :  { %v670_v59 = vld [vmem:[#allocation5 + $0x1340] sm:$0xff]  ;;  %v2770_v62 = vpack.c.bf16 %v673_v53, %v665_v52  ;;  %v729_v44 = vld [vmem:[#allocation5 + $0x1518] sm:$0xff]  ;;  %v728_v52 = vld [vmem:[#allocation5 + $0x1510] sm:$0xff] }
  0xaf   :  { %2481 = vmatpush1.bf16.msra.mxu0 %v2480_v7  ;;  %v608_v7 = vld [vmem:[#allocation5 + $0x1150] sm:$0xff]  ;;  %v737_v45 = vld [vmem:[#allocation5 + $0x1558] sm:$0xff] }
  0xb0   :  { %2737 = vmatpush1.bf16.msra.mxu1 %v2736_v8  ;;  %2483 = vmatprep.subr.bf16.mxu0 %v2482_v9  ;;  %v615_v8 = vld [vmem:[#allocation5 + $0x1188] sm:$0xff]  ;;  %v2786_v53 = vpack.c.bf16 %v737_v45, %v729_v44  ;;  %v792_v44 = vld [vmem:[#allocation5 + $0x1710] sm:$0xff] }
  0xb1   :  { %2739 = vmatprep.subr.bf16.mxu1 %v2738_v14  ;;  %v623_v9 = vld [vmem:[#allocation5 + $0x11c8] sm:$0xff]  ;;  %v2756_v14 = vpack.c.bf16 %v608_v7, %v600_v5  ;;  %v2516_v5 = vpack.c.bf16 %v670_v59, %v662_v58  ;;  %v745_v58 = vld [vmem:[#allocation5 + $0x1598] sm:$0xff] }
  0xb2   :  { %v2502_v15 = vpack.c.bf16 %v623_v9, %v615_v8  ;;  %v678_v8 = vld [vmem:[#allocation5 + $0x1380] sm:$0xff]  ;;  %v753_v59 = vld [vmem:[#allocation5 + $0x15d8] sm:$0xff] }
  0xb3   :  { %2485 = vmatpush1.bf16.msra.mxu0 %v2484_v20  ;;  %v624_v20 = vld [vmem:[#allocation5 + $0x11d0] sm:$0xff]  ;;  %v686_v9 = vld [vmem:[#allocation5 + $0x13c0] sm:$0xff]  ;;  %v2790_v4 = vpack.c.bf16 %v753_v59, %v745_v58 }
  0xb4   :  { %2741 = vmatpush1.bf16.msra.mxu1 %v2740_v21  ;;  %2487 = vmatprep.subr.bf16.mxu0 %v2486_v23  ;;  %v631_v21 = vld [vmem:[#allocation5 + $0x1208] sm:$0xff]  ;;  %v808_v58 = vld [vmem:[#allocation5 + $0x1790] sm:$0xff] }
  0xb5   :  { %2743 = vmatprep.subr.bf16.mxu1 %v2742_v28  ;;  %v639_v23 = vld [vmem:[#allocation5 + $0x1248] sm:$0xff]  ;;  %v2760_v28 = vpack.c.bf16 %v624_v20, %v616_v18  ;;  %v2520_v18 = vpack.c.bf16 %v686_v9, %v678_v8  ;;  %v761_v8 = vld [vmem:[#allocation5 + $0x1618] sm:$0xff] }
  0xb6   :  { %v2506_v29 = vpack.c.bf16 %v639_v23, %v631_v21  ;;  %v694_v21 = vld [vmem:[#allocation5 + $0x1400] sm:$0xff]  ;;  %v769_v9 = vld [vmem:[#allocation5 + $0x1658] sm:$0xff] }
  0xb7   :  { %2489 = vmatpush1.bf16.msra.mxu0 %v2488_v35  ;;  %v640_v35 = vld [vmem:[#allocation5 + $0x1250] sm:$0xff]  ;;  %v702_v23 = vld [vmem:[#allocation5 + $0x1440] sm:$0xff]  ;;  %v2794_v17 = vpack.c.bf16 %v769_v9, %v761_v8 }
  0xb8   :  { %2745 = vmatpush1.bf16.msra.mxu1 %v2744_v36  ;;  %2491 = vmatprep.subr.bf16.mxu0 %v2490_v37  ;;  %v647_v36 = vld [vmem:[#allocation5 + $0x1288] sm:$0xff]  ;;  %v830_v8 = vld [vmem:[#allocation5 + $0x1840] sm:$0xff]  ;;  %v824_v9 = vld [vmem:[#allocation5 + $0x1810] sm:$0xff] }
  0xb9   :  { %2747 = vmatprep.subr.bf16.mxu1 %v2746_v42  ;;  %v655_v37 = vld [vmem:[#allocation5 + $0x12c8] sm:$0xff]  ;;  %v2764_v42 = vpack.c.bf16 %v640_v35, %v632_v33  ;;  %v2524_v33 = vpack.c.bf16 %v702_v23, %v694_v21  ;;  %v777_v21 = vld [vmem:[#allocation5 + $0x1698] sm:$0xff] }
  0xba   :  { %1300 = vmatmul.mubr.f32.vlgmr.msra.gmra.mrb[0].mxu0 %v3604_v26  ;;  %v2510_v43 = vpack.c.bf16 %v655_v37, %v647_v36  ;;  %v710_v36 = vld [vmem:[#allocation5 + $0x1480] sm:$0xff]  ;;  %v785_v23 = vld [vmem:[#allocation5 + $0x16d8] sm:$0xff] }
  0xbb   :  { %2493 = vmatpush1.bf16.msra.mxu0 %v2492_v48  ;;  %1584 = vmatmul.mubr.f32.vlgmr.msra.gmra.mrb[0].mxu1 %v3604_v26  ;;  %v656_v48 = vld [vmem:[#allocation5 + $0x12d0] sm:$0xff]  ;;  %v718_v37 = vld [vmem:[#allocation5 + $0x14c0] sm:$0xff]  ;;  %v2798_v31 = vpack.c.bf16 %v785_v23, %v777_v21 }
  0xbc   :  { %2749 = vmatpush1.bf16.msra.mxu1 %v2748_v50  ;;  %2495 = vmatprep.subr.bf16.mxu0 %v2494_v51  ;;  %v663_v50 = vld [vmem:[#allocation5 + $0x1308] sm:$0xff]  ;;  %v846_v21 = vld [vmem:[#allocation5 + $0x18c0] sm:$0xff]  ;;  %v840_v23 = vld [vmem:[#allocation5 + $0x1890] sm:$0xff] }
  0xbd   :  { %2751 = vmatprep.subr.bf16.mxu1 %v2750_v56  ;;  %1370 = vmatprep.mubr.f32.mxu0 %v3623_v63  ;;  %v671_v51 = vld [vmem:[#allocation5 + $0x1348] sm:$0xff]  ;;  %v2768_v56 = vpack.c.bf16 %v656_v48, %v648_v46  ;;  %v2528_v46 = vpack.c.bf16 %v718_v37, %v710_v36  ;;  %v793_v36 = vld [vmem:[#allocation5 + $0x1718] sm:$0xff] }
  0xbe   :  { %1654 = vmatprep.mubr.f32.mxu1 %v3623_v63  ;;  %v2514_v57 = vpack.c.bf16 %v671_v51, %v663_v50  ;;  %v726_v50 = vld [vmem:[#allocation5 + $0x1500] sm:$0xff]  ;;  %v801_v37 = vld [vmem:[#allocation5 + $0x1758] sm:$0xff] }
  0xbf   :  { %2497 = vmatpush1.bf16.msra.mxu0 %v2496_v0  ;;  %v672_v0 = vld [vmem:[#allocation5 + $0x1350] sm:$0xff]  ;;  %v734_v51 = vld [vmem:[#allocation5 + $0x1540] sm:$0xff]  ;;  %v2802_v45 = vpack.c.bf16 %v801_v37, %v793_v36 }
  0xc0   :  { %2753 = vmatpush1.bf16.msra.mxu1 %v2752_v1  ;;  %2499 = vmatprep.subr.bf16.mxu0 %v2498_v2  ;;  %v679_v1 = vld [vmem:[#allocation5 + $0x1388] sm:$0xff]  ;;  %v854_v36 = vld [vmem:[#allocation5 + $0x1900] sm:$0xff] }
  0xc1   :  { %2755 = vmatprep.subr.bf16.mxu1 %v2754_v6  ;;  %v687_v2 = vld [vmem:[#allocation5 + $0x13c8] sm:$0xff]  ;;  %v2772_v6 = vpack.c.bf16 %v672_v0, %v664_v60  ;;  %v2532_v60 = vpack.c.bf16 %v734_v51, %v726_v50  ;;  %v809_v50 = vld [vmem:[#allocation5 + $0x1798] sm:$0xff]  ;;  %v862_v37 = vld [vmem:[#allocation5 + $0x1940] sm:$0xff] }
  0xc2   :  { %v2518_v7 = vpack.c.bf16 %v687_v2, %v679_v1  ;;  %v742_v1 = vld [vmem:[#allocation5 + $0x1580] sm:$0xff]  ;;  %v817_v51 = vld [vmem:[#allocation5 + $0x17d8] sm:$0xff] }
  0xc3   :  { %2501 = vmatpush1.bf16.msra.mxu0 %v2500_v13  ;;  %v688_v13 = vld [vmem:[#allocation5 + $0x13d0] sm:$0xff]  ;;  %v750_v2 = vld [vmem:[#allocation5 + $0x15c0] sm:$0xff]  ;;  %v2806_v59 = vpack.c.bf16 %v817_v51, %v809_v50 }
  0xc4   :  { %2757 = vmatpush1.bf16.msra.mxu1 %v2756_v14  ;;  %2503 = vmatprep.subr.bf16.mxu0 %v2502_v15  ;;  %v695_v14 = vld [vmem:[#allocation5 + $0x1408] sm:$0xff]  ;;  %v870_v50 = vld [vmem:[#allocation5 + $0x1980] sm:$0xff] }
  0xc5   :  { %2759 = vmatprep.subr.bf16.mxu1 %v2758_v19  ;;  %v703_v15 = vld [vmem:[#allocation5 + $0x1448] sm:$0xff]  ;;  %v2776_v19 = vpack.c.bf16 %v688_v13, %v680_v10  ;;  %v2536_v10 = vpack.c.bf16 %v750_v2, %v742_v1  ;;  %v1139_v1 = vcombine.high %v3614_v49, %v3614_v49  ;;  %v825_v2 = vld [vmem:[#allocation5 + $0x1818] sm:$0xff]  ;;  %v878_v51 = vld [vmem:[#allocation5 + $0x19c0] sm:$0xff] }
  0xc6   :  { %v2522_v20 = vpack.c.bf16 %v703_v15, %v695_v14  ;;  %v758_v14 = vld [vmem:[#allocation5 + $0x1600] sm:$0xff]  ;;  %v841_v49 = vld [vmem:[#allocation5 + $0x1898] sm:$0xff] }
  0xc7   :  { %2505 = vmatpush1.bf16.msra.mxu0 %v2504_v27  ;;  %v704_v27 = vld [vmem:[#allocation5 + $0x1450] sm:$0xff]  ;;  %v766_v15 = vld [vmem:[#allocation5 + $0x1640] sm:$0xff] }
  0xc8   :  { %2761 = vmatpush1.bf16.msra.mxu1 %v2760_v28  ;;  %2507 = vmatprep.subr.bf16.mxu0 %v2506_v29  ;;  %v711_v28 = vld [vmem:[#allocation5 + $0x1488] sm:$0xff] }
  0xc9   :  { %2763 = vmatprep.subr.bf16.mxu1 %v2762_v34  ;;  %v719_v29 = vld [vmem:[#allocation5 + $0x14c8] sm:$0xff]  ;;  %v2780_v34 = vpack.c.bf16 %v704_v27, %v696_v24  ;;  %v2540_v24 = vpack.c.bf16 %v766_v15, %v758_v14  ;;  %v3631_v15 = vrot.slane %v1139_v1, %v3587_v11  ;;  %v886_v1 = vld [vmem:[#allocation5 + $0x1a00] sm:$0xff] }
  0xca   :  { %v2526_v35 = vpack.c.bf16 %v719_v29, %v711_v28  ;;  %v774_v28 = vld [vmem:[#allocation5 + $0x1680] sm:$0xff]  ;;  %v847_v14 = vld [vmem:[#allocation5 + $0x18c8] sm:$0xff] }
  0xcb   :  { %2509 = vmatpush1.bf16.msra.mxu0 %v2508_v41  ;;  %v720_v41 = vld [vmem:[#allocation5 + $0x14d0] sm:$0xff]  ;;  %v782_v29 = vld [vmem:[#allocation5 + $0x16c0] sm:$0xff] }
  0xcc   :  { %2765 = vmatpush1.bf16.msra.mxu1 %v2764_v42  ;;  %2511 = vmatprep.subr.bf16.mxu0 %v2510_v43  ;;  %v727_v42 = vld [vmem:[#allocation5 + $0x1508] sm:$0xff] }
  0xcd   :  { %2767 = vmatprep.subr.bf16.mxu1 %v2766_v47  ;;  %v735_v43 = vld [vmem:[#allocation5 + $0x1548] sm:$0xff]  ;;  %v2784_v47 = vpack.c.bf16 %v720_v41, %v712_v38  ;;  %v2544_v38 = vpack.c.bf16 %v782_v29, %v774_v28  ;;  %v3635_v29 = vcombine.high %v3631_v15, %v3631_v15 }
  0xce   :  { %v2530_v48 = vpack.c.bf16 %v735_v43, %v727_v42  ;;  %v790_v42 = vld [vmem:[#allocation5 + $0x1700] sm:$0xff]  ;;  %v863_v28 = vld [vmem:[#allocation5 + $0x1948] sm:$0xff] }
  0xcf   :  { %2513 = vmatpush1.bf16.msra.mxu0 %v2512_v54  ;;  %v736_v54 = vld [vmem:[#allocation5 + $0x1550] sm:$0xff]  ;;  %v798_v43 = vld [vmem:[#allocation5 + $0x1740] sm:$0xff] }
  0xd0   :  { %2769 = vmatpush1.bf16.msra.mxu1 %v2768_v56  ;;  %2515 = vmatprep.subr.bf16.mxu0 %v2514_v57  ;;  %v743_v56 = vld [vmem:[#allocation5 + $0x1588] sm:$0xff] }
  0xd1   :  { %2771 = vmatprep.subr.bf16.mxu1 %v2770_v62  ;;  %v751_v57 = vld [vmem:[#allocation5 + $0x15c8] sm:$0xff]  ;;  %v2788_v62 = vpack.c.bf16 %v736_v54, %v728_v52  ;;  %v2548_v52 = vpack.c.bf16 %v798_v43, %v790_v42 }
  0xd2   :  { %v2534_v0 = vpack.c.bf16 %v751_v57, %v743_v56  ;;  %v806_v56 = vld [vmem:[#allocation5 + $0x1780] sm:$0xff]  ;;  %v871_v42 = vld [vmem:[#allocation5 + $0x1988] sm:$0xff] }
  0xd3   :  { %2517 = vmatpush1.bf16.msra.mxu0 %v2516_v5  ;;  %v752_v5 = vld [vmem:[#allocation5 + $0x15d0] sm:$0xff]  ;;  %v814_v57 = vld [vmem:[#allocation5 + $0x17c0] sm:$0xff]  ;;  %v879_v43 = vld [vmem:[#allocation5 + $0x19c8] sm:$0xff] }
  0xd4   :  { %2773 = vmatpush1.bf16.msra.mxu1 %v2772_v6  ;;  %2519 = vmatprep.subr.bf16.mxu0 %v2518_v7  ;;  %v759_v6 = vld [vmem:[#allocation5 + $0x1608] sm:$0xff] }
  0xd5   :  { %2775 = vmatprep.subr.bf16.mxu1 %v2774_v12  ;;  %v767_v7 = vld [vmem:[#allocation5 + $0x1648] sm:$0xff]  ;;  %v2792_v12 = vpack.c.bf16 %v752_v5, %v744_v3  ;;  %v833_v3 = vld [vmem:[#allocation5 + $0x1858] sm:$0xff] }
  0xd6   :  { %v2538_v13 = vpack.c.bf16 %v767_v7, %v759_v6  ;;  %v822_v7 = vld [vmem:[#allocation5 + $0x1800] sm:$0xff] }
  0xd7   :  { %2521 = vmatpush1.bf16.msra.mxu0 %v2520_v18  ;;  %v768_v18 = vld [vmem:[#allocation5 + $0x1650] sm:$0xff] }
  0xd8   :  { %2777 = vmatpush1.bf16.msra.mxu1 %v2776_v19  ;;  %2523 = vmatprep.subr.bf16.mxu0 %v2522_v20  ;;  %v775_v19 = vld [vmem:[#allocation5 + $0x1688] sm:$0xff] }
  0xd9   :  { %2779 = vmatprep.subr.bf16.mxu1 %v2778_v22  ;;  %v783_v20 = vld [vmem:[#allocation5 + $0x16c8] sm:$0xff]  ;;  %v2796_v22 = vpack.c.bf16 %v768_v18, %v760_v16  ;;  %v849_v16 = vld [vmem:[#allocation5 + $0x18d8] sm:$0xff] }
  0xda   :  { %v2542_v27 = vpack.c.bf16 %v783_v20, %v775_v19  ;;  %v838_v20 = vld [vmem:[#allocation5 + $0x1880] sm:$0xff] }
  0xdb   :  { %2525 = vmatpush1.bf16.msra.mxu0 %v2524_v33  ;;  %v784_v33 = vld [vmem:[#allocation5 + $0x16d0] sm:$0xff] }
  0xdc   :  { %2781 = vmatpush1.bf16.msra.mxu1 %v2780_v34  ;;  %2527 = vmatprep.subr.bf16.mxu0 %v2526_v35  ;;  %v791_v34 = vld [vmem:[#allocation5 + $0x1708] sm:$0xff] }
  0xdd   :  { %2783 = vmatprep.subr.bf16.mxu1 %v2782_v40  ;;  %v799_v35 = vld [vmem:[#allocation5 + $0x1748] sm:$0xff]  ;;  %v2800_v40 = vpack.c.bf16 %v784_v33, %v776_v30  ;;  %v857_v30 = vld [vmem:[#allocation5 + $0x1918] sm:$0xff]  ;;  %v2560_v33 = vpack.c.bf16 %v846_v21, %v838_v20 }
  0xde   :  { %v2546_v41 = vpack.c.bf16 %v799_v35, %v791_v34  ;;  %v927_v20 = vld [vmem:[#allocation5 + $0x1b48] sm:$0xff]  ;;  %v921_v21 = vld [vmem:[#allocation5 + $0x1b18] sm:$0xff] }
  0xdf   :  { %2529 = vmatpush1.bf16.msra.mxu0 %v2528_v46  ;;  %v800_v46 = vld [vmem:[#allocation5 + $0x1750] sm:$0xff] }
  0xe0   :  { %2785 = vmatpush1.bf16.msra.mxu1 %v2784_v47  ;;  %2531 = vmatprep.subr.bf16.mxu0 %v2530_v48  ;;  %v807_v47 = vld [vmem:[#allocation5 + $0x1788] sm:$0xff] }
  0xe1   :  { %2787 = vmatprep.subr.bf16.mxu1 %v2786_v53  ;;  %v815_v48 = vld [vmem:[#allocation5 + $0x17c8] sm:$0xff]  ;;  %v2804_v53 = vpack.c.bf16 %v800_v46, %v792_v44  ;;  %v873_v44 = vld [vmem:[#allocation5 + $0x1998] sm:$0xff]  ;;  %v2564_v46 = vpack.c.bf16 %v862_v37, %v854_v36 }
  0xe2   :  { %v2550_v54 = vpack.c.bf16 %v815_v48, %v807_v47  ;;  %v2566_v48 = vpack.c.bf16 %v879_v43, %v871_v42  ;;  %v943_v36 = vld [vmem:[#allocation5 + $0x1bc8] sm:$0xff]  ;;  %v937_v37 = vld [vmem:[#allocation5 + $0x1b98] sm:$0xff]  ;;  %v934_v43 = vld [vmem:[#allocation5 + $0x1b80] sm:$0xff] }
  0xe3   :  { %2533 = vmatpush1.bf16.msra.mxu0 %v2532_v60  ;;  %v816_v60 = vld [vmem:[#allocation5 + $0x17d0] sm:$0xff] }
  0xe4   :  { %2789 = vmatpush1.bf16.msra.mxu1 %v2788_v62  ;;  %2535 = vmatprep.subr.bf16.mxu0 %v2534_v0  ;;  %v823_v62 = vld [vmem:[#allocation5 + $0x1808] sm:$0xff]  ;;  %v2808_v5 = vpack.c.bf16 %v816_v60, %v808_v58  ;;  %v889_v58 = vld [vmem:[#allocation5 + $0x1a18] sm:$0xff]  ;;  %v2568_v60 = vpack.c.bf16 %v878_v51, %v870_v50 }
  0xe5   :  { %2791 = vmatprep.subr.bf16.mxu1 %v2790_v4  ;;  %v831_v0 = vld [vmem:[#allocation5 + $0x1848] sm:$0xff]  ;;  %v2552_v4 = vpack.c.bf16 %v814_v57, %v806_v56  ;;  %v953_v51 = vld [vmem:[#allocation5 + $0x1c18] sm:$0xff] }
  0xe6   :  { %v2554_v6 = vpack.c.bf16 %v831_v0, %v823_v62  ;;  %v887_v56 = vld [vmem:[#allocation5 + $0x1a08] sm:$0xff] }
  0xe7   :  { %2537 = vmatpush1.bf16.msra.mxu0 %v2536_v10  ;;  %v2810_v10 = vpack.c.bf16 %v833_v3, %v825_v2  ;;  %v895_v57 = vld [vmem:[#allocation5 + $0x1a48] sm:$0xff]  ;;  %v894_v2 = vld [vmem:[#allocation5 + $0x1a40] sm:$0xff]  ;;  %v888_v3 = vld [vmem:[#allocation5 + $0x1a10] sm:$0xff] }
  0xe8   :  { %2793 = vmatpush1.bf16.msra.mxu1 %v2792_v12  ;;  %2539 = vmatprep.subr.bf16.mxu0 %v2538_v13  ;;  %v832_v12 = vld [vmem:[#allocation5 + $0x1850] sm:$0xff]  ;;  %v839_v13 = vld [vmem:[#allocation5 + $0x1888] sm:$0xff]  ;;  %v2570_v0 = vpack.c.bf16 %v895_v57, %v887_v56  ;;  %v950_v57 = vld [vmem:[#allocation5 + $0x1c00] sm:$0xff] }
  0xe9   :  { %2795 = vmatprep.subr.bf16.mxu1 %v2794_v17  ;;  %v2556_v17 = vpack.c.bf16 %v830_v8, %v822_v7  ;;  %v2812_v18 = vpack.c.bf16 %v832_v12, %v824_v9  ;;  %v2558_v19 = vpack.c.bf16 %v847_v14, %v839_v13  ;;  %v911_v7 = vld [vmem:[#allocation5 + $0x1ac8] sm:$0xff]  ;;  %v905_v8 = vld [vmem:[#allocation5 + $0x1a98] sm:$0xff]  ;;  %v902_v14 = vld [vmem:[#allocation5 + $0x1a80] sm:$0xff] }
  0xea   :  { %v913_v9 = vld [vmem:[#allocation5 + $0x1ad8] sm:$0xff]  ;;  %v959_v50 = vld [vmem:[#allocation5 + $0x1c48] sm:$0xff] }
  0xeb   :  { %2541 = vmatpush1.bf16.msra.mxu0 %v2540_v24  ;;  %v2814_v24 = vpack.c.bf16 %v849_v16, %v841_v49  ;;  %v910_v49 = vld [vmem:[#allocation5 + $0x1ac0] sm:$0xff]  ;;  %v904_v16 = vld [vmem:[#allocation5 + $0x1a90] sm:$0xff] }
  0xec   :  { %2797 = vmatpush1.bf16.msra.mxu1 %v2796_v22  ;;  %2543 = vmatprep.subr.bf16.mxu0 %v2542_v27  ;;  %v848_v22 = vld [vmem:[#allocation5 + $0x18d0] sm:$0xff]  ;;  %v855_v27 = vld [vmem:[#allocation5 + $0x1908] sm:$0xff] }
  0xed   :  { %2799 = vmatprep.subr.bf16.mxu1 %v2798_v31  ;;  %v865_v31 = vld [vmem:[#allocation5 + $0x1958] sm:$0xff]  ;;  %v2816_v34 = vpack.c.bf16 %v848_v22, %v840_v23  ;;  %v2562_v35 = vpack.c.bf16 %v863_v28, %v855_v27  ;;  %v918_v28 = vld [vmem:[#allocation5 + $0x1b00] sm:$0xff] }
  0xee   :  { %v929_v23 = vld [vmem:[#allocation5 + $0x1b58] sm:$0xff] }
  0xef   :  { %2545 = vmatpush1.bf16.msra.mxu0 %v2544_v38  ;;  %v856_v38 = vld [vmem:[#allocation5 + $0x1910] sm:$0xff] }
  0xf0   :  { %2801 = vmatpush1.bf16.msra.mxu1 %v2800_v40  ;;  %2547 = vmatprep.subr.bf16.mxu0 %v2546_v41  ;;  %v2818_v40 = vpack.c.bf16 %v865_v31, %v857_v30  ;;  %v864_v41 = vld [vmem:[#allocation5 + $0x1950] sm:$0xff]  ;;  %v926_v30 = vld [vmem:[#allocation5 + $0x1b40] sm:$0xff] }
  0xf1   :  { %2803 = vmatprep.subr.bf16.mxu1 %v2802_v45  ;;  %v881_v45 = vld [vmem:[#allocation5 + $0x19d8] sm:$0xff]  ;;  %v2820_v47 = vpack.c.bf16 %v864_v41, %v856_v38  ;;  %v920_v31 = vld [vmem:[#allocation5 + $0x1b10] sm:$0xff] }
  0xf2   :  { %v945_v38 = vld [vmem:[#allocation5 + $0x1bd8] sm:$0xff] }
  0xf3   :  { %2549 = vmatpush1.bf16.msra.mxu0 %v2548_v52  ;;  %v872_v52 = vld [vmem:[#allocation5 + $0x1990] sm:$0xff] }
  0xf4   :  { %2805 = vmatpush1.bf16.msra.mxu1 %v2804_v53  ;;  %2551 = vmatprep.subr.bf16.mxu0 %v2550_v54  ;;  %v2822_v53 = vpack.c.bf16 %v881_v45, %v873_v44  ;;  %v880_v54 = vld [vmem:[#allocation5 + $0x19d0] sm:$0xff]  ;;  %v942_v44 = vld [vmem:[#allocation5 + $0x1bc0] sm:$0xff] }
  0xf5   :  { %2807 = vmatprep.subr.bf16.mxu1 %v2806_v59  ;;  %v897_v59 = vld [vmem:[#allocation5 + $0x1a58] sm:$0xff]  ;;  %v2824_v62 = vpack.c.bf16 %v880_v54, %v872_v52  ;;  %v936_v45 = vld [vmem:[#allocation5 + $0x1b90] sm:$0xff] }
  0xf6   :  { %v961_v52 = vld [vmem:[#allocation5 + $0x1c58] sm:$0xff] }
  0xf7   :  { %2553 = vmatpush1.bf16.msra.mxu0 %v2552_v4  ;;  %v2826_v4 = vpack.c.bf16 %v897_v59, %v889_v58  ;;  %v958_v58 = vld [vmem:[#allocation5 + $0x1c40] sm:$0xff]  ;;  %v952_v59 = vld [vmem:[#allocation5 + $0x1c10] sm:$0xff] }
  0xf8   :  { %2809 = vmatpush1.bf16.msra.mxu1 %v2808_v5  ;;  %2555 = vmatprep.subr.bf16.mxu0 %v2554_v6  ;;  %v896_v5 = vld [vmem:[#allocation5 + $0x1a50] sm:$0xff]  ;;  %v903_v6 = vld [vmem:[#allocation5 + $0x1a88] sm:$0xff] }
  0xf9   :  { %2811 = vmatprep.subr.bf16.mxu1 %v2810_v10  ;;  %v2572_v10 = vpack.c.bf16 %v894_v2, %v886_v1  ;;  %v2828_v12 = vpack.c.bf16 %v896_v5, %v888_v3  ;;  %v2574_v13 = vpack.c.bf16 %v911_v7, %v903_v6  ;;  %v975_v1 = vld [vmem:[#allocation5 + $0x1cc8] sm:$0xff]  ;;  %v969_v2 = vld [vmem:[#allocation5 + $0x1c98] sm:$0xff]  ;;  %v966_v7 = vld [vmem:[#allocation5 + $0x1c80] sm:$0xff] }
  0xfa   :  { %1371 = vmatmul.mubr.f32.vlgmr.msra.gmra.mrb[0].mxu0 %v3618_v55  ;;  %v977_v3 = vld [vmem:[#allocation5 + $0x1cd8] sm:$0xff] }
  0xfb   :  { %2557 = vmatpush1.bf16.msra.mxu0 %v2556_v17  ;;  %1655 = vmatmul.mubr.f32.vlgmr.msra.gmra.mrb[0].mxu1 %v3618_v55  ;;  %v2830_v17 = vpack.c.bf16 %v913_v9, %v905_v8  ;;  %v974_v8 = vld [vmem:[#allocation5 + $0x1cc0] sm:$0xff]  ;;  %v968_v9 = vld [vmem:[#allocation5 + $0x1c90] sm:$0xff] }
  0xfc   :  { %2813 = vmatpush1.bf16.msra.mxu1 %v2812_v18  ;;  %2559 = vmatprep.subr.bf16.mxu0 %v2558_v19  ;;  %v912_v18 = vld [vmem:[#allocation5 + $0x1ad0] sm:$0xff]  ;;  %v919_v19 = vld [vmem:[#allocation5 + $0x1b08] sm:$0xff] }
  0xfd   :  { %2815 = vmatprep.subr.bf16.mxu1 %v2814_v24  ;;  %1441 = vmatprep.mubr.f32.mxu0 %v3635_v29  ;;  %v2576_v24 = vpack.c.bf16 %v910_v49, %v902_v14  ;;  %v2832_v22 = vpack.c.bf16 %v912_v18, %v904_v16  ;;  %v2578_v27 = vpack.c.bf16 %v927_v20, %v919_v19  ;;  %v991_v14 = vld [vmem:[#allocation5 + $0x1d48] sm:$0xff]  ;;  %v985_v49 = vld [vmem:[#allocation5 + $0x1d18] sm:$0xff]  ;;  %v982_v20 = vld [vmem:[#allocation5 + $0x1d00] sm:$0xff] }
  0xfe   :  { %1725 = vmatprep.mubr.f32.mxu1 %v3635_v29  ;;  %v993_v16 = vld [vmem:[#allocation5 + $0x1d58] sm:$0xff] }
  0xff   :  { %2561 = vmatpush1.bf16.msra.mxu0 %v2560_v33  ;;  %v2834_v33 = vpack.c.bf16 %v929_v23, %v921_v21  ;;  %v990_v21 = vld [vmem:[#allocation5 + $0x1d40] sm:$0xff]  ;;  %v984_v23 = vld [vmem:[#allocation5 + $0x1d10] sm:$0xff] }
 0x100   :  { %2817 = vmatpush1.bf16.msra.mxu1 %v2816_v34  ;;  %2563 = vmatprep.subr.bf16.mxu0 %v2562_v35  ;;  %v928_v34 = vld [vmem:[#allocation5 + $0x1b50] sm:$0xff]  ;;  %v935_v35 = vld [vmem:[#allocation5 + $0x1b88] sm:$0xff] }
 0x101   :  { %2819 = vmatprep.subr.bf16.mxu1 %v2818_v40  ;;  %v2580_v40 = vpack.c.bf16 %v926_v30, %v918_v28  ;;  %v2836_v41 = vpack.c.bf16 %v928_v34, %v920_v31  ;;  %v2582_v42 = vpack.c.bf16 %v943_v36, %v935_v35  ;;  %v1007_v28 = vld [vmem:[#allocation5 + $0x1dc8] sm:$0xff]  ;;  %v1001_v30 = vld [vmem:[#allocation5 + $0x1d98] sm:$0xff]  ;;  %v998_v36 = vld [vmem:[#allocation5 + $0x1d80] sm:$0xff] }
 0x102   :  { %v1009_v31 = vld [vmem:[#allocation5 + $0x1dd8] sm:$0xff] }
 0x103   :  { %2565 = vmatpush1.bf16.msra.mxu0 %v2564_v46  ;;  %v2838_v46 = vpack.c.bf16 %v945_v38, %v937_v37  ;;  %v1006_v37 = vld [vmem:[#allocation5 + $0x1dc0] sm:$0xff]  ;;  %v1000_v38 = vld [vmem:[#allocation5 + $0x1d90] sm:$0xff] }
 0x104   :  { %2821 = vmatpush1.bf16.msra.mxu1 %v2820_v47  ;;  %2567 = vmatprep.subr.bf16.mxu0 %v2566_v48  ;;  %v944_v47 = vld [vmem:[#allocation5 + $0x1bd0] sm:$0xff]  ;;  %v951_v48 = vld [vmem:[#allocation5 + $0x1c08] sm:$0xff] }
 0x105   :  { %2823 = vmatprep.subr.bf16.mxu1 %v2822_v53  ;;  %v2584_v53 = vpack.c.bf16 %v942_v44, %v934_v43  ;;  %v2840_v54 = vpack.c.bf16 %v944_v47, %v936_v45  ;;  %v2586_v56 = vpack.c.bf16 %v959_v50, %v951_v48  ;;  %v1023_v43 = vld [vmem:[#allocation5 + $0x1e48] sm:$0xff]  ;;  %v1017_v44 = vld [vmem:[#allocation5 + $0x1e18] sm:$0xff]  ;;  %v1014_v50 = vld [vmem:[#allocation5 + $0x1e00] sm:$0xff] }
 0x106   :  { %v1025_v45 = vld [vmem:[#allocation5 + $0x1e58] sm:$0xff] }
 0x107   :  { %2569 = vmatpush1.bf16.msra.mxu0 %v2568_v60  ;;  %v2842_v60 = vpack.c.bf16 %v961_v52, %v953_v51  ;;  %v1022_v51 = vld [vmem:[#allocation5 + $0x1e40] sm:$0xff]  ;;  %v1016_v52 = vld [vmem:[#allocation5 + $0x1e10] sm:$0xff] }
 0x108   :  { %2825 = vmatpush1.bf16.msra.mxu1 %v2824_v62  ;;  %2571 = vmatprep.subr.bf16.mxu0 %v2570_v0  ;;  %v960_v62 = vld [vmem:[#allocation5 + $0x1c50] sm:$0xff]  ;;  %v967_v0 = vld [vmem:[#allocation5 + $0x1c88] sm:$0xff] }
 0x109   :  { %2827 = vmatprep.subr.bf16.mxu1 %v2826_v4  ;;  %v2588_v4 = vpack.c.bf16 %v958_v58, %v950_v57  ;;  %v2844_v5 = vpack.c.bf16 %v960_v62, %v952_v59  ;;  %v2590_v6 = vpack.c.bf16 %v975_v1, %v967_v0  ;;  %v1039_v57 = vld [vmem:[#allocation5 + $0x1ec8] sm:$0xff]  ;;  %v1033_v58 = vld [vmem:[#allocation5 + $0x1e98] sm:$0xff]  ;;  %v1030_v1 = vld [vmem:[#allocation5 + $0x1e80] sm:$0xff] }
 0x10a   :  { %v1041_v59 = vld [vmem:[#allocation5 + $0x1ed8] sm:$0xff] }
 0x10b   :  { %2573 = vmatpush1.bf16.msra.mxu0 %v2572_v10  ;;  %v2846_v10 = vpack.c.bf16 %v977_v3, %v969_v2  ;;  %v1038_v2 = vld [vmem:[#allocation5 + $0x1ec0] sm:$0xff]  ;;  %v1032_v3 = vld [vmem:[#allocation5 + $0x1e90] sm:$0xff] }
 0x10c   :  { %2829 = vmatpush1.bf16.msra.mxu1 %v2828_v12  ;;  %2575 = vmatprep.subr.bf16.mxu0 %v2574_v13  ;;  %v976_v12 = vld [vmem:[#allocation5 + $0x1cd0] sm:$0xff]  ;;  %v983_v13 = vld [vmem:[#allocation5 + $0x1d08] sm:$0xff] }
 0x10d   :  { %2831 = vmatprep.subr.bf16.mxu1 %v2830_v17  ;;  %v2592_v17 = vpack.c.bf16 %v974_v8, %v966_v7  ;;  %v2848_v18 = vpack.c.bf16 %v976_v12, %v968_v9  ;;  %v2594_v19 = vpack.c.bf16 %v991_v14, %v983_v13  ;;  %v1055_v7 = vld [vmem:[#allocation5 + $0x1f48] sm:$0xff]  ;;  %v1049_v8 = vld [vmem:[#allocation5 + $0x1f18] sm:$0xff]  ;;  %v1046_v14 = vld [vmem:[#allocation5 + $0x1f00] sm:$0xff] }
 0x10e   :  { %v1057_v9 = vld [vmem:[#allocation5 + $0x1f58] sm:$0xff] }
 0x10f   :  { %2577 = vmatpush1.bf16.msra.mxu0 %v2576_v24  ;;  %v2850_v24 = vpack.c.bf16 %v993_v16, %v985_v49  ;;  %v1054_v49 = vld [vmem:[#allocation5 + $0x1f40] sm:$0xff]  ;;  %v1048_v16 = vld [vmem:[#allocation5 + $0x1f10] sm:$0xff] }
 0x110   :  { %2833 = vmatpush1.bf16.msra.mxu1 %v2832_v22  ;;  %2579 = vmatprep.subr.bf16.mxu0 %v2578_v27  ;;  %v992_v22 = vld [vmem:[#allocation5 + $0x1d50] sm:$0xff]  ;;  %v999_v27 = vld [vmem:[#allocation5 + $0x1d88] sm:$0xff] }
 0x111   :  { %2835 = vmatprep.subr.bf16.mxu1 %v2834_v33  ;;  %v2596_v33 = vpack.c.bf16 %v990_v21, %v982_v20  ;;  %v2852_v34 = vpack.c.bf16 %v992_v22, %v984_v23  ;;  %v2598_v35 = vpack.c.bf16 %v1007_v28, %v999_v27  ;;  %v1071_v20 = vld [vmem:[#allocation5 + $0x1fc8] sm:$0xff]  ;;  %v1065_v21 = vld [vmem:[#allocation5 + $0x1f98] sm:$0xff]  ;;  %v1062_v28 = vld [vmem:[#allocation5 + $0x1f80] sm:$0xff] }
 0x112   :  { %v1073_v23 = vld [vmem:[#allocation5 + $0x1fd8] sm:$0xff] }
 0x113   :  { %2581 = vmatpush1.bf16.msra.mxu0 %v2580_v40  ;;  %v2854_v40 = vpack.c.bf16 %v1009_v31, %v1001_v30  ;;  %v1070_v30 = vld [vmem:[#allocation5 + $0x1fc0] sm:$0xff]  ;;  %v1064_v31 = vld [vmem:[#allocation5 + $0x1f90] sm:$0xff] }
 0x114   :  { %2837 = vmatpush1.bf16.msra.mxu1 %v2836_v41  ;;  %2583 = vmatprep.subr.bf16.mxu0 %v2582_v42  ;;  %v1008_v41 = vld [vmem:[#allocation5 + $0x1dd0] sm:$0xff]  ;;  %v1015_v42 = vld [vmem:[#allocation5 + $0x1e08] sm:$0xff] }
 0x115   :  { %2839 = vmatprep.subr.bf16.mxu1 %v2838_v46  ;;  %v2600_v46 = vpack.c.bf16 %v1006_v37, %v998_v36  ;;  %v2856_v47 = vpack.c.bf16 %v1008_v41, %v1000_v38  ;;  %v2602_v48 = vpack.c.bf16 %v1023_v43, %v1015_v42  ;;  %v67_v36 = vld [vmem:[#allocation5 + $0x68] sm:$0xff]  ;;  %v61_v37 = vld [vmem:[#allocation5 + $0x38] sm:$0xff]  ;;  %v58_v43 = vld [vmem:[#allocation5 + $0x20] sm:$0xff] }
 0x116   :  { %v69_v38 = vld [vmem:[#allocation5 + $0x78] sm:$0xff] }
 0x117   :  { %2585 = vmatpush1.bf16.msra.mxu0 %v2584_v53  ;;  %v2858_v53 = vpack.c.bf16 %v1025_v45, %v1017_v44  ;;  %v66_v44 = vld [vmem:[#allocation5 + $0x60] sm:$0xff]  ;;  %v60_v45 = vld [vmem:[#allocation5 + $0x30] sm:$0xff] }
 0x118   :  { %2841 = vmatpush1.bf16.msra.mxu1 %v2840_v54  ;;  %2587 = vmatprep.subr.bf16.mxu0 %v2586_v56  ;;  %v1024_v54 = vld [vmem:[#allocation5 + $0x1e50] sm:$0xff]  ;;  %v1031_v56 = vld [vmem:[#allocation5 + $0x1e88] sm:$0xff] }
 0x119   :  { %2843 = vmatprep.subr.bf16.mxu1 %v2842_v60  ;;  %v2604_v60 = vpack.c.bf16 %v1022_v51, %v1014_v50  ;;  %v2860_v62 = vpack.c.bf16 %v1024_v54, %v1016_v52  ;;  %v2606_v0 = vpack.c.bf16 %v1039_v57, %v1031_v56  ;;  %v83_v50 = vld [vmem:[#allocation5 + $0xe8] sm:$0xff]  ;;  %v77_v51 = vld [vmem:[#allocation5 + $0xb8] sm:$0xff]  ;;  %v74_v57 = vld [vmem:[#allocation5 + $0xa0] sm:$0xff] }
 0x11a   :  { %v85_v52 = vld [vmem:[#allocation5 + $0xf8] sm:$0xff] }
 0x11b   :  { %2589 = vmatpush1.bf16.msra.mxu0 %v2588_v4  ;;  %v2862_v4 = vpack.c.bf16 %v1041_v59, %v1033_v58  ;;  %v82_v58 = vld [vmem:[#allocation5 + $0xe0] sm:$0xff]  ;;  %v76_v59 = vld [vmem:[#allocation5 + $0xb0] sm:$0xff] }
 0x11c   :  { %2845 = vmatpush1.bf16.msra.mxu1 %v2844_v5  ;;  %2591 = vmatprep.subr.bf16.mxu0 %v2590_v6  ;;  %v1040_v5 = vld [vmem:[#allocation5 + $0x1ed0] sm:$0xff]  ;;  %v1047_v6 = vld [vmem:[#allocation5 + $0x1f08] sm:$0xff] }
 0x11d   :  { %2847 = vmatprep.subr.bf16.mxu1 %v2846_v10  ;;  %v2608_v10 = vpack.c.bf16 %v1038_v2, %v1030_v1  ;;  %v2864_v12 = vpack.c.bf16 %v1040_v5, %v1032_v3  ;;  %v2610_v13 = vpack.c.bf16 %v1055_v7, %v1047_v6  ;;  %v99_v1 = vld [vmem:[#allocation5 + $0x168] sm:$0xff]  ;;  %v93_v2 = vld [vmem:[#allocation5 + $0x138] sm:$0xff]  ;;  %v90_v7 = vld [vmem:[#allocation5 + $0x120] sm:$0xff] }
 0x11e   :  { %v101_v3 = vld [vmem:[#allocation5 + $0x178] sm:$0xff] }
 0x11f   :  { %2593 = vmatpush1.bf16.msra.mxu0 %v2592_v17  ;;  %v2866_v17 = vpack.c.bf16 %v1057_v9, %v1049_v8  ;;  %v98_v8 = vld [vmem:[#allocation5 + $0x160] sm:$0xff]  ;;  %v92_v9 = vld [vmem:[#allocation5 + $0x130] sm:$0xff] }
 0x120   :  { %2849 = vmatpush1.bf16.msra.mxu1 %v2848_v18  ;;  %2595 = vmatprep.subr.bf16.mxu0 %v2594_v19  ;;  %v1056_v18 = vld [vmem:[#allocation5 + $0x1f50] sm:$0xff]  ;;  %v1063_v19 = vld [vmem:[#allocation5 + $0x1f88] sm:$0xff] }
 0x121   :  { %2851 = vmatprep.subr.bf16.mxu1 %v2850_v24  ;;  %v2612_v24 = vpack.c.bf16 %v1054_v49, %v1046_v14  ;;  %v2868_v22 = vpack.c.bf16 %v1056_v18, %v1048_v16  ;;  %v2614_v27 = vpack.c.bf16 %v1071_v20, %v1063_v19  ;;  %v115_v14 = vld [vmem:[#allocation5 + $0x1e8] sm:$0xff]  ;;  %v109_v49 = vld [vmem:[#allocation5 + $0x1b8] sm:$0xff]  ;;  %v106_v20 = vld [vmem:[#allocation5 + $0x1a0] sm:$0xff] }
 0x122   :  { %v117_v16 = vld [vmem:[#allocation5 + $0x1f8] sm:$0xff] }
 0x123   :  { %2597 = vmatpush1.bf16.msra.mxu0 %v2596_v33  ;;  %v2870_v33 = vpack.c.bf16 %v1073_v23, %v1065_v21  ;;  %v114_v21 = vld [vmem:[#allocation5 + $0x1e0] sm:$0xff]  ;;  %v108_v23 = vld [vmem:[#allocation5 + $0x1b0] sm:$0xff] }
 0x124   :  { %2853 = vmatpush1.bf16.msra.mxu1 %v2852_v34  ;;  %2599 = vmatprep.subr.bf16.mxu0 %v2598_v35  ;;  %v1072_v34 = vld [vmem:[#allocation5 + $0x1fd0] sm:$0xff]  ;;  %v59_v35 = vld [vmem:[#allocation5 + $0x28] sm:$0xff] }
 0x125   :  { %2855 = vmatprep.subr.bf16.mxu1 %v2854_v40  ;;  %v2616_v40 = vpack.c.bf16 %v1070_v30, %v1062_v28  ;;  %v2872_v41 = vpack.c.bf16 %v1072_v34, %v1064_v31  ;;  %v2874_v42 = vpack.c.bf16 %v67_v36, %v59_v35  ;;  %v131_v28 = vld [vmem:[#allocation5 + $0x268] sm:$0xff]  ;;  %v125_v30 = vld [vmem:[#allocation5 + $0x238] sm:$0xff]  ;;  %v122_v35 = vld [vmem:[#allocation5 + $0x220] sm:$0xff] }
 0x126   :  { %v133_v31 = vld [vmem:[#allocation5 + $0x278] sm:$0xff]  ;;  %v130_v36 = vld [vmem:[#allocation5 + $0x260] sm:$0xff] }
 0x127   :  { %2601 = vmatpush1.bf16.msra.mxu0 %v2600_v46  ;;  %v3130_v46 = vpack.c.bf16 %v69_v38, %v61_v37  ;;  %v124_v37 = vld [vmem:[#allocation5 + $0x230] sm:$0xff]  ;;  %v3146_v38 = vpack.c.bf16 %v133_v31, %v125_v30 }
 0x128   :  { %2857 = vmatpush1.bf16.msra.mxu1 %v2856_v47  ;;  %2603 = vmatprep.subr.bf16.mxu0 %v2602_v48  ;;  %v68_v47 = vld [vmem:[#allocation5 + $0x70] sm:$0xff]  ;;  %v75_v48 = vld [vmem:[#allocation5 + $0xa8] sm:$0xff] }
 0x129   :  { %2859 = vmatprep.subr.bf16.mxu1 %v2858_v53  ;;  %v2876_v53 = vpack.c.bf16 %v66_v44, %v58_v43  ;;  %v3132_v54 = vpack.c.bf16 %v68_v47, %v60_v45  ;;  %v2878_v56 = vpack.c.bf16 %v83_v50, %v75_v48  ;;  %v141_v43 = vld [vmem:[#allocation5 + $0x2b8] sm:$0xff]  ;;  %v2892_v45 = vpack.c.bf16 %v130_v36, %v122_v35  ;;  %v138_v48 = vld [vmem:[#allocation5 + $0x2a0] sm:$0xff]  ;;  %v188_v30 = vld [vmem:[#allocation5 + $0x430] sm:$0xff] }
 0x12a   :  { %v149_v44 = vld [vmem:[#allocation5 + $0x2f8] sm:$0xff]  ;;  %v146_v50 = vld [vmem:[#allocation5 + $0x2e0] sm:$0xff] }
 0x12b   :  { %2605 = vmatpush1.bf16.msra.mxu0 %v2604_v60  ;;  %v3134_v60 = vpack.c.bf16 %v85_v52, %v77_v51  ;;  %v140_v51 = vld [vmem:[#allocation5 + $0x2b0] sm:$0xff]  ;;  %v3150_v52 = vpack.c.bf16 %v149_v44, %v141_v43  ;;  %v205_v35 = vld [vmem:[#allocation5 + $0x4b8] sm:$0xff] }
 0x12c   :  { %2861 = vmatpush1.bf16.msra.mxu1 %v2860_v62  ;;  %2607 = vmatprep.subr.bf16.mxu0 %v2606_v0  ;;  %v84_v62 = vld [vmem:[#allocation5 + $0xf0] sm:$0xff]  ;;  %v91_v0 = vld [vmem:[#allocation5 + $0x128] sm:$0xff]  ;;  %v213_v36 = vld [vmem:[#allocation5 + $0x4f8] sm:$0xff] }
 0x12d   :  { %2863 = vmatprep.subr.bf16.mxu1 %v2862_v4  ;;  %v2880_v4 = vpack.c.bf16 %v82_v58, %v74_v57  ;;  %v3136_v5 = vpack.c.bf16 %v84_v62, %v76_v59  ;;  %v2882_v6 = vpack.c.bf16 %v99_v1, %v91_v0  ;;  %v157_v57 = vld [vmem:[#allocation5 + $0x338] sm:$0xff]  ;;  %v2896_v59 = vpack.c.bf16 %v146_v50, %v138_v48  ;;  %v154_v0 = vld [vmem:[#allocation5 + $0x320] sm:$0xff]  ;;  %v204_v43 = vld [vmem:[#allocation5 + $0x4b0] sm:$0xff] }
 0x12e   :  { %v165_v58 = vld [vmem:[#allocation5 + $0x378] sm:$0xff]  ;;  %v162_v1 = vld [vmem:[#allocation5 + $0x360] sm:$0xff]  ;;  %v3166_v44 = vpack.c.bf16 %v213_v36, %v205_v35  ;;  %v268_v35 = vld [vmem:[#allocation5 + $0x6b0] sm:$0xff] }
 0x12f   :  { %2609 = vmatpush1.bf16.msra.mxu0 %v2608_v10  ;;  %v3138_v10 = vpack.c.bf16 %v101_v3, %v93_v2  ;;  %v156_v2 = vld [vmem:[#allocation5 + $0x330] sm:$0xff]  ;;  %v3154_v3 = vpack.c.bf16 %v165_v58, %v157_v57  ;;  %v221_v48 = vld [vmem:[#allocation5 + $0x538] sm:$0xff] }
 0x130   :  { %2865 = vmatpush1.bf16.msra.mxu1 %v2864_v12  ;;  %2611 = vmatprep.subr.bf16.mxu0 %v2610_v13  ;;  %v100_v12 = vld [vmem:[#allocation5 + $0x170] sm:$0xff]  ;;  %v107_v13 = vld [vmem:[#allocation5 + $0x1a8] sm:$0xff]  ;;  %v229_v50 = vld [vmem:[#allocation5 + $0x578] sm:$0xff] }
 0x131   :  { %2867 = vmatprep.subr.bf16.mxu1 %v2866_v17  ;;  %v2884_v17 = vpack.c.bf16 %v98_v8, %v90_v7  ;;  %v3140_v18 = vpack.c.bf16 %v100_v12, %v92_v9  ;;  %v2886_v19 = vpack.c.bf16 %v115_v14, %v107_v13  ;;  %v173_v7 = vld [vmem:[#allocation5 + $0x3b8] sm:$0xff]  ;;  %v2900_v9 = vpack.c.bf16 %v162_v1, %v154_v0  ;;  %v170_v13 = vld [vmem:[#allocation5 + $0x3a0] sm:$0xff]  ;;  %v220_v57 = vld [vmem:[#allocation5 + $0x530] sm:$0xff] }
 0x132   :  { %v181_v8 = vld [vmem:[#allocation5 + $0x3f8] sm:$0xff]  ;;  %v178_v14 = vld [vmem:[#allocation5 + $0x3e0] sm:$0xff]  ;;  %v3170_v58 = vpack.c.bf16 %v229_v50, %v221_v48  ;;  %v284_v48 = vld [vmem:[#allocation5 + $0x730] sm:$0xff] }
 0x133   :  { %2613 = vmatpush1.bf16.msra.mxu0 %v2612_v24  ;;  %v3142_v24 = vpack.c.bf16 %v117_v16, %v109_v49  ;;  %v172_v49 = vld [vmem:[#allocation5 + $0x3b0] sm:$0xff]  ;;  %v3158_v16 = vpack.c.bf16 %v181_v8, %v173_v7  ;;  %v237_v0 = vld [vmem:[#allocation5 + $0x5b8] sm:$0xff] }
 0x134   :  { %2869 = vmatpush1.bf16.msra.mxu1 %v2868_v22  ;;  %2615 = vmatprep.subr.bf16.mxu0 %v2614_v27  ;;  %v116_v22 = vld [vmem:[#allocation5 + $0x1f0] sm:$0xff]  ;;  %v123_v27 = vld [vmem:[#allocation5 + $0x228] sm:$0xff]  ;;  %v245_v1 = vld [vmem:[#allocation5 + $0x5f8] sm:$0xff] }
 0x135   :  { %2871 = vmatprep.subr.bf16.mxu1 %v2870_v33  ;;  %v2888_v33 = vpack.c.bf16 %v114_v21, %v106_v20  ;;  %v2890_v34 = vpack.c.bf16 %v131_v28, %v123_v27  ;;  %v189_v20 = vld [vmem:[#allocation5 + $0x438] sm:$0xff]  ;;  %v186_v27 = vld [vmem:[#allocation5 + $0x420] sm:$0xff]  ;;  %v236_v7 = vld [vmem:[#allocation5 + $0x5b0] sm:$0xff]  ;;  %v3174_v8 = vpack.c.bf16 %v245_v1, %v237_v0 }
 0x136   :  { %v197_v21 = vld [vmem:[#allocation5 + $0x478] sm:$0xff]  ;;  %v194_v28 = vld [vmem:[#allocation5 + $0x460] sm:$0xff]  ;;  %v300_v0 = vld [vmem:[#allocation5 + $0x7b0] sm:$0xff] }
 0x137   :  { %2617 = vmatpush1.bf16.msra.mxu0 %v2616_v40  ;;  %v132_v40 = vld [vmem:[#allocation5 + $0x270] sm:$0xff]  ;;  %v3162_v31 = vpack.c.bf16 %v197_v21, %v189_v20 }
 0x138   :  { %2873 = vmatpush1.bf16.msra.mxu1 %v2872_v41  ;;  %2875 = vmatprep.subr.bf16.mxu0 %v2874_v42  ;;  %v139_v41 = vld [vmem:[#allocation5 + $0x2a8] sm:$0xff]  ;;  %v252_v20 = vld [vmem:[#allocation5 + $0x630] sm:$0xff] }
 0x139   :  { %3131 = vmatprep.subr.bf16.mxu1 %v3130_v46  ;;  %v147_v42 = vld [vmem:[#allocation5 + $0x2e8] sm:$0xff]  ;;  %v3148_v46 = vpack.c.bf16 %v132_v40, %v124_v37  ;;  %v2908_v37 = vpack.c.bf16 %v194_v28, %v186_v27  ;;  %v269_v27 = vld [vmem:[#allocation5 + $0x6b8] sm:$0xff] }
 0x13a   :  { %1442 = vmatmul.mubr.f32.vlgmr.msra.gmra.mrb[0].mxu0 %v3631_v15  ;;  %v2894_v47 = vpack.c.bf16 %v147_v42, %v139_v41  ;;  %v202_v41 = vld [vmem:[#allocation5 + $0x4a0] sm:$0xff]  ;;  %v277_v28 = vld [vmem:[#allocation5 + $0x6f8] sm:$0xff] }
 0x13b   :  { %1726 = vmatmul.mubr.f32.vlgmr.msra.gmra.mrb[0].mxu1 %v3631_v15  ;;  %2877 = vmatpush1.bf16.msra.mxu0 %v2876_v53  ;;  %v148_v53 = vld [vmem:[#allocation5 + $0x2f0] sm:$0xff]  ;;  %v210_v42 = vld [vmem:[#allocation5 + $0x4e0] sm:$0xff]  ;;  %v3182_v36 = vpack.c.bf16 %v277_v28, %v269_v27 }
 0x13c   :  { %3133 = vmatpush1.bf16.msra.mxu1 %v3132_v54  ;;  %2879 = vmatprep.subr.bf16.mxu0 %v2878_v56  ;;  %v155_v54 = vld [vmem:[#allocation5 + $0x328] sm:$0xff]  ;;  %v332_v27 = vld [vmem:[#allocation5 + $0x8b0] sm:$0xff] }
 0x13d   :  { %3135 = vmatprep.subr.bf16.mxu1 %v3134_v60  ;;  %1796 = vmatprep.mubr.f32.mxu0 %v3597_v32  ;;  %v163_v56 = vld [vmem:[#allocation5 + $0x368] sm:$0xff]  ;;  %v3152_v60 = vpack.c.bf16 %v148_v53, %v140_v51  ;;  %v2912_v51 = vpack.c.bf16 %v210_v42, %v202_v41  ;;  %v285_v41 = vld [vmem:[#allocation5 + $0x738] sm:$0xff] }
 0x13e   :  { %2080 = vmatprep.mubr.f32.mxu1 %v3597_v32  ;;  %v3144_v32 = vpack.c.bf16 %v116_v22, %v108_v23  ;;  %v2898_v62 = vpack.c.bf16 %v163_v56, %v155_v54  ;;  %v2904_v23 = vpack.c.bf16 %v178_v14, %v170_v13  ;;  %v218_v54 = vld [vmem:[#allocation5 + $0x520] sm:$0xff]  ;;  %v253_v13 = vld [vmem:[#allocation5 + $0x638] sm:$0xff] }
 0x13f   :  { %2881 = vmatpush1.bf16.msra.mxu0 %v2880_v4  ;;  %v164_v4 = vld [vmem:[#allocation5 + $0x370] sm:$0xff]  ;;  %v226_v56 = vld [vmem:[#allocation5 + $0x560] sm:$0xff]  ;;  %v261_v14 = vld [vmem:[#allocation5 + $0x678] sm:$0xff] }
 0x140   :  { %3137 = vmatpush1.bf16.msra.mxu1 %v3136_v5  ;;  %2883 = vmatprep.subr.bf16.mxu0 %v2882_v6  ;;  %v171_v5 = vld [vmem:[#allocation5 + $0x3a8] sm:$0xff]  ;;  %v3178_v21 = vpack.c.bf16 %v261_v14, %v253_v13  ;;  %v293_v42 = vld [vmem:[#allocation5 + $0x778] sm:$0xff]  ;;  %v316_v13 = vld [vmem:[#allocation5 + $0x830] sm:$0xff] }
 0x141   :  { %3139 = vmatprep.subr.bf16.mxu1 %v3138_v10  ;;  %v179_v6 = vld [vmem:[#allocation5 + $0x3e8] sm:$0xff]  ;;  %v3156_v10 = vpack.c.bf16 %v164_v4, %v156_v2  ;;  %v2916_v2 = vpack.c.bf16 %v226_v56, %v218_v54  ;;  %v3186_v50 = vpack.c.bf16 %v293_v42, %v285_v41  ;;  %v301_v54 = vld [vmem:[#allocation5 + $0x7b8] sm:$0xff]  ;;  %v348_v41 = vld [vmem:[#allocation5 + $0x930] sm:$0xff] }
 0x142   :  { %v2902_v12 = vpack.c.bf16 %v179_v6, %v171_v5  ;;  %v234_v5 = vld [vmem:[#allocation5 + $0x5a0] sm:$0xff]  ;;  %v309_v56 = vld [vmem:[#allocation5 + $0x7f8] sm:$0xff] }
 0x143   :  { %2885 = vmatpush1.bf16.msra.mxu0 %v2884_v17  ;;  %v180_v17 = vld [vmem:[#allocation5 + $0x3f0] sm:$0xff]  ;;  %v242_v6 = vld [vmem:[#allocation5 + $0x5e0] sm:$0xff]  ;;  %v3190_v1 = vpack.c.bf16 %v309_v56, %v301_v54 }
 0x144   :  { %3141 = vmatpush1.bf16.msra.mxu1 %v3140_v18  ;;  %2887 = vmatprep.subr.bf16.mxu0 %v2886_v19  ;;  %v187_v18 = vld [vmem:[#allocation5 + $0x428] sm:$0xff]  ;;  %v372_v56 = vld [vmem:[#allocation5 + $0x9f0] sm:$0xff] }
 0x145   :  { %3143 = vmatprep.subr.bf16.mxu1 %v3142_v24  ;;  %v195_v19 = vld [vmem:[#allocation5 + $0x468] sm:$0xff]  ;;  %v3160_v24 = vpack.c.bf16 %v180_v17, %v172_v49  ;;  %v2920_v49 = vpack.c.bf16 %v242_v6, %v234_v5  ;;  %v317_v5 = vld [vmem:[#allocation5 + $0x838] sm:$0xff] }
 0x146   :  { %v2906_v22 = vpack.c.bf16 %v195_v19, %v187_v18  ;;  %v250_v18 = vld [vmem:[#allocation5 + $0x620] sm:$0xff]  ;;  %v325_v6 = vld [vmem:[#allocation5 + $0x878] sm:$0xff] }
 0x147   :  { %2889 = vmatpush1.bf16.msra.mxu0 %v2888_v33  ;;  %v196_v33 = vld [vmem:[#allocation5 + $0x470] sm:$0xff]  ;;  %v258_v19 = vld [vmem:[#allocation5 + $0x660] sm:$0xff]  ;;  %v3194_v14 = vpack.c.bf16 %v325_v6, %v317_v5  ;;  %v395_v6 = vld [vmem:[#allocation5 + $0xaa8] sm:$0xff] }
 0x148   :  { %3145 = vmatpush1.bf16.msra.mxu1 %v3144_v32  ;;  %2891 = vmatprep.subr.bf16.mxu0 %v2890_v34  ;;  %v203_v32 = vld [vmem:[#allocation5 + $0x4a8] sm:$0xff]  ;;  %v388_v5 = vld [vmem:[#allocation5 + $0xa70] sm:$0xff] }
 0x149   :  { %3147 = vmatprep.subr.bf16.mxu1 %v3146_v38  ;;  %v211_v34 = vld [vmem:[#allocation5 + $0x4e8] sm:$0xff]  ;;  %v3164_v38 = vpack.c.bf16 %v196_v33, %v188_v30  ;;  %v2924_v30 = vpack.c.bf16 %v258_v19, %v250_v18  ;;  %v333_v18 = vld [vmem:[#allocation5 + $0x8b8] sm:$0xff] }
 0x14a   :  { %v2910_v40 = vpack.c.bf16 %v211_v34, %v203_v32  ;;  %v266_v32 = vld [vmem:[#allocation5 + $0x6a0] sm:$0xff]  ;;  %v341_v19 = vld [vmem:[#allocation5 + $0x8f8] sm:$0xff] }
 0x14b   :  { %2893 = vmatpush1.bf16.msra.mxu0 %v2892_v45  ;;  %v212_v45 = vld [vmem:[#allocation5 + $0x4f0] sm:$0xff]  ;;  %v274_v34 = vld [vmem:[#allocation5 + $0x6e0] sm:$0xff]  ;;  %v3198_v28 = vpack.c.bf16 %v341_v19, %v333_v18  ;;  %v411_v19 = vld [vmem:[#allocation5 + $0xb28] sm:$0xff] }
 0x14c   :  { %3149 = vmatpush1.bf16.msra.mxu1 %v3148_v46  ;;  %2895 = vmatprep.subr.bf16.mxu0 %v2894_v47  ;;  %v219_v46 = vld [vmem:[#allocation5 + $0x528] sm:$0xff]  ;;  %v404_v18 = vld [vmem:[#allocation5 + $0xaf0] sm:$0xff] }
 0x14d   :  { %3151 = vmatprep.subr.bf16.mxu1 %v3150_v52  ;;  %v227_v47 = vld [vmem:[#allocation5 + $0x568] sm:$0xff]  ;;  %v3168_v52 = vpack.c.bf16 %v212_v45, %v204_v43  ;;  %v2928_v43 = vpack.c.bf16 %v274_v34, %v266_v32  ;;  %v349_v32 = vld [vmem:[#allocation5 + $0x938] sm:$0xff] }
 0x14e   :  { %v2914_v53 = vpack.c.bf16 %v227_v47, %v219_v46  ;;  %v282_v46 = vld [vmem:[#allocation5 + $0x720] sm:$0xff]  ;;  %v357_v34 = vld [vmem:[#allocation5 + $0x978] sm:$0xff] }
 0x14f   :  { %2897 = vmatpush1.bf16.msra.mxu0 %v2896_v59  ;;  %v228_v59 = vld [vmem:[#allocation5 + $0x570] sm:$0xff]  ;;  %v290_v47 = vld [vmem:[#allocation5 + $0x760] sm:$0xff]  ;;  %v3202_v42 = vpack.c.bf16 %v357_v34, %v349_v32  ;;  %v427_v34 = vld [vmem:[#allocation5 + $0xba8] sm:$0xff] }
 0x150   :  { %3153 = vmatpush1.bf16.msra.mxu1 %v3152_v60  ;;  %2899 = vmatprep.subr.bf16.mxu0 %v2898_v62  ;;  %v235_v60 = vld [vmem:[#allocation5 + $0x5a8] sm:$0xff]  ;;  %v420_v32 = vld [vmem:[#allocation5 + $0xb70] sm:$0xff] }
 0x151   :  { %3155 = vmatprep.subr.bf16.mxu1 %v3154_v3  ;;  %v243_v62 = vld [vmem:[#allocation5 + $0x5e8] sm:$0xff]  ;;  %v3172_v3 = vpack.c.bf16 %v228_v59, %v220_v57  ;;  %v2932_v57 = vpack.c.bf16 %v290_v47, %v282_v46  ;;  %v365_v46 = vld [vmem:[#allocation5 + $0x9b8] sm:$0xff] }
 0x152   :  { %v2918_v4 = vpack.c.bf16 %v243_v62, %v235_v60  ;;  %v298_v60 = vld [vmem:[#allocation5 + $0x7a0] sm:$0xff]  ;;  %v373_v47 = vld [vmem:[#allocation5 + $0x9f8] sm:$0xff] }
 0x153   :  { %2901 = vmatpush1.bf16.msra.mxu0 %v2900_v9  ;;  %v244_v9 = vld [vmem:[#allocation5 + $0x5f0] sm:$0xff]  ;;  %v306_v62 = vld [vmem:[#allocation5 + $0x7e0] sm:$0xff]  ;;  %v3206_v54 = vpack.c.bf16 %v373_v47, %v365_v46  ;;  %v443_v47 = vld [vmem:[#allocation5 + $0xc28] sm:$0xff] }
 0x154   :  { %3157 = vmatpush1.bf16.msra.mxu1 %v3156_v10  ;;  %2903 = vmatprep.subr.bf16.mxu0 %v2902_v12  ;;  %v251_v10 = vld [vmem:[#allocation5 + $0x628] sm:$0xff]  ;;  %v436_v46 = vld [vmem:[#allocation5 + $0xbf0] sm:$0xff] }
 0x155   :  { %3159 = vmatprep.subr.bf16.mxu1 %v3158_v16  ;;  %v259_v12 = vld [vmem:[#allocation5 + $0x668] sm:$0xff]  ;;  %v3176_v16 = vpack.c.bf16 %v244_v9, %v236_v7  ;;  %v2936_v7 = vpack.c.bf16 %v306_v62, %v298_v60  ;;  %v389_v60 = vld [vmem:[#allocation5 + $0xa78] sm:$0xff] }
 0x156   :  { %v2922_v17 = vpack.c.bf16 %v259_v12, %v251_v10  ;;  %v314_v10 = vld [vmem:[#allocation5 + $0x820] sm:$0xff] }
 0x157   :  { %2905 = vmatpush1.bf16.msra.mxu0 %v2904_v23  ;;  %v260_v23 = vld [vmem:[#allocation5 + $0x670] sm:$0xff]  ;;  %v322_v12 = vld [vmem:[#allocation5 + $0x860] sm:$0xff] }
 0x158   :  { %3161 = vmatpush1.bf16.msra.mxu1 %v3160_v24  ;;  %2907 = vmatprep.subr.bf16.mxu0 %v2906_v22  ;;  %v267_v24 = vld [vmem:[#allocation5 + $0x6a8] sm:$0xff] }
 0x159   :  { %3163 = vmatprep.subr.bf16.mxu1 %v3162_v31  ;;  %v275_v22 = vld [vmem:[#allocation5 + $0x6e8] sm:$0xff]  ;;  %v3180_v31 = vpack.c.bf16 %v260_v23, %v252_v20  ;;  %v2940_v20 = vpack.c.bf16 %v322_v12, %v314_v10 }
 0x15a   :  { %v2926_v33 = vpack.c.bf16 %v275_v22, %v267_v24  ;;  %v330_v24 = vld [vmem:[#allocation5 + $0x8a0] sm:$0xff] }
 0x15b   :  { %2909 = vmatpush1.bf16.msra.mxu0 %v2908_v37  ;;  %v276_v37 = vld [vmem:[#allocation5 + $0x6f0] sm:$0xff]  ;;  %v338_v22 = vld [vmem:[#allocation5 + $0x8e0] sm:$0xff] }
 0x15c   :  { %3165 = vmatpush1.bf16.msra.mxu1 %v3164_v38  ;;  %2911 = vmatprep.subr.bf16.mxu0 %v2910_v40  ;;  %v283_v38 = vld [vmem:[#allocation5 + $0x728] sm:$0xff] }
 0x15d   :  { %3167 = vmatprep.subr.bf16.mxu1 %v3166_v44  ;;  %v291_v40 = vld [vmem:[#allocation5 + $0x768] sm:$0xff]  ;;  %v3184_v44 = vpack.c.bf16 %v276_v37, %v268_v35  ;;  %v2944_v35 = vpack.c.bf16 %v338_v22, %v330_v24 }
 0x15e   :  { %v2930_v45 = vpack.c.bf16 %v291_v40, %v283_v38  ;;  %v346_v38 = vld [vmem:[#allocation5 + $0x920] sm:$0xff] }
 0x15f   :  { %2913 = vmatpush1.bf16.msra.mxu0 %v2912_v51  ;;  %v292_v51 = vld [vmem:[#allocation5 + $0x770] sm:$0xff]  ;;  %v354_v40 = vld [vmem:[#allocation5 + $0x960] sm:$0xff] }
 0x160   :  { %3169 = vmatpush1.bf16.msra.mxu1 %v3168_v52  ;;  %2915 = vmatprep.subr.bf16.mxu0 %v2914_v53  ;;  %v299_v52 = vld [vmem:[#allocation5 + $0x7a8] sm:$0xff] }
 0x161   :  { %3171 = vmatprep.subr.bf16.mxu1 %v3170_v58  ;;  %v307_v53 = vld [vmem:[#allocation5 + $0x7e8] sm:$0xff]  ;;  %v3188_v58 = vpack.c.bf16 %v292_v51, %v284_v48  ;;  %v362_v51 = vld [vmem:[#allocation5 + $0x9a0] sm:$0xff] }
 0x162   :  { %v2934_v59 = vpack.c.bf16 %v307_v53, %v299_v52  ;;  %v370_v52 = vld [vmem:[#allocation5 + $0x9e0] sm:$0xff]  ;;  %v364_v53 = vld [vmem:[#allocation5 + $0x9b0] sm:$0xff] }
 0x163   :  { %2917 = vmatpush1.bf16.msra.mxu0 %v2916_v2  ;;  %v308_v2 = vld [vmem:[#allocation5 + $0x7f0] sm:$0xff]  ;;  %v2952_v62 = vpack.c.bf16 %v370_v52, %v362_v51 }
 0x164   :  { %3173 = vmatpush1.bf16.msra.mxu1 %v3172_v3  ;;  %2919 = vmatprep.subr.bf16.mxu0 %v2918_v4  ;;  %v315_v3 = vld [vmem:[#allocation5 + $0x828] sm:$0xff] }
 0x165   :  { %3175 = vmatprep.subr.bf16.mxu1 %v3174_v8  ;;  %v323_v4 = vld [vmem:[#allocation5 + $0x868] sm:$0xff]  ;;  %v3192_v8 = vpack.c.bf16 %v308_v2, %v300_v0  ;;  %v386_v2 = vld [vmem:[#allocation5 + $0xa60] sm:$0xff] }
 0x166   :  { %v2938_v9 = vpack.c.bf16 %v323_v4, %v315_v3  ;;  %v380_v3 = vld [vmem:[#allocation5 + $0xa30] sm:$0xff] }
 0x167   :  { %2921 = vmatpush1.bf16.msra.mxu0 %v2920_v49  ;;  %v324_v49 = vld [vmem:[#allocation5 + $0x870] sm:$0xff]  ;;  %v3212_v12 = vpack.c.bf16 %v388_v5, %v380_v3  ;;  %v466_v5 = vld [vmem:[#allocation5 + $0xce0] sm:$0xff] }
 0x168   :  { %3177 = vmatpush1.bf16.msra.mxu1 %v3176_v16  ;;  %2923 = vmatprep.subr.bf16.mxu0 %v2922_v17  ;;  %v331_v16 = vld [vmem:[#allocation5 + $0x8a8] sm:$0xff] }
 0x169   :  { %3179 = vmatprep.subr.bf16.mxu1 %v3178_v21  ;;  %v339_v17 = vld [vmem:[#allocation5 + $0x8e8] sm:$0xff]  ;;  %v3196_v21 = vpack.c.bf16 %v324_v49, %v316_v13  ;;  %v402_v49 = vld [vmem:[#allocation5 + $0xae0] sm:$0xff] }
 0x16a   :  { %v2942_v23 = vpack.c.bf16 %v339_v17, %v331_v16  ;;  %v396_v16 = vld [vmem:[#allocation5 + $0xab0] sm:$0xff] }
 0x16b   :  { %2925 = vmatpush1.bf16.msra.mxu0 %v2924_v30  ;;  %v340_v30 = vld [vmem:[#allocation5 + $0x8f0] sm:$0xff]  ;;  %v3216_v22 = vpack.c.bf16 %v404_v18, %v396_v16  ;;  %v482_v18 = vld [vmem:[#allocation5 + $0xd60] sm:$0xff] }
 0x16c   :  { %3181 = vmatpush1.bf16.msra.mxu1 %v3180_v31  ;;  %2927 = vmatprep.subr.bf16.mxu0 %v2926_v33  ;;  %v347_v31 = vld [vmem:[#allocation5 + $0x928] sm:$0xff] }
 0x16d   :  { %3183 = vmatprep.subr.bf16.mxu1 %v3182_v36  ;;  %v355_v33 = vld [vmem:[#allocation5 + $0x968] sm:$0xff]  ;;  %v3200_v36 = vpack.c.bf16 %v340_v30, %v332_v27  ;;  %v418_v30 = vld [vmem:[#allocation5 + $0xb60] sm:$0xff] }
 0x16e   :  { %v2946_v37 = vpack.c.bf16 %v355_v33, %v347_v31  ;;  %v412_v31 = vld [vmem:[#allocation5 + $0xb30] sm:$0xff] }
 0x16f   :  { %2929 = vmatpush1.bf16.msra.mxu0 %v2928_v43  ;;  %v356_v43 = vld [vmem:[#allocation5 + $0x970] sm:$0xff] }
 0x170   :  { %3185 = vmatpush1.bf16.msra.mxu1 %v3184_v44  ;;  %2931 = vmatprep.subr.bf16.mxu0 %v2930_v45  ;;  %v363_v44 = vld [vmem:[#allocation5 + $0x9a8] sm:$0xff]  ;;  %v3204_v48 = vpack.c.bf16 %v356_v43, %v348_v41  ;;  %v434_v43 = vld [vmem:[#allocation5 + $0xbe0] sm:$0xff] }
 0x171   :  { %3187 = vmatprep.subr.bf16.mxu1 %v3186_v50  ;;  %v371_v45 = vld [vmem:[#allocation5 + $0x9e8] sm:$0xff] }
 0x172   :  { %v2950_v50 = vpack.c.bf16 %v371_v45, %v363_v44  ;;  %v428_v44 = vld [vmem:[#allocation5 + $0xbb0] sm:$0xff] }
 0x173   :  { %2933 = vmatpush1.bf16.msra.mxu0 %v2932_v57  ;;  %v379_v57 = vld [vmem:[#allocation5 + $0xa28] sm:$0xff]  ;;  %v3224_v52 = vpack.c.bf16 %v436_v46, %v428_v44  ;;  %v514_v46 = vld [vmem:[#allocation5 + $0xe60] sm:$0xff] }
 0x174   :  { %3189 = vmatpush1.bf16.msra.mxu1 %v3188_v58  ;;  %2935 = vmatprep.subr.bf16.mxu0 %v2934_v59  ;;  %v387_v58 = vld [vmem:[#allocation5 + $0xa68] sm:$0xff]  ;;  %v381_v59 = vld [vmem:[#allocation5 + $0xa38] sm:$0xff] }
 0x175   :  { %3191 = vmatprep.subr.bf16.mxu1 %v3190_v1  ;;  %v2954_v0 = vpack.c.bf16 %v387_v58, %v379_v57  ;;  %v378_v1 = vld [vmem:[#allocation5 + $0xa20] sm:$0xff]  ;;  %v3210_v4 = vpack.c.bf16 %v389_v60, %v381_v59  ;;  %v444_v57 = vld [vmem:[#allocation5 + $0xc30] sm:$0xff]  ;;  %v459_v60 = vld [vmem:[#allocation5 + $0xca8] sm:$0xff] }
 0x176   :  { %v2956_v10 = vpack.c.bf16 %v386_v2, %v378_v1  ;;  %v452_v59 = vld [vmem:[#allocation5 + $0xc70] sm:$0xff] }
 0x177   :  { %2937 = vmatpush1.bf16.msra.mxu0 %v2936_v7  ;;  %v403_v7 = vld [vmem:[#allocation5 + $0xae8] sm:$0xff]  ;;  %v3228_v2 = vpack.c.bf16 %v452_v59, %v444_v57  ;;  %v530_v59 = vld [vmem:[#allocation5 + $0xee0] sm:$0xff] }
 0x178   :  { %3193 = vmatpush1.bf16.msra.mxu1 %v3192_v8  ;;  %2939 = vmatprep.subr.bf16.mxu0 %v2938_v9  ;;  %v397_v8 = vld [vmem:[#allocation5 + $0xab8] sm:$0xff]  ;;  %v2958_v13 = vpack.c.bf16 %v403_v7, %v395_v6  ;;  %v460_v6 = vld [vmem:[#allocation5 + $0xcb0] sm:$0xff] }
 0x179   :  { %3195 = vmatprep.subr.bf16.mxu1 %v3194_v14  ;;  %v405_v9 = vld [vmem:[#allocation5 + $0xaf8] sm:$0xff]  ;;  %v394_v14 = vld [vmem:[#allocation5 + $0xaa0] sm:$0xff] }
 0x17a   :  { %1797 = vmatmul.mubr.f32.vlgmr.msra.gmra.mrb[2].mxu0 %v3593_v25  ;;  %v3214_v17 = vpack.c.bf16 %v405_v9, %v397_v8  ;;  %v2960_v24 = vpack.c.bf16 %v402_v49, %v394_v14  ;;  %v468_v8 = vld [vmem:[#allocation5 + $0xcf0] sm:$0xff]  ;;  %v475_v9 = vld [vmem:[#allocation5 + $0xd28] sm:$0xff] }
 0x17b   :  { %2941 = vmatpush1.bf16.msra.mxu0 %v2940_v20  ;;  %2081 = vmatmul.mubr.f32.vlgmr.msra.gmra.mrb[2].mxu1 %v3593_v25  ;;  %v2948_v25 = vpack.c.bf16 %v354_v40, %v346_v38  ;;  %v419_v20 = vld [vmem:[#allocation5 + $0xb68] sm:$0xff]  ;;  %v3220_v40 = vpack.c.bf16 %v420_v32, %v412_v31  ;;  %v3232_v49 = vpack.c.bf16 %v468_v8, %v460_v6  ;;  %v498_v32 = vld [vmem:[#allocation5 + $0xde0] sm:$0xff] }
 0x17c   :  { %3197 = vmatpush1.bf16.msra.mxu1 %v3196_v21  ;;  %2943 = vmatprep.subr.bf16.mxu0 %v2942_v23  ;;  %v413_v21 = vld [vmem:[#allocation5 + $0xb38] sm:$0xff]  ;;  %v2962_v27 = vpack.c.bf16 %v419_v20, %v411_v19  ;;  %v476_v19 = vld [vmem:[#allocation5 + $0xd30] sm:$0xff]  ;;  %v546_v8 = vld [vmem:[#allocation5 + $0xf60] sm:$0xff] }
 0x17d   :  { %3199 = vmatprep.subr.bf16.mxu1 %v3198_v28  ;;  %1867 = vmatprep.mubr.f32.mxu0 %v3608_v39  ;;  %v421_v23 = vld [vmem:[#allocation5 + $0xb78] sm:$0xff]  ;;  %v410_v28 = vld [vmem:[#allocation5 + $0xb20] sm:$0xff] }
 0x17e   :  { %2151 = vmatprep.mubr.f32.mxu1 %v3608_v39  ;;  %v3208_v39 = vpack.c.bf16 %v372_v56, %v364_v53  ;;  %v3218_v33 = vpack.c.bf16 %v421_v23, %v413_v21  ;;  %v2964_v38 = vpack.c.bf16 %v418_v30, %v410_v28  ;;  %v450_v56 = vld [vmem:[#allocation5 + $0xc60] sm:$0xff]  ;;  %v484_v21 = vld [vmem:[#allocation5 + $0xd70] sm:$0xff]  ;;  %v491_v23 = vld [vmem:[#allocation5 + $0xda8] sm:$0xff] }
 0x17f   :  { %2945 = vmatpush1.bf16.msra.mxu0 %v2944_v35  ;;  %v435_v35 = vld [vmem:[#allocation5 + $0xbe8] sm:$0xff]  ;;  %v3236_v30 = vpack.c.bf16 %v484_v21, %v476_v19  ;;  %v562_v21 = vld [vmem:[#allocation5 + $0xfe0] sm:$0xff] }
 0x180   :  { %3201 = vmatpush1.bf16.msra.mxu1 %v3200_v36  ;;  %2947 = vmatprep.subr.bf16.mxu0 %v2946_v37  ;;  %v429_v36 = vld [vmem:[#allocation5 + $0xbb8] sm:$0xff]  ;;  %v2966_v41 = vpack.c.bf16 %v435_v35, %v427_v34  ;;  %v492_v34 = vld [vmem:[#allocation5 + $0xdb0] sm:$0xff] }
 0x181   :  { %3203 = vmatprep.subr.bf16.mxu1 %v3202_v42  ;;  %v437_v37 = vld [vmem:[#allocation5 + $0xbf8] sm:$0xff]  ;;  %v426_v42 = vld [vmem:[#allocation5 + $0xba0] sm:$0xff] }
 0x182   :  { %v3222_v45 = vpack.c.bf16 %v437_v37, %v429_v36  ;;  %v2968_v51 = vpack.c.bf16 %v434_v43, %v426_v42  ;;  %v500_v36 = vld [vmem:[#allocation5 + $0xdf0] sm:$0xff]  ;;  %v507_v37 = vld [vmem:[#allocation5 + $0xe28] sm:$0xff] }
 0x183   :  { %2949 = vmatpush1.bf16.msra.mxu0 %v2948_v25  ;;  %v451_v25 = vld [vmem:[#allocation5 + $0xc68] sm:$0xff]  ;;  %v3240_v43 = vpack.c.bf16 %v500_v36, %v492_v34  ;;  %v578_v36 = vld [vmem:[#allocation5 + $0x1060] sm:$0xff] }
 0x184   :  { %3205 = vmatpush1.bf16.msra.mxu1 %v3204_v48  ;;  %2951 = vmatprep.subr.bf16.mxu0 %v2950_v50  ;;  %v445_v48 = vld [vmem:[#allocation5 + $0xc38] sm:$0xff]  ;;  %v2970_v53 = vpack.c.bf16 %v451_v25, %v443_v47  ;;  %v508_v47 = vld [vmem:[#allocation5 + $0xe30] sm:$0xff] }
 0x185   :  { %3207 = vmatprep.subr.bf16.mxu1 %v3206_v54  ;;  %v453_v50 = vld [vmem:[#allocation5 + $0xc78] sm:$0xff]  ;;  %v442_v54 = vld [vmem:[#allocation5 + $0xc20] sm:$0xff] }
 0x186   :  { %v3226_v58 = vpack.c.bf16 %v453_v50, %v445_v48  ;;  %v2972_v1 = vpack.c.bf16 %v450_v56, %v442_v54  ;;  %v516_v48 = vld [vmem:[#allocation5 + $0xe70] sm:$0xff]  ;;  %v523_v50 = vld [vmem:[#allocation5 + $0xea8] sm:$0xff] }
 0x187   :  { %2953 = vmatpush1.bf16.msra.mxu0 %v2952_v62  ;;  %v467_v62 = vld [vmem:[#allocation5 + $0xce8] sm:$0xff]  ;;  %v3244_v56 = vpack.c.bf16 %v516_v48, %v508_v47  ;;  %v594_v48 = vld [vmem:[#allocation5 + $0x10e0] sm:$0xff] }
 0x188   :  { %3209 = vmatpush1.bf16.msra.mxu1 %v3208_v39  ;;  %2955 = vmatprep.subr.bf16.mxu0 %v2954_v0  ;;  %v461_v39 = vld [vmem:[#allocation5 + $0xcb8] sm:$0xff]  ;;  %v2974_v3 = vpack.c.bf16 %v467_v62, %v459_v60  ;;  %v524_v60 = vld [vmem:[#allocation5 + $0xeb0] sm:$0xff] }
 0x189   :  { %3211 = vmatprep.subr.bf16.mxu1 %v3210_v4  ;;  %v469_v0 = vld [vmem:[#allocation5 + $0xcf8] sm:$0xff]  ;;  %v458_v4 = vld [vmem:[#allocation5 + $0xca0] sm:$0xff] }
 0x18a   :  { %v3230_v7 = vpack.c.bf16 %v469_v0, %v461_v39  ;;  %v2976_v14 = vpack.c.bf16 %v466_v5, %v458_v4  ;;  %v532_v39 = vld [vmem:[#allocation5 + $0xef0] sm:$0xff]  ;;  %v539_v0 = vld [vmem:[#allocation5 + $0xf28] sm:$0xff] }
 0x18b   :  { %2957 = vmatpush1.bf16.msra.mxu0 %v2956_v10  ;;  %v483_v10 = vld [vmem:[#allocation5 + $0xd68] sm:$0xff]  ;;  %v3248_v5 = vpack.c.bf16 %v532_v39, %v524_v60  ;;  %v610_v39 = vld [vmem:[#allocation5 + $0x1160] sm:$0xff] }
 0x18c   :  { %3213 = vmatpush1.bf16.msra.mxu1 %v3212_v12  ;;  %2959 = vmatprep.subr.bf16.mxu0 %v2958_v13  ;;  %v477_v12 = vld [vmem:[#allocation5 + $0xd38] sm:$0xff]  ;;  %v2978_v16 = vpack.c.bf16 %v483_v10, %v475_v9  ;;  %v540_v9 = vld [vmem:[#allocation5 + $0xf30] sm:$0xff] }
 0x18d   :  { %3215 = vmatprep.subr.bf16.mxu1 %v3214_v17  ;;  %v485_v13 = vld [vmem:[#allocation5 + $0xd78] sm:$0xff]  ;;  %v474_v17 = vld [vmem:[#allocation5 + $0xd20] sm:$0xff] }
 0x18e   :  { %v3234_v20 = vpack.c.bf16 %v485_v13, %v477_v12  ;;  %v2980_v28 = vpack.c.bf16 %v482_v18, %v474_v17  ;;  %v548_v12 = vld [vmem:[#allocation5 + $0xf70] sm:$0xff]  ;;  %v555_v13 = vld [vmem:[#allocation5 + $0xfa8] sm:$0xff] }
 0x18f   :  { %2961 = vmatpush1.bf16.msra.mxu0 %v2960_v24  ;;  %v499_v24 = vld [vmem:[#allocation5 + $0xde8] sm:$0xff]  ;;  %v3252_v18 = vpack.c.bf16 %v548_v12, %v540_v9  ;;  %v618_v9 = vld [vmem:[#allocation5 + $0x11a0] sm:$0xff]  ;;  %v620_v12 = vld [vmem:[#allocation5 + $0x11b0] sm:$0xff] }
 0x190   :  { %3217 = vmatpush1.bf16.msra.mxu1 %v3216_v22  ;;  %2963 = vmatprep.subr.bf16.mxu0 %v2962_v27  ;;  %v493_v22 = vld [vmem:[#allocation5 + $0xdb8] sm:$0xff]  ;;  %v2982_v31 = vpack.c.bf16 %v499_v24, %v491_v23  ;;  %v556_v23 = vld [vmem:[#allocation5 + $0xfb0] sm:$0xff] }
 0x191   :  { %3219 = vmatprep.subr.bf16.mxu1 %v3218_v33  ;;  %v501_v27 = vld [vmem:[#allocation5 + $0xdf8] sm:$0xff]  ;;  %v490_v33 = vld [vmem:[#allocation5 + $0xda0] sm:$0xff] }
 0x192   :  { %v3238_v35 = vpack.c.bf16 %v501_v27, %v493_v22  ;;  %v2984_v42 = vpack.c.bf16 %v498_v32, %v490_v33  ;;  %v564_v22 = vld [vmem:[#allocation5 + $0xff0] sm:$0xff]  ;;  %v571_v27 = vld [vmem:[#allocation5 + $0x1028] sm:$0xff] }
 0x193   :  { %2965 = vmatpush1.bf16.msra.mxu0 %v2964_v38  ;;  %v515_v38 = vld [vmem:[#allocation5 + $0xe68] sm:$0xff]  ;;  %v3256_v32 = vpack.c.bf16 %v564_v22, %v556_v23  ;;  %v642_v23 = vld [vmem:[#allocation5 + $0x1260] sm:$0xff] }
 0x194   :  { %3221 = vmatpush1.bf16.msra.mxu1 %v3220_v40  ;;  %2967 = vmatprep.subr.bf16.mxu0 %v2966_v41  ;;  %v509_v40 = vld [vmem:[#allocation5 + $0xe38] sm:$0xff]  ;;  %v2986_v44 = vpack.c.bf16 %v515_v38, %v507_v37  ;;  %v572_v37 = vld [vmem:[#allocation5 + $0x1030] sm:$0xff] }
 0x195   :  { %3223 = vmatprep.subr.bf16.mxu1 %v3222_v45  ;;  %v517_v41 = vld [vmem:[#allocation5 + $0xe78] sm:$0xff]  ;;  %v506_v45 = vld [vmem:[#allocation5 + $0xe20] sm:$0xff] }
 0x196   :  { %v3242_v25 = vpack.c.bf16 %v517_v41, %v509_v40  ;;  %v2988_v54 = vpack.c.bf16 %v514_v46, %v506_v45  ;;  %v580_v40 = vld [vmem:[#allocation5 + $0x1070] sm:$0xff]  ;;  %v587_v41 = vld [vmem:[#allocation5 + $0x10a8] sm:$0xff] }
 0x197   :  { %2969 = vmatpush1.bf16.msra.mxu0 %v2968_v51  ;;  %v531_v51 = vld [vmem:[#allocation5 + $0xee8] sm:$0xff]  ;;  %v3260_v46 = vpack.c.bf16 %v580_v40, %v572_v37  ;;  %v658_v37 = vld [vmem:[#allocation5 + $0x12e0] sm:$0xff] }
 0x198   :  { %3225 = vmatpush1.bf16.msra.mxu1 %v3224_v52  ;;  %2971 = vmatprep.subr.bf16.mxu0 %v2970_v53  ;;  %v525_v52 = vld [vmem:[#allocation5 + $0xeb8] sm:$0xff]  ;;  %v2990_v57 = vpack.c.bf16 %v531_v51, %v523_v50  ;;  %v588_v50 = vld [vmem:[#allocation5 + $0x10b0] sm:$0xff] }
 0x199   :  { %3227 = vmatprep.subr.bf16.mxu1 %v3226_v58  ;;  %v533_v53 = vld [vmem:[#allocation5 + $0xef8] sm:$0xff]  ;;  %v522_v58 = vld [vmem:[#allocation5 + $0xea0] sm:$0xff] }
 0x19a   :  { %v3246_v62 = vpack.c.bf16 %v533_v53, %v525_v52  ;;  %v2992_v4 = vpack.c.bf16 %v530_v59, %v522_v58  ;;  %v596_v52 = vld [vmem:[#allocation5 + $0x10f0] sm:$0xff]  ;;  %v603_v53 = vld [vmem:[#allocation5 + $0x1128] sm:$0xff] }
 0x19b   :  { %2973 = vmatpush1.bf16.msra.mxu0 %v2972_v1  ;;  %v547_v1 = vld [vmem:[#allocation5 + $0xf68] sm:$0xff]  ;;  %v3264_v59 = vpack.c.bf16 %v596_v52, %v588_v50  ;;  %v674_v50 = vld [vmem:[#allocation5 + $0x1360] sm:$0xff] }
 0x19c   :  { %3229 = vmatpush1.bf16.msra.mxu1 %v3228_v2  ;;  %2975 = vmatprep.subr.bf16.mxu0 %v2974_v3  ;;  %v541_v2 = vld [vmem:[#allocation5 + $0xf38] sm:$0xff]  ;;  %v2994_v6 = vpack.c.bf16 %v547_v1, %v539_v0  ;;  %v604_v0 = vld [vmem:[#allocation5 + $0x1130] sm:$0xff] }
 0x19d   :  { %3231 = vmatprep.subr.bf16.mxu1 %v3230_v7  ;;  %v549_v3 = vld [vmem:[#allocation5 + $0xf78] sm:$0xff]  ;;  %v538_v7 = vld [vmem:[#allocation5 + $0xf20] sm:$0xff] }
 0x19e   :  { %v3250_v10 = vpack.c.bf16 %v549_v3, %v541_v2  ;;  %v2996_v17 = vpack.c.bf16 %v546_v8, %v538_v7  ;;  %v612_v2 = vld [vmem:[#allocation5 + $0x1170] sm:$0xff]  ;;  %v619_v3 = vld [vmem:[#allocation5 + $0x11a8] sm:$0xff] }
 0x19f   :  { %2977 = vmatpush1.bf16.msra.mxu0 %v2976_v14  ;;  %v563_v14 = vld [vmem:[#allocation5 + $0xfe8] sm:$0xff]  ;;  %v3268_v7 = vpack.c.bf16 %v612_v2, %v604_v0  ;;  %v690_v0 = vld [vmem:[#allocation5 + $0x13e0] sm:$0xff] }
 0x1a0   :  { %3233 = vmatpush1.bf16.msra.mxu1 %v3232_v49  ;;  %2979 = vmatprep.subr.bf16.mxu0 %v2978_v16  ;;  %v557_v49 = vld [vmem:[#allocation5 + $0xfb8] sm:$0xff]  ;;  %v2998_v19 = vpack.c.bf16 %v563_v14, %v555_v13  ;;  %v628_v14 = vld [vmem:[#allocation5 + $0x11f0] sm:$0xff] }
 0x1a1   :  { %3235 = vmatprep.subr.bf16.mxu1 %v3234_v20  ;;  %v565_v16 = vld [vmem:[#allocation5 + $0xff8] sm:$0xff]  ;;  %v554_v20 = vld [vmem:[#allocation5 + $0xfa0] sm:$0xff] }
 0x1a2   :  { %v3254_v24 = vpack.c.bf16 %v565_v16, %v557_v49  ;;  %v3000_v33 = vpack.c.bf16 %v562_v21, %v554_v20  ;;  %v635_v49 = vld [vmem:[#allocation5 + $0x1228] sm:$0xff]  ;;  %v634_v21 = vld [vmem:[#allocation5 + $0x1220] sm:$0xff] }
 0x1a3   :  { %2981 = vmatpush1.bf16.msra.mxu0 %v2980_v28  ;;  %v579_v28 = vld [vmem:[#allocation5 + $0x1068] sm:$0xff] }
 0x1a4   :  { %3237 = vmatpush1.bf16.msra.mxu1 %v3236_v30  ;;  %2983 = vmatprep.subr.bf16.mxu0 %v2982_v31  ;;  %v573_v30 = vld [vmem:[#allocation5 + $0x1038] sm:$0xff]  ;;  %v3002_v34 = vpack.c.bf16 %v579_v28, %v571_v27  ;;  %v643_v16 = vld [vmem:[#allocation5 + $0x1268] sm:$0xff]  ;;  %v644_v27 = vld [vmem:[#allocation5 + $0x1270] sm:$0xff] }
 0x1a5   :  { %3239 = vmatprep.subr.bf16.mxu1 %v3238_v35  ;;  %v581_v31 = vld [vmem:[#allocation5 + $0x1078] sm:$0xff]  ;;  %v570_v35 = vld [vmem:[#allocation5 + $0x1020] sm:$0xff]  ;;  %v3018_v20 = vpack.c.bf16 %v643_v16, %v635_v49  ;;  %v651_v28 = vld [vmem:[#allocation5 + $0x12a8] sm:$0xff] }
 0x1a6   :  { %v3258_v38 = vpack.c.bf16 %v581_v31, %v573_v30  ;;  %v3004_v45 = vpack.c.bf16 %v578_v36, %v570_v35  ;;  %v659_v30 = vld [vmem:[#allocation5 + $0x12e8] sm:$0xff]  ;;  %v653_v31 = vld [vmem:[#allocation5 + $0x12b8] sm:$0xff]  ;;  %v650_v36 = vld [vmem:[#allocation5 + $0x12a0] sm:$0xff] }
 0x1a7   :  { %2985 = vmatpush1.bf16.msra.mxu0 %v2984_v42  ;;  %v595_v42 = vld [vmem:[#allocation5 + $0x10e8] sm:$0xff]  ;;  %v3022_v35 = vpack.c.bf16 %v659_v30, %v651_v28  ;;  %v708_v49 = vld [vmem:[#allocation5 + $0x1470] sm:$0xff] }
 0x1a8   :  { %3241 = vmatpush1.bf16.msra.mxu1 %v3240_v43  ;;  %2987 = vmatprep.subr.bf16.mxu0 %v2986_v44  ;;  %v589_v43 = vld [vmem:[#allocation5 + $0x10b8] sm:$0xff]  ;;  %v3006_v47 = vpack.c.bf16 %v595_v42, %v587_v41  ;;  %v660_v41 = vld [vmem:[#allocation5 + $0x12f0] sm:$0xff]  ;;  %v667_v42 = vld [vmem:[#allocation5 + $0x1328] sm:$0xff] }
 0x1a9   :  { %3243 = vmatprep.subr.bf16.mxu1 %v3242_v25  ;;  %v597_v44 = vld [vmem:[#allocation5 + $0x10f8] sm:$0xff]  ;;  %v586_v25 = vld [vmem:[#allocation5 + $0x10a0] sm:$0xff]  ;;  %v715_v16 = vld [vmem:[#allocation5 + $0x14a8] sm:$0xff] }
 0x1aa   :  { %v3262_v51 = vpack.c.bf16 %v597_v44, %v589_v43  ;;  %v3008_v58 = vpack.c.bf16 %v594_v48, %v586_v25  ;;  %v675_v43 = vld [vmem:[#allocation5 + $0x1368] sm:$0xff]  ;;  %v669_v44 = vld [vmem:[#allocation5 + $0x1338] sm:$0xff]  ;;  %v666_v48 = vld [vmem:[#allocation5 + $0x1320] sm:$0xff] }
 0x1ab   :  { %2989 = vmatpush1.bf16.msra.mxu0 %v2988_v54  ;;  %v611_v54 = vld [vmem:[#allocation5 + $0x1168] sm:$0xff]  ;;  %v3026_v25 = vpack.c.bf16 %v675_v43, %v667_v42  ;;  %v724_v28 = vld [vmem:[#allocation5 + $0x14f0] sm:$0xff] }
 0x1ac   :  { %3245 = vmatpush1.bf16.msra.mxu1 %v3244_v56  ;;  %2991 = vmatprep.subr.bf16.mxu0 %v2990_v57  ;;  %v605_v56 = vld [vmem:[#allocation5 + $0x1138] sm:$0xff]  ;;  %v3010_v60 = vpack.c.bf16 %v611_v54, %v603_v53  ;;  %v676_v53 = vld [vmem:[#allocation5 + $0x1370] sm:$0xff]  ;;  %v683_v54 = vld [vmem:[#allocation5 + $0x13a8] sm:$0xff] }
 0x1ad   :  { %3247 = vmatprep.subr.bf16.mxu1 %v3246_v62  ;;  %v613_v57 = vld [vmem:[#allocation5 + $0x1178] sm:$0xff]  ;;  %v602_v62 = vld [vmem:[#allocation5 + $0x1120] sm:$0xff]  ;;  %v731_v30 = vld [vmem:[#allocation5 + $0x1528] sm:$0xff] }
 0x1ae   :  { %v3266_v1 = vpack.c.bf16 %v613_v57, %v605_v56  ;;  %v691_v56 = vld [vmem:[#allocation5 + $0x13e8] sm:$0xff]  ;;  %v685_v57 = vld [vmem:[#allocation5 + $0x13b8] sm:$0xff]  ;;  %v740_v42 = vld [vmem:[#allocation5 + $0x1570] sm:$0xff] }
 0x1af   :  { %2993 = vmatpush1.bf16.msra.mxu0 %v2992_v4  ;;  %v627_v4 = vld [vmem:[#allocation5 + $0x11e8] sm:$0xff] }
 0x1b0   :  { %3249 = vmatpush1.bf16.msra.mxu1 %v3248_v5  ;;  %2995 = vmatprep.subr.bf16.mxu0 %v2994_v6  ;;  %v621_v5 = vld [vmem:[#allocation5 + $0x11b8] sm:$0xff]  ;;  %v3014_v8 = vpack.c.bf16 %v627_v4, %v619_v3  ;;  %v692_v3 = vld [vmem:[#allocation5 + $0x13f0] sm:$0xff]  ;;  %v699_v4 = vld [vmem:[#allocation5 + $0x1428] sm:$0xff] }
 0x1b1   :  { %3251 = vmatprep.subr.bf16.mxu1 %v3250_v10  ;;  %v629_v6 = vld [vmem:[#allocation5 + $0x11f8] sm:$0xff]  ;;  %v626_v10 = vld [vmem:[#allocation5 + $0x11e0] sm:$0xff]  ;;  %v747_v43 = vld [vmem:[#allocation5 + $0x15a8] sm:$0xff] }
 0x1b2   :  { %v3270_v13 = vpack.c.bf16 %v629_v6, %v621_v5  ;;  %v707_v5 = vld [vmem:[#allocation5 + $0x1468] sm:$0xff]  ;;  %v701_v6 = vld [vmem:[#allocation5 + $0x1438] sm:$0xff] }
 0x1b3   :  { %2997 = vmatpush1.bf16.msra.mxu0 %v2996_v17  ;;  %v637_v17 = vld [vmem:[#allocation5 + $0x1238] sm:$0xff] }
 0x1b4   :  { %3253 = vmatpush1.bf16.msra.mxu1 %v3252_v18  ;;  %2999 = vmatprep.subr.bf16.mxu0 %v2998_v19  ;;  %v645_v18 = vld [vmem:[#allocation5 + $0x1278] sm:$0xff]  ;;  %v3016_v19 = vpack.c.bf16 %v626_v10, %v618_v9  ;;  %v3034_v9 = vpack.c.bf16 %v707_v5, %v699_v4  ;;  %v698_v10 = vld [vmem:[#allocation5 + $0x1420] sm:$0xff]  ;;  %v772_v4 = vld [vmem:[#allocation5 + $0x1670] sm:$0xff] }
 0x1b5   :  { %3255 = vmatprep.subr.bf16.mxu1 %v3254_v24  ;;  %v636_v24 = vld [vmem:[#allocation5 + $0x1230] sm:$0xff]  ;;  %v3274_v22 = vpack.c.bf16 %v645_v18, %v637_v17  ;;  %v723_v17 = vld [vmem:[#allocation5 + $0x14e8] sm:$0xff]  ;;  %v717_v18 = vld [vmem:[#allocation5 + $0x14b8] sm:$0xff] }
 0x1b6   :  { %v779_v5 = vld [vmem:[#allocation5 + $0x16a8] sm:$0xff] }
 0x1b7   :  { %3001 = vmatpush1.bf16.msra.mxu0 %v3000_v33  ;;  %v661_v33 = vld [vmem:[#allocation5 + $0x12f8] sm:$0xff] }
 0x1b8   :  { %3257 = vmatpush1.bf16.msra.mxu1 %v3256_v32  ;;  %3003 = vmatprep.subr.bf16.mxu0 %v3002_v34  ;;  %v3020_v32 = vpack.c.bf16 %v642_v23, %v634_v21  ;;  %v3276_v34 = vpack.c.bf16 %v644_v27, %v636_v24  ;;  %v3278_v40 = vpack.c.bf16 %v661_v33, %v653_v31  ;;  %v714_v23 = vld [vmem:[#allocation5 + $0x14a0] sm:$0xff]  ;;  %v739_v31 = vld [vmem:[#allocation5 + $0x1568] sm:$0xff]  ;;  %v733_v33 = vld [vmem:[#allocation5 + $0x1538] sm:$0xff] }
 0x1b9   :  { %3259 = vmatprep.subr.bf16.mxu1 %v3258_v38  ;;  %v652_v38 = vld [vmem:[#allocation5 + $0x12b0] sm:$0xff]  ;;  %v3038_v21 = vpack.c.bf16 %v723_v17, %v715_v16  ;;  %v722_v24 = vld [vmem:[#allocation5 + $0x14e0] sm:$0xff]  ;;  %v795_v17 = vld [vmem:[#allocation5 + $0x1728] sm:$0xff] }
 0x1ba   :  { %1868 = vmatmul.mubr.f32.vlgmr.msra.gmra.mrb[2].mxu0 %v3604_v26  ;;  %v788_v16 = vld [vmem:[#allocation5 + $0x16f0] sm:$0xff] }
 0x1bb   :  { %3005 = vmatpush1.bf16.msra.mxu0 %v3004_v45  ;;  %2152 = vmatmul.mubr.f32.vlgmr.msra.gmra.mrb[2].mxu1 %v3604_v26  ;;  %v3012_v26 = vpack.c.bf16 %v610_v39, %v602_v62  ;;  %v677_v45 = vld [vmem:[#allocation5 + $0x1378] sm:$0xff]  ;;  %v3030_v62 = vpack.c.bf16 %v691_v56, %v683_v54  ;;  %v682_v39 = vld [vmem:[#allocation5 + $0x13a0] sm:$0xff]  ;;  %v756_v54 = vld [vmem:[#allocation5 + $0x15f0] sm:$0xff] }
 0x1bc   :  { %3261 = vmatpush1.bf16.msra.mxu1 %v3260_v46  ;;  %3007 = vmatprep.subr.bf16.mxu0 %v3006_v47  ;;  %v3024_v46 = vpack.c.bf16 %v658_v37, %v650_v36  ;;  %v3280_v47 = vpack.c.bf16 %v660_v41, %v652_v38  ;;  %v3282_v52 = vpack.c.bf16 %v677_v45, %v669_v44  ;;  %v730_v37 = vld [vmem:[#allocation5 + $0x1520] sm:$0xff]  ;;  %v755_v44 = vld [vmem:[#allocation5 + $0x15e8] sm:$0xff]  ;;  %v749_v45 = vld [vmem:[#allocation5 + $0x15b8] sm:$0xff] }
 0x1bd   :  { %3263 = vmatprep.subr.bf16.mxu1 %v3262_v51  ;;  %1938 = vmatprep.mubr.f32.mxu0 %v3623_v63  ;;  %v668_v51 = vld [vmem:[#allocation5 + $0x1330] sm:$0xff]  ;;  %v3042_v36 = vpack.c.bf16 %v739_v31, %v731_v30  ;;  %v738_v38 = vld [vmem:[#allocation5 + $0x1560] sm:$0xff]  ;;  %v763_v56 = vld [vmem:[#allocation5 + $0x1628] sm:$0xff] }
 0x1be   :  { %2222 = vmatprep.mubr.f32.mxu1 %v3623_v63  ;;  %v3272_v63 = vpack.c.bf16 %v628_v14, %v620_v12  ;;  %v706_v12 = vld [vmem:[#allocation5 + $0x1460] sm:$0xff]  ;;  %v804_v30 = vld [vmem:[#allocation5 + $0x1770] sm:$0xff]  ;;  %v811_v31 = vld [vmem:[#allocation5 + $0x17a8] sm:$0xff] }
 0x1bf   :  { %3009 = vmatpush1.bf16.msra.mxu0 %v3008_v58  ;;  %v693_v58 = vld [vmem:[#allocation5 + $0x13f8] sm:$0xff] }
 0x1c0   :  { %3265 = vmatpush1.bf16.msra.mxu1 %v3264_v59  ;;  %3011 = vmatprep.subr.bf16.mxu0 %v3010_v60  ;;  %v3028_v59 = vpack.c.bf16 %v674_v50, %v666_v48  ;;  %v3284_v60 = vpack.c.bf16 %v676_v53, %v668_v51  ;;  %v3286_v2 = vpack.c.bf16 %v693_v58, %v685_v57  ;;  %v746_v50 = vld [vmem:[#allocation5 + $0x15a0] sm:$0xff]  ;;  %v771_v57 = vld [vmem:[#allocation5 + $0x1668] sm:$0xff]  ;;  %v765_v58 = vld [vmem:[#allocation5 + $0x1638] sm:$0xff] }
 0x1c1   :  { %3267 = vmatprep.subr.bf16.mxu1 %v3266_v1  ;;  %v684_v1 = vld [vmem:[#allocation5 + $0x13b0] sm:$0xff]  ;;  %v3046_v48 = vpack.c.bf16 %v755_v44, %v747_v43  ;;  %v754_v51 = vld [vmem:[#allocation5 + $0x15e0] sm:$0xff]  ;;  %v827_v44 = vld [vmem:[#allocation5 + $0x1828] sm:$0xff] }
 0x1c2   :  { %v820_v43 = vld [vmem:[#allocation5 + $0x17f0] sm:$0xff] }
 0x1c3   :  { %3013 = vmatpush1.bf16.msra.mxu0 %v3012_v26  ;;  %v709_v26 = vld [vmem:[#allocation5 + $0x1478] sm:$0xff] }
 0x1c4   :  { %3269 = vmatpush1.bf16.msra.mxu1 %v3268_v7  ;;  %3015 = vmatprep.subr.bf16.mxu0 %v3014_v8  ;;  %v3032_v7 = vpack.c.bf16 %v690_v0, %v682_v39  ;;  %v3288_v8 = vpack.c.bf16 %v692_v3, %v684_v1  ;;  %v3290_v14 = vpack.c.bf16 %v709_v26, %v701_v6  ;;  %v762_v0 = vld [vmem:[#allocation5 + $0x1620] sm:$0xff]  ;;  %v787_v6 = vld [vmem:[#allocation5 + $0x16e8] sm:$0xff]  ;;  %v781_v26 = vld [vmem:[#allocation5 + $0x16b8] sm:$0xff] }
 0x1c5   :  { %3271 = vmatprep.subr.bf16.mxu1 %v3270_v13  ;;  %v700_v13 = vld [vmem:[#allocation5 + $0x1430] sm:$0xff]  ;;  %v3050_v39 = vpack.c.bf16 %v771_v57, %v763_v56  ;;  %v770_v1 = vld [vmem:[#allocation5 + $0x1660] sm:$0xff]  ;;  %v843_v57 = vld [vmem:[#allocation5 + $0x18a8] sm:$0xff] }
 0x1c6   :  { %v836_v56 = vld [vmem:[#allocation5 + $0x1870] sm:$0xff] }
 0x1c7   :  { %3017 = vmatpush1.bf16.msra.mxu0 %v3016_v19  ;;  %v725_v19 = vld [vmem:[#allocation5 + $0x14f8] sm:$0xff] }
 0x1c8   :  { %3273 = vmatpush1.bf16.msra.mxu1 %v3272_v63  ;;  %3019 = vmatprep.subr.bf16.mxu0 %v3018_v20  ;;  %v3036_v63 = vpack.c.bf16 %v706_v12, %v698_v10  ;;  %v3292_v20 = vpack.c.bf16 %v708_v49, %v700_v13  ;;  %v3294_v27 = vpack.c.bf16 %v725_v19, %v717_v18  ;;  %v778_v12 = vld [vmem:[#allocation5 + $0x16a0] sm:$0xff]  ;;  %v803_v18 = vld [vmem:[#allocation5 + $0x1768] sm:$0xff]  ;;  %v797_v19 = vld [vmem:[#allocation5 + $0x1738] sm:$0xff] }
 0x1c9   :  { %3275 = vmatprep.subr.bf16.mxu1 %v3274_v22  ;;  %v716_v22 = vld [vmem:[#allocation5 + $0x14b0] sm:$0xff]  ;;  %v3054_v10 = vpack.c.bf16 %v787_v6, %v779_v5  ;;  %v786_v13 = vld [vmem:[#allocation5 + $0x16e0] sm:$0xff]  ;;  %v859_v6 = vld [vmem:[#allocation5 + $0x1928] sm:$0xff] }
 0x1ca   :  { %v852_v5 = vld [vmem:[#allocation5 + $0x18f0] sm:$0xff] }
 0x1cb   :  { %3021 = vmatpush1.bf16.msra.mxu0 %v3020_v32  ;;  %v741_v32 = vld [vmem:[#allocation5 + $0x1578] sm:$0xff] }
 0x1cc   :  { %3277 = vmatpush1.bf16.msra.mxu1 %v3276_v34  ;;  %3023 = vmatprep.subr.bf16.mxu0 %v3022_v35  ;;  %v3040_v34 = vpack.c.bf16 %v722_v24, %v714_v23  ;;  %v3296_v35 = vpack.c.bf16 %v724_v28, %v716_v22  ;;  %v3298_v41 = vpack.c.bf16 %v741_v32, %v733_v33  ;;  %v794_v24 = vld [vmem:[#allocation5 + $0x1720] sm:$0xff]  ;;  %v819_v33 = vld [vmem:[#allocation5 + $0x17e8] sm:$0xff]  ;;  %v813_v32 = vld [vmem:[#allocation5 + $0x17b8] sm:$0xff] }
 0x1cd   :  { %3279 = vmatprep.subr.bf16.mxu1 %v3278_v40  ;;  %v732_v40 = vld [vmem:[#allocation5 + $0x1530] sm:$0xff]  ;;  %v3058_v23 = vpack.c.bf16 %v803_v18, %v795_v17  ;;  %v802_v22 = vld [vmem:[#allocation5 + $0x1760] sm:$0xff]  ;;  %v875_v18 = vld [vmem:[#allocation5 + $0x19a8] sm:$0xff] }
 0x1ce   :  { %v868_v17 = vld [vmem:[#allocation5 + $0x1970] sm:$0xff] }
 0x1cf   :  { %3025 = vmatpush1.bf16.msra.mxu0 %v3024_v46  ;;  %v757_v46 = vld [vmem:[#allocation5 + $0x15f8] sm:$0xff] }
 0x1d0   :  { %3281 = vmatpush1.bf16.msra.mxu1 %v3280_v47  ;;  %3027 = vmatprep.subr.bf16.mxu0 %v3026_v25  ;;  %v3044_v47 = vpack.c.bf16 %v738_v38, %v730_v37  ;;  %v3300_v25 = vpack.c.bf16 %v740_v42, %v732_v40  ;;  %v3302_v53 = vpack.c.bf16 %v757_v46, %v749_v45  ;;  %v810_v38 = vld [vmem:[#allocation5 + $0x17a0] sm:$0xff]  ;;  %v835_v45 = vld [vmem:[#allocation5 + $0x1868] sm:$0xff]  ;;  %v829_v46 = vld [vmem:[#allocation5 + $0x1838] sm:$0xff] }
 0x1d1   :  { %3283 = vmatprep.subr.bf16.mxu1 %v3282_v52  ;;  %v748_v52 = vld [vmem:[#allocation5 + $0x15b0] sm:$0xff]  ;;  %v3062_v37 = vpack.c.bf16 %v819_v33, %v811_v31  ;;  %v818_v40 = vld [vmem:[#allocation5 + $0x17e0] sm:$0xff]  ;;  %v891_v31 = vld [vmem:[#allocation5 + $0x1a28] sm:$0xff] }
 0x1d2   :  { %v899_v33 = vld [vmem:[#allocation5 + $0x1a68] sm:$0xff] }
 0x1d3   :  { %3029 = vmatpush1.bf16.msra.mxu0 %v3028_v59  ;;  %v773_v59 = vld [vmem:[#allocation5 + $0x1678] sm:$0xff] }
 0x1d4   :  { %3285 = vmatpush1.bf16.msra.mxu1 %v3284_v60  ;;  %3031 = vmatprep.subr.bf16.mxu0 %v3030_v62  ;;  %v3048_v60 = vpack.c.bf16 %v754_v51, %v746_v50  ;;  %v3304_v62 = vpack.c.bf16 %v756_v54, %v748_v52  ;;  %v3306_v3 = vpack.c.bf16 %v773_v59, %v765_v58  ;;  %v826_v51 = vld [vmem:[#allocation5 + $0x1820] sm:$0xff]  ;;  %v851_v58 = vld [vmem:[#allocation5 + $0x18e8] sm:$0xff]  ;;  %v845_v59 = vld [vmem:[#allocation5 + $0x18b8] sm:$0xff] }
 0x1d5   :  { %3287 = vmatprep.subr.bf16.mxu1 %v3286_v2  ;;  %v764_v2 = vld [vmem:[#allocation5 + $0x1630] sm:$0xff]  ;;  %v3066_v50 = vpack.c.bf16 %v835_v45, %v827_v44  ;;  %v834_v52 = vld [vmem:[#allocation5 + $0x1860] sm:$0xff]  ;;  %v915_v44 = vld [vmem:[#allocation5 + $0x1ae8] sm:$0xff]  ;;  %v1082_v45 = vsub.s32 0, %v3584_v61 }
 0x1d7   :  { %3033 = vmatpush1.bf16.msra.mxu0 %v3032_v7  ;;  %v789_v7 = vld [vmem:[#allocation5 + $0x16f8] sm:$0xff] }
 0x1d8   :  { %3289 = vmatpush1.bf16.msra.mxu1 %v3288_v8  ;;  %3035 = vmatprep.subr.bf16.mxu0 %v3034_v9  ;;  %v3052_v8 = vpack.c.bf16 %v770_v1, %v762_v0  ;;  %v3308_v9 = vpack.c.bf16 %v772_v4, %v764_v2  ;;  %v3310_v49 = vpack.c.bf16 %v789_v7, %v781_v26  ;;  %v842_v1 = vld [vmem:[#allocation5 + $0x18a0] sm:$0xff]  ;;  %v867_v26 = vld [vmem:[#allocation5 + $0x1968] sm:$0xff]  ;;  %v861_v7 = vld [vmem:[#allocation5 + $0x1938] sm:$0xff] }
 0x1d9   :  { %3291 = vmatprep.subr.bf16.mxu1 %v3290_v14  ;;  %v780_v14 = vld [vmem:[#allocation5 + $0x16b0] sm:$0xff]  ;;  %v3070_v0 = vpack.c.bf16 %v851_v58, %v843_v57  ;;  %v850_v2 = vld [vmem:[#allocation5 + $0x18e0] sm:$0xff] }
 0x1da   :  { %v914_v57 = vld [vmem:[#allocation5 + $0x1ae0] sm:$0xff]  ;;  %v908_v58 = vld [vmem:[#allocation5 + $0x1ab0] sm:$0xff] }
 0x1db   :  { %3037 = vmatpush1.bf16.msra.mxu0 %v3036_v63  ;;  %v805_v63 = vld [vmem:[#allocation5 + $0x1778] sm:$0xff] }
 0x1dc   :  { %3293 = vmatpush1.bf16.msra.mxu1 %v3292_v20  ;;  %3039 = vmatprep.subr.bf16.mxu0 %v3038_v21  ;;  %v3056_v20 = vpack.c.bf16 %v786_v13, %v778_v12  ;;  %v3312_v21 = vpack.c.bf16 %v788_v16, %v780_v14  ;;  %v3314_v28 = vpack.c.bf16 %v805_v63, %v797_v19  ;;  %v858_v13 = vld [vmem:[#allocation5 + $0x1920] sm:$0xff]  ;;  %v883_v19 = vld [vmem:[#allocation5 + $0x19e8] sm:$0xff]  ;;  %v877_v63 = vld [vmem:[#allocation5 + $0x19b8] sm:$0xff] }
 0x1dd   :  { %3295 = vmatprep.subr.bf16.mxu1 %v3294_v27  ;;  %v796_v27 = vld [vmem:[#allocation5 + $0x1730] sm:$0xff]  ;;  %v3074_v12 = vpack.c.bf16 %v867_v26, %v859_v6  ;;  %v866_v14 = vld [vmem:[#allocation5 + $0x1960] sm:$0xff] }
 0x1df   :  { %3041 = vmatpush1.bf16.msra.mxu0 %v3040_v34  ;;  %v821_v34 = vld [vmem:[#allocation5 + $0x17f8] sm:$0xff] }
 0x1e0   :  { %3297 = vmatpush1.bf16.msra.mxu1 %v3296_v35  ;;  %3043 = vmatprep.subr.bf16.mxu0 %v3042_v36  ;;  %v3060_v35 = vpack.c.bf16 %v802_v22, %v794_v24  ;;  %v3316_v36 = vpack.c.bf16 %v804_v30, %v796_v27  ;;  %v3318_v42 = vpack.c.bf16 %v821_v34, %v813_v32  ;;  %v874_v24 = vld [vmem:[#allocation5 + $0x19a0] sm:$0xff]  ;;  %v876_v27 = vld [vmem:[#allocation5 + $0x19b0] sm:$0xff]  ;;  %v893_v32 = vld [vmem:[#allocation5 + $0x1a38] sm:$0xff] }
 0x1e1   :  { %3299 = vmatprep.subr.bf16.mxu1 %v3298_v41  ;;  %v812_v41 = vld [vmem:[#allocation5 + $0x17b0] sm:$0xff]  ;;  %v882_v22 = vld [vmem:[#allocation5 + $0x19e0] sm:$0xff]  ;;  %v901_v34 = vld [vmem:[#allocation5 + $0x1a78] sm:$0xff] }
 0x1e2   :  { %v884_v30 = vld [vmem:[#allocation5 + $0x19f0] sm:$0xff] }
 0x1e3   :  { %3045 = vmatpush1.bf16.msra.mxu0 %v3044_v47  ;;  %v837_v47 = vld [vmem:[#allocation5 + $0x1878] sm:$0xff] }
 0x1e4   :  { %3301 = vmatpush1.bf16.msra.mxu1 %v3300_v25  ;;  %3047 = vmatprep.subr.bf16.mxu0 %v3046_v48  ;;  %v3064_v25 = vpack.c.bf16 %v818_v40, %v810_v38  ;;  %v3320_v48 = vpack.c.bf16 %v820_v43, %v812_v41  ;;  %v3322_v54 = vpack.c.bf16 %v837_v47, %v829_v46  ;;  %v898_v38 = vld [vmem:[#allocation5 + $0x1a60] sm:$0xff]  ;;  %v892_v40 = vld [vmem:[#allocation5 + $0x1a30] sm:$0xff]  ;;  %v907_v43 = vld [vmem:[#allocation5 + $0x1aa8] sm:$0xff] }
 0x1e5   :  { %3303 = vmatprep.subr.bf16.mxu1 %v3302_v53  ;;  %v828_v53 = vld [vmem:[#allocation5 + $0x1830] sm:$0xff]  ;;  %v3338_v41 = vpack.c.bf16 %v901_v34, %v893_v32  ;;  %v909_v46 = vld [vmem:[#allocation5 + $0x1ab8] sm:$0xff] }
 0x1e6   :  { %v917_v47 = vld [vmem:[#allocation5 + $0x1af8] sm:$0xff] }
 0x1e7   :  { %3049 = vmatpush1.bf16.msra.mxu0 %v3048_v60  ;;  %v853_v60 = vld [vmem:[#allocation5 + $0x18f8] sm:$0xff] }
 0x1e8   :  { %3305 = vmatpush1.bf16.msra.mxu1 %v3304_v62  ;;  %3051 = vmatprep.subr.bf16.mxu0 %v3050_v39  ;;  %v3068_v62 = vpack.c.bf16 %v834_v52, %v826_v51  ;;  %v3324_v39 = vpack.c.bf16 %v836_v56, %v828_v53  ;;  %v3326_v4 = vpack.c.bf16 %v853_v60, %v845_v59  ;;  %v1086_v51 = vsub.s32 1, %v3584_v61  ;;  %v906_v56 = vld [vmem:[#allocation5 + $0x1aa0] sm:$0xff]  ;;  %v916_v60 = vld [vmem:[#allocation5 + $0x1af0] sm:$0xff] }
 0x1e9   :  { %3307 = vmatprep.subr.bf16.mxu1 %v3306_v3  ;;  %v844_v3 = vld [vmem:[#allocation5 + $0x18b0] sm:$0xff]  ;;  %v1094_v53 = vsub.s32 3, %v3584_v61  ;;  %v3342_v59 = vpack.c.bf16 %v917_v47, %v909_v46  ;;  %v3344_v26 = vpack.c.bf16 %v916_v60, %v908_v58  ;;  %v954_v46 = vld [vmem:[#allocation5 + $0x1c20] sm:$0xff] }
 0x1ea   :  { %v962_v47 = vld [vmem:[#allocation5 + $0x1c60] sm:$0xff] }
 0x1eb   :  { %3053 = vmatpush1.bf16.msra.mxu0 %v3052_v8  ;;  %v869_v8 = vld [vmem:[#allocation5 + $0x1978] sm:$0xff]  ;;  %v3100_v58 = vpack.c.bf16 %v962_v47, %v954_v46  ;;  %v1034_v47 = vld [vmem:[#allocation5 + $0x1ea0] sm:$0xff] }
 0x1ec   :  { %3309 = vmatpush1.bf16.msra.mxu1 %v3308_v9  ;;  %3055 = vmatprep.subr.bf16.mxu0 %v3054_v10  ;;  %v3072_v9 = vpack.c.bf16 %v850_v2, %v842_v1  ;;  %v3328_v10 = vpack.c.bf16 %v852_v5, %v844_v3  ;;  %v3330_v16 = vpack.c.bf16 %v869_v8, %v861_v7  ;;  %v925_v1 = vld [vmem:[#allocation5 + $0x1b38] sm:$0xff]  ;;  %v922_v8 = vld [vmem:[#allocation5 + $0x1b20] sm:$0xff] }
 0x1ed   :  { %3311 = vmatprep.subr.bf16.mxu1 %v3310_v49  ;;  %v860_v49 = vld [vmem:[#allocation5 + $0x1930] sm:$0xff]  ;;  %v933_v2 = vld [vmem:[#allocation5 + $0x1b78] sm:$0xff]  ;;  %v3088_v5 = vpack.c.bf16 %v914_v57, %v906_v56 }
 0x1ee   :  { %v981_v56 = vld [vmem:[#allocation5 + $0x1cf8] sm:$0xff] }
 0x1ef   :  { %3057 = vmatpush1.bf16.msra.mxu0 %v3056_v20  ;;  %v885_v20 = vld [vmem:[#allocation5 + $0x19f8] sm:$0xff] }
 0x1f0   :  { %3313 = vmatpush1.bf16.msra.mxu1 %v3312_v21  ;;  %3059 = vmatprep.subr.bf16.mxu0 %v3058_v23  ;;  %v3332_v21 = vpack.c.bf16 %v868_v17, %v860_v49  ;;  %v3078_v23 = vpack.c.bf16 %v883_v19, %v875_v18  ;;  %v939_v49 = vld [vmem:[#allocation5 + $0x1ba8] sm:$0xff] }
 0x1f1   :  { %3315 = vmatprep.subr.bf16.mxu1 %v3314_v28  ;;  %v3334_v28 = vpack.c.bf16 %v885_v20, %v877_v63  ;;  %v941_v63 = vld [vmem:[#allocation5 + $0x1bb8] sm:$0xff] }
 0x1f2   :  { %v949_v20 = vld [vmem:[#allocation5 + $0x1bf8] sm:$0xff] }
 0x1f3   :  { %3061 = vmatpush1.bf16.msra.mxu0 %v3060_v35  ;;  %v3080_v35 = vpack.c.bf16 %v882_v22, %v874_v24  ;;  %v3350_v34 = vpack.c.bf16 %v949_v20, %v941_v63 }
 0x1f4   :  { %3317 = vmatpush1.bf16.msra.mxu1 %v3316_v36  ;;  %3063 = vmatprep.subr.bf16.mxu0 %v3062_v37  ;;  %v3082_v36 = vpack.c.bf16 %v899_v33, %v891_v31  ;;  %v890_v37 = vld [vmem:[#allocation5 + $0x1a20] sm:$0xff]  ;;  %v940_v33 = vld [vmem:[#allocation5 + $0x1bb0] sm:$0xff] }
 0x1f5   :  { %3319 = vmatprep.subr.bf16.mxu1 %v3318_v42  ;;  %v900_v42 = vld [vmem:[#allocation5 + $0x1a70] sm:$0xff]  ;;  %v946_v31 = vld [vmem:[#allocation5 + $0x1be0] sm:$0xff] }
 0x1f6   :  { %v3340_v52 = vpack.c.bf16 %v900_v42, %v892_v40  ;;  %v965_v40 = vld [vmem:[#allocation5 + $0x1c78] sm:$0xff] }
 0x1f7   :  { %3065 = vmatpush1.bf16.msra.mxu0 %v3064_v25  ;;  %v3084_v25 = vpack.c.bf16 %v898_v38, %v890_v37  ;;  %v957_v38 = vld [vmem:[#allocation5 + $0x1c38] sm:$0xff] }
 0x1f8   :  { %3321 = vmatpush1.bf16.msra.mxu1 %v3320_v48  ;;  %3067 = vmatprep.subr.bf16.mxu0 %v3066_v50  ;;  %v3658_v48 = vld [vmem:[#allocation7] sm:$0xff]  ;;  %v1090_v50 = vsub.s32 2, %v3584_v61 }
 0x1f9   :  { %3323 = vmatprep.subr.bf16.mxu1 %v3322_v54  ;;  %v3086_v54 = vpack.c.bf16 %v915_v44, %v907_v43  ;;  %v1095_v6 = vrot.slane %v3658_v48, %v1094_v53  ;;  %v979_v53 = vld [vmem:[#allocation5 + $0x1ce8] sm:$0xff] }
 0x1fa   :  { %1939 = vmatmul.mubr.f32.vlgmr.msra.gmra.mrb[2].mxu0 %v3618_v55  ;;  %v1091_v3 = vrot.slane %v3658_v48, %v1090_v50  ;;  %v3354_v50 = vpack.c.bf16 %v965_v40, %v957_v38  ;;  %v1028_v38 = vld [vmem:[#allocation5 + $0x1e70] sm:$0xff]  ;;  %v1035_v40 = vld [vmem:[#allocation5 + $0x1ea8] sm:$0xff] }
 0x1fb   :  { %3069 = vmatpush1.bf16.msra.mxu0 %v3068_v62  ;;  %2223 = vmatmul.mubr.f32.vlgmr.msra.gmra.mrb[2].mxu1 %v3618_v55  ;;  %v3076_v55 = vpack.c.bf16 %v866_v14, %v858_v13  ;;  %v923_v62 = vld [vmem:[#allocation5 + $0x1b28] sm:$0xff]  ;;  %v3346_v13 = vpack.c.bf16 %v933_v2, %v925_v1  ;;  %v932_v14 = vld [vmem:[#allocation5 + $0x1b70] sm:$0xff] }
 0x1fc   :  { %3325 = vmatpush1.bf16.msra.mxu1 %v3324_v39  ;;  %3071 = vmatprep.subr.bf16.mxu0 %v3070_v0  ;;  %v931_v39 = vld [vmem:[#allocation5 + $0x1b68] sm:$0xff]  ;;  %v1083_v0 = vrot.slane %v3658_v48, %v1082_v45  ;;  %v980_v2 = vld [vmem:[#allocation5 + $0x1cf0] sm:$0xff] }
 0x1fd   :  { %3327 = vmatprep.subr.bf16.mxu1 %v3326_v4  ;;  %2009 = vmatprep.mubr.f32.mxu0 %v3635_v29  ;;  %v1087_v4 = vrot.slane %v3658_v48, %v1086_v51  ;;  %v3090_v7 = vpack.c.bf16 %v931_v39, %v923_v62  ;;  %v964_v51 = vld [vmem:[#allocation5 + $0x1c70] sm:$0xff]  ;;  %v970_v62 = vld [vmem:[#allocation5 + $0x1ca0] sm:$0xff] }
 0x1fe   :  { %2293 = vmatprep.mubr.f32.mxu1 %v3635_v29  ;;  %v3336_v29 = vpack.c.bf16 %v884_v30, %v876_v27  ;;  %v938_v30 = vld [vmem:[#allocation5 + $0x1ba0] sm:$0xff] }
 0x1ff   :  { %3073 = vmatpush1.bf16.msra.mxu0 %v3072_v9  ;;  %v930_v9 = vld [vmem:[#allocation5 + $0x1b60] sm:$0xff]  ;;  %v3096_v42 = vpack.c.bf16 %v946_v31, %v938_v30  ;;  %v1021_v30 = vld [vmem:[#allocation5 + $0x1e38] sm:$0xff] }
 0x200   :  { %3329 = vmatpush1.bf16.msra.mxu1 %v3328_v10  ;;  %3075 = vmatprep.subr.bf16.mxu0 %v3074_v12  ;;  %v924_v10 = vld [vmem:[#allocation5 + $0x1b30] sm:$0xff]  ;;  %v3092_v24 = vpack.c.bf16 %v930_v9, %v922_v8  ;;  %v978_v39 = vld [vmem:[#allocation5 + $0x1ce0] sm:$0xff]  ;;  %v1029_v31 = vld [vmem:[#allocation5 + $0x1e78] sm:$0xff] }
 0x201   :  { %3331 = vmatprep.subr.bf16.mxu1 %v3330_v16  ;;  %v947_v16 = vld [vmem:[#allocation5 + $0x1be8] sm:$0xff]  ;;  %v3348_v27 = vpack.c.bf16 %v932_v14, %v924_v10  ;;  %v986_v9 = vld [vmem:[#allocation5 + $0x1d20] sm:$0xff]  ;;  %v996_v14 = vld [vmem:[#allocation5 + $0x1d70] sm:$0xff] }
 0x202   :  { %v994_v10 = vld [vmem:[#allocation5 + $0x1d60] sm:$0xff] }
 0x203   :  { %3077 = vmatpush1.bf16.msra.mxu0 %v3076_v55 }
 0x204   :  { %3333 = vmatpush1.bf16.msra.mxu1 %v3332_v21  ;;  %3079 = vmatprep.subr.bf16.mxu0 %v3078_v23 }
 0x205   :  { %3335 = vmatprep.subr.bf16.mxu1 %v3334_v28  ;;  %v3094_v28 = vpack.c.bf16 %v947_v16, %v939_v49  ;;  %v1003_v49 = vld [vmem:[#allocation5 + $0x1da8] sm:$0xff] }
 0x206   :  { %v1011_v16 = vld [vmem:[#allocation5 + $0x1de8] sm:$0xff] }
 0x207   :  { %3081 = vmatpush1.bf16.msra.mxu0 %v3080_v35  ;;  %v948_v35 = vld [vmem:[#allocation5 + $0x1bf0] sm:$0xff]  ;;  %v3110_v20 = vpack.c.bf16 %v1011_v16, %v1003_v49 }
 0x208   :  { %3337 = vmatpush1.bf16.msra.mxu1 %v3336_v29  ;;  %3083 = vmatprep.subr.bf16.mxu0 %v3082_v36  ;;  %v955_v29 = vld [vmem:[#allocation5 + $0x1c28] sm:$0xff]  ;;  %v3352_v44 = vpack.c.bf16 %v948_v35, %v940_v33  ;;  %v1018_v35 = vld [vmem:[#allocation5 + $0x1e20] sm:$0xff] }
 0x209   :  { %3339 = vmatprep.subr.bf16.mxu1 %v3338_v41  ;;  %v963_v36 = vld [vmem:[#allocation5 + $0x1c68] sm:$0xff] }
 0x20a   :  { %v3098_v45 = vpack.c.bf16 %v963_v36, %v955_v29  ;;  %v1026_v29 = vld [vmem:[#allocation5 + $0x1e60] sm:$0xff]  ;;  %v1020_v36 = vld [vmem:[#allocation5 + $0x1e30] sm:$0xff] }
 0x20b   :  { %3085 = vmatpush1.bf16.msra.mxu0 %v3084_v25  ;;  %v956_v25 = vld [vmem:[#allocation5 + $0x1c30] sm:$0xff] }
 0x20c   :  { %3341 = vmatpush1.bf16.msra.mxu1 %v3340_v52  ;;  %3087 = vmatprep.subr.bf16.mxu0 %v3086_v54  ;;  %v971_v52 = vld [vmem:[#allocation5 + $0x1ca8] sm:$0xff]  ;;  %v973_v54 = vld [vmem:[#allocation5 + $0x1cb8] sm:$0xff] }
 0x20d   :  { %v1443_v12 = vpop.f32.mrb[0].mxu0  ;;  %3343 = vmatprep.subr.bf16.mxu1 %v3342_v59  ;;  %v3356_v59 = vpack.c.bf16 %v964_v51, %v956_v25  ;;  %v3102_v60 = vpack.c.bf16 %v979_v53, %v971_v52  ;;  %v3358_v1 = vpack.c.bf16 %v981_v56, %v973_v54  ;;  %v1042_v25 = vld [vmem:[#allocation5 + $0x1ee0] sm:$0xff]  ;;  %v1044_v52 = vld [vmem:[#allocation5 + $0x1ef0] sm:$0xff]  ;;  %v1051_v53 = vld [vmem:[#allocation5 + $0x1f28] sm:$0xff] }
 0x20e   :  { %v3386_v17 = vadd.f32 %v1443_v12, %v1083_v0  ;;  %v1727_v18 = vpop.f32.mrb[0].mxu1  ;;  %v1445_v19 = vpop.f32.mrb[1].mxu0  ;;  %v972_v0 = vld [vmem:[#allocation5 + $0x1cb0] sm:$0xff]  ;;  %v1059_v54 = vld [vmem:[#allocation5 + $0x1f68] sm:$0xff]  ;;  %v1053_v56 = vld [vmem:[#allocation5 + $0x1f38] sm:$0xff] }
 0x20f   :  { %v3388_v55 = vadd.f32 %v1727_v18, %v1091_v3  ;;  %v3387_v21 = vadd.f32 %v1445_v19, %v1087_v4  ;;  %v1729_v23 = vpop.f32.mrb[1].mxu1  ;;  %3089 = vmatpush1.bf16.msra.mxu0 %v3088_v5  ;;  %v987_v3 = vld [vmem:[#allocation5 + $0x1d28] sm:$0xff]  ;;  %v989_v5 = vld [vmem:[#allocation5 + $0x1d38] sm:$0xff]  ;;  %v988_v12 = vld [vmem:[#allocation5 + $0x1d30] sm:$0xff]  ;;  %v3108_v19 = vpack.c.bf16 %v994_v10, %v986_v9 }
 0x210   :  { %v3389_v22 = vadd.f32 %v1729_v23, %v1095_v6  ;;  %3345 = vmatpush1.bf16.msra.mxu1 %v3344_v26  ;;  %3091 = vmatprep.subr.bf16.mxu0 %v3090_v7  ;;  %v995_v4 = vld [vmem:[#allocation5 + $0x1d68] sm:$0xff]  ;;  %v997_v6 = vld [vmem:[#allocation5 + $0x1d78] sm:$0xff]  ;;  %v3104_v26 = vpack.c.bf16 %v978_v39, %v970_v62  ;;  %v3360_v7 = vpack.c.bf16 %v980_v2, %v972_v0  ;;  %v1004_v23 = vld [vmem:[#allocation5 + $0x1db0] sm:$0xff] }
 0x211   :  { %v2308_v32 = vcombine.low %v3386_v17, %v3387_v21  ;;  %3347 = vmatprep.subr.bf16.mxu1 %v3346_v13  ;;  %v3106_v8 = vpack.c.bf16 %v995_v4, %v987_v3  ;;  %v3362_v13 = vpack.c.bf16 %v997_v6, %v989_v5  ;;  %v1005_v17 = vld [vmem:[#allocation5 + $0x1db8] sm:$0xff]  ;;  %v3364_v63 = vpack.c.bf16 %v996_v14, %v988_v12  ;;  %v1010_v21 = vld [vmem:[#allocation5 + $0x1de0] sm:$0xff]  ;;  %v1052_v0 = vld [vmem:[#allocation5 + $0x1f30] sm:$0xff] }
 0x212   :  { %v2309_v37 = vcombine.low %v3388_v55, %v3389_v22  ;;  %v1013_v18 = vld [vmem:[#allocation5 + $0x1df8] sm:$0xff]  ;;  %v1002_v55 = vld [vmem:[#allocation5 + $0x1da0] sm:$0xff]  ;;  %v1012_v22 = vld [vmem:[#allocation5 + $0x1df0] sm:$0xff] }
 0x213   :  { %v2316_v41 = vrot.slane %v2308_v32, %v3587_v11  ;;  %3093 = vmatpush1.bf16.msra.mxu0 %v3092_v24  ;;  %v3366_v24 = vpack.c.bf16 %v1013_v18, %v1005_v17  ;;  %v3112_v33 = vpack.c.bf16 %v1010_v21, %v1002_v55  ;;  %v3368_v32 = vpack.c.bf16 %v1012_v22, %v1004_v23  ;;  %v1050_v62 = vld [vmem:[#allocation5 + $0x1f20] sm:$0xff]  ;;  %v1060_v2 = vld [vmem:[#allocation5 + $0x1f70] sm:$0xff]  ;;  %v1067_v3 = vld [vmem:[#allocation5 + $0x1fa8] sm:$0xff] }
 0x214   :  { %v2323_v43 = vrot.slane %v2309_v37, %v3587_v11  ;;  %3349 = vmatpush1.bf16.msra.mxu1 %v3348_v27  ;;  %3095 = vmatprep.subr.bf16.mxu0 %v3094_v28  ;;  %v1019_v27 = vld [vmem:[#allocation5 + $0x1e28] sm:$0xff]  ;;  %v3370_v37 = vpack.c.bf16 %v1029_v31, %v1021_v30  ;;  %v1058_v39 = vld [vmem:[#allocation5 + $0x1f60] sm:$0xff]  ;;  %v1069_v5 = vld [vmem:[#allocation5 + $0x1fb8] sm:$0xff]  ;;  %v1098_v17 = vsub.s32 4, %v3584_v61  ;;  %v1106_v18 = vsub.s32 6, %v3584_v61 }
 0x215   :  { %3351 = vmatprep.subr.bf16.mxu1 %v3350_v34  ;;  %v1027_v28 = vld [vmem:[#allocation5 + $0x1e68] sm:$0xff]  ;;  %v1077_v6 = vld [vmem:[#allocation5 + $0x1ff8] sm:$0xff]  ;;  %v1066_v9 = vld [vmem:[#allocation5 + $0x1fa0] sm:$0xff] }
 0x216   :  { %v2324_v57 = vcombine.low %v2316_v41, %v2323_v43  ;;  %v3114_v34 = vpack.c.bf16 %v1027_v28, %v1019_v27  ;;  %v1043_v41 = vld [vmem:[#allocation5 + $0x1ee8] sm:$0xff]  ;;  %v1045_v43 = vld [vmem:[#allocation5 + $0x1ef8] sm:$0xff]  ;;  %v1074_v10 = vld [vmem:[#allocation5 + $0x1fe0] sm:$0xff]  ;;  %v3382_v12 = vpack.c.bf16 %v1077_v6, %v1069_v5  ;;  %v1107_v55 = vrot.slane %v3658_v48, %v1106_v18 }
 0x217   :  { %3097 = vmatpush1.bf16.msra.mxu0 %v3096_v42  ;;  %v1037_v42 = vld [vmem:[#allocation5 + $0x1eb8] sm:$0xff]  ;;  %v3118_v46 = vpack.c.bf16 %v1043_v41, %v1035_v40  ;;  %v1075_v4 = vld [vmem:[#allocation5 + $0x1fe8] sm:$0xff]  ;;  %v1076_v14 = vld [vmem:[#allocation5 + $0x1ff0] sm:$0xff]  ;;  %v3128_v49 = vpack.c.bf16 %v1074_v10, %v1066_v9 }
 0x218   :  { %3353 = vmatpush1.bf16.msra.mxu1 %v3352_v44  ;;  %3099 = vmatprep.subr.bf16.mxu0 %v3098_v45  ;;  %2344 = vst [vmem:[#allocation8] sm:$0xff] %v2324_v57  ;;  %v3116_v44 = vpack.c.bf16 %v1026_v29, %v1018_v35  ;;  %v3372_v45 = vpack.c.bf16 %v1028_v38, %v1020_v36  ;;  %v1061_v57 = vld [vmem:[#allocation5 + $0x1f78] sm:$0xff] }
 0x219   :  { %3355 = vmatprep.subr.bf16.mxu1 %v3354_v50  ;;  %v1036_v50 = vld [vmem:[#allocation5 + $0x1eb0] sm:$0xff]  ;;  %v3374_v51 = vpack.c.bf16 %v1045_v43, %v1037_v42 }
 0x21b   :  { %3101 = vmatpush1.bf16.msra.mxu0 %v3100_v58  ;;  %v3120_v58 = vpack.c.bf16 %v1042_v25, %v1034_v47 }
 0x21c   :  { %3357 = vmatpush1.bf16.msra.mxu1 %v3356_v59  ;;  %3103 = vmatprep.subr.bf16.mxu0 %v3102_v60  ;;  %v3376_v59 = vpack.c.bf16 %v1044_v52, %v1036_v50  ;;  %v3122_v60 = vpack.c.bf16 %v1059_v54, %v1051_v53 }
 0x21d   :  { %3359 = vmatprep.subr.bf16.mxu1 %v3358_v1  ;;  %v3378_v1 = vpack.c.bf16 %v1061_v57, %v1053_v56 }
 0x21f   :  { %3105 = vmatpush1.bf16.msra.mxu0 %v3104_v26  ;;  %v3124_v26 = vpack.c.bf16 %v1058_v39, %v1050_v62 }
 0x220   :  { %3361 = vmatpush1.bf16.msra.mxu1 %v3360_v7  ;;  %3107 = vmatprep.subr.bf16.mxu0 %v3106_v8  ;;  %v3380_v7 = vpack.c.bf16 %v1060_v2, %v1052_v0  ;;  %v3126_v8 = vpack.c.bf16 %v1075_v4, %v1067_v3 }
 0x221   :  { %3363 = vmatprep.subr.bf16.mxu1 %v3362_v13  ;;  %v1068_v13 = vld [vmem:[#allocation5 + $0x1fb0] sm:$0xff] }
 0x222   :  { %v3384_v16 = vpack.c.bf16 %v1076_v14, %v1068_v13 }
 0x223   :  { %3109 = vmatpush1.bf16.msra.mxu0 %v3108_v19  ;;  %v1102_v19 = vsub.s32 5, %v3584_v61 }
 0x224   :  { %3365 = vmatpush1.bf16.msra.mxu1 %v3364_v63  ;;  %3111 = vmatprep.subr.bf16.mxu0 %v3110_v20  ;;  %v1110_v63 = vsub.s32 7, %v3584_v61  ;;  %v1099_v20 = vrot.slane %v3658_v48, %v1098_v17 }
 0x225   :  { %3367 = vmatprep.subr.bf16.mxu1 %v3366_v24  ;;  %v1103_v21 = vrot.slane %v3658_v48, %v1102_v19 }
 0x226   :  { %v1111_v23 = vrot.slane %v3658_v48, %v1110_v63 }
 0x227   :  { %3113 = vmatpush1.bf16.msra.mxu0 %v3112_v33 }
 0x228   :  { %3369 = vmatpush1.bf16.msra.mxu1 %v3368_v32  ;;  %3115 = vmatprep.subr.bf16.mxu0 %v3114_v34 }
 0x229   :  { %3371 = vmatprep.subr.bf16.mxu1 %v3370_v37 }
 0x22b   :  { %3117 = vmatpush1.bf16.msra.mxu0 %v3116_v44 }
 0x22c   :  { %3373 = vmatpush1.bf16.msra.mxu1 %v3372_v45  ;;  %3119 = vmatprep.subr.bf16.mxu0 %v3118_v46 }
 0x22d   :  { %3375 = vmatprep.subr.bf16.mxu1 %v3374_v51 }
 0x22f   :  { %3121 = vmatpush1.bf16.msra.mxu0 %v3120_v58 }
 0x230   :  { %3377 = vmatpush1.bf16.msra.mxu1 %v3376_v59  ;;  %3123 = vmatprep.subr.bf16.mxu0 %v3122_v60 }
 0x231   :  { %3379 = vmatprep.subr.bf16.mxu1 %v3378_v1 }
 0x233   :  { %3125 = vmatpush1.bf16.msra.mxu0 %v3124_v26 }
 0x234   :  { %3381 = vmatpush1.bf16.msra.mxu1 %v3380_v7  ;;  %3127 = vmatprep.subr.bf16.mxu0 %v3126_v8 }
 0x235   :  { %3383 = vmatprep.subr.bf16.mxu1 %v3382_v12 }
 0x237   :  { %3129 = vmatpush1.bf16.msra.mxu0 %v3128_v49 }
 0x238   :  { %3385 = vmatpush1.bf16.msra.mxu1 %v3384_v16 }
 0x23a   :  { %2010 = vmatmul.mubr.f32.vlgmr.msra.gmra.mrb[2].mxu0 %v3631_v15 }
 0x23b   :  { %2294 = vmatmul.mubr.f32.vlgmr.msra.gmra.mrb[2].mxu1 %v3631_v15 }
 0x30d   :  { %v2011_v24 = vpop.f32.mrb[2].mxu0 }
 0x30e   :  { %v3390_v22 = vadd.f32 %v2011_v24, %v1099_v20  ;;  %v2295_v27 = vpop.f32.mrb[2].mxu1  ;;  %v2013_v15 = vpop.f32.mrb[3].mxu0 }
 0x30f   :  { %v3392_v28 = vadd.f32 %v2295_v27, %v1107_v55  ;;  %v3391_v30 = vadd.f32 %v2013_v15, %v1103_v21  ;;  %v2297_v31 = vpop.f32.mrb[3].mxu1 }
 0x310   :  { %v3393_v33 = vadd.f32 %v2297_v31, %v1111_v23 }
 0x311   :  { %v2325_v32 = vcombine.low %v3390_v22, %v3391_v30 }
 0x312   :  { %v2326_v34 = vcombine.low %v3392_v28, %v3393_v33 }
 0x313   :  { %v2333_v61 = vrot.slane %v2325_v32, %v3587_v11 }
 0x314   :  { %v2340_v35 = vrot.slane %v2326_v34, %v3587_v11 }
 0x316   :  { %v2341_v29 = vcombine.low %v2333_v61, %v2340_v35 }
 0x318   :  { %2345 = vst [vmem:[#allocation8 + $0x8] sm:$0xff] %v2341_v29 }
 0x319   :  { %3504 = shalt.err (!%p3501_p0)
}
 0x31a   :  { %s3505_s25 = scalar_lea.hbm %s3696_s3, 256 }
 0x31b   :  { %p3506_p1 = scmp.ne.s32.totalorder %s3696_s3, %s3505_s25  ;;  %p3509_p2 = scmp.lt.u32.totalorder %s3505_s25, %s3696_s3 }
 0x31d   :  { %p3511_p3 = pnand %p3509_p2, %p3506_p1 }
 0x31f   :  { %3514 = shalt.err (!%p3511_p3)
}
 0x320   :  { %2355 = dma.vmem_to_hbm [thread:$0]  %s2353_s21, 256, %s3696_s3, [#allocation4]  }
 0x321   :  { %3519 = dma.done.wait [#allocation4], 256  }
 0x322   :  { %3520 = vsyncadd [#allocation4], 4294967040 }
 0x323   :  { %2359 = vsyncpa [#allocation3], 1 }
 0x324   :  { %2360 = vsyncpa [#allocation6], 1 }
 0x325   :  { %2361 = vsyncpa [#allocation4], 1 }

</bundles_post_ra>
